<compile_context>
chip_gen: v7x
topology: tpu7x:2x2x1
jax: 0.10.0
libtpu: 0.0.40
codegen_flags: <defaults>
</compile_context>

<pallas_src>
import functools
import math

import jax
import jax.numpy as jnp
from jax import lax
from jax.experimental import pallas as pl
from jax.experimental.pallas import tpu as pltpu


def _layernorm(x, g, b, eps=1e-5):
    mu = jnp.mean(x, axis=-1, keepdims=True)
    xc = x - mu
    var = jnp.mean(xc * xc, axis=-1, keepdims=True)
    return xc * lax.rsqrt(var + eps) * g + b


def encoder_layer_kernel(x_ref,
                         wq_ref, bq_ref, wk_ref, bk_ref, wv_ref, bv_ref,
                         wo_ref, bo_ref,
                         ln1_g_ref, ln1_b_ref,
                         w1_ref, b1_ref, w2_ref, b2_ref,
                         ln2_g_ref, ln2_b_ref,
                         out_ref,
                         k_sc, v_sc,
                         *, num_heads, head_dim, tile_q):
    f32 = jnp.float32
    bf16 = jnp.bfloat16
    H = num_heads * head_dim

    # ---- K/V projections: once per batch (q axis is 'arbitrary'; the bf16
    # VMEM scratch persists across the q grid steps of this batch). ----------
    @pl.when(pl.program_id(1) == 0)
    def _():
        xkv = x_ref[...].astype(bf16)                                 # [S, H]
        k_sc[...] = (jnp.dot(xkv, wk_ref[...], preferred_element_type=f32)
                     + bk_ref[...]).astype(bf16)
        v_sc[...] = (jnp.dot(xkv, wv_ref[...], preferred_element_type=f32)
                     + bv_ref[...]).astype(bf16)

    # ---- query tile, sliced out of the resident full-sequence block -------
    q_start = pl.multiple_of(pl.program_id(1) * tile_q, tile_q)
    xq = x_ref[pl.ds(q_start, tile_q), :]                             # f32
    xq_b = xq.astype(bf16)

    # Full-width Q projection (softmax scale already folded into wq/bq).
    q_all = (jnp.dot(xq_b, wq_ref[...], preferred_element_type=f32)
             + bq_ref[...]).astype(bf16)                              # [TQ, H]

    # ---- per-head attention (heads split only for the score/PV step) ------
    fuse_out_proj = (head_dim % 128 == 0)     # wo is [H,H] if fused, else [nh,hd,H]
    ctx_parts = []
    attn_acc = jnp.zeros((tile_q, H), f32)
    for h in range(num_heads):
        lo, hi = h * head_dim, (h + 1) * head_dim
        qh = q_all[:, lo:hi]                                          # [TQ, hd]
        kh = k_sc[:, lo:hi]                                           # [S,  hd]
        vh = v_sc[:, lo:hi]                                           # [S,  hd]

        # q . k^T without an explicit transpose (MXU-friendly).
        energy = lax.dot_general(qh, kh, (((1,), (1,)), ((), ())),
                                 preferred_element_type=f32)          # [TQ, S]
        energy = energy - jnp.max(energy, axis=-1, keepdims=True)
        p = jnp.exp(energy)
        attn = p * pl.reciprocal(jnp.sum(p, axis=-1, keepdims=True),
                                 approx=True)                         # [TQ, S]

        ctx_h = jnp.dot(attn.astype(bf16), vh,
                        preferred_element_type=f32)                   # [TQ, hd]
        if fuse_out_proj:
            ctx_parts.append(ctx_h.astype(bf16))
        else:
            attn_acc = attn_acc + jnp.dot(ctx_h.astype(bf16), wo_ref[h],
                                          preferred_element_type=f32)  # [TQ,H]

    if fuse_out_proj:
        ctx = jnp.concatenate(ctx_parts, axis=-1)                     # [TQ, H]
        attn_out = jnp.dot(ctx, wo_ref[...],
                           preferred_element_type=f32) + bo_ref[...]
    else:
        attn_out = attn_acc + bo_ref[...]

    # ---- residual + post-LayerNorm (dropout = identity in eval) -----------
    x1 = _layernorm(xq + attn_out, ln1_g_ref[...], ln1_b_ref[...])

    # ---- FeedForward: linear1 -> relu -> linear2 ---------------------------
    h1 = jnp.maximum(
        jnp.dot(x1.astype(bf16), w1_ref[...], preferred_element_type=f32)
        + b1_ref[...], 0.0)
    h2 = (jnp.dot(h1.astype(bf16), w2_ref[...], preferred_element_type=f32)
          + b2_ref[...])

    out_ref[...] = _layernorm(x1 + h2, ln2_g_ref[...], ln2_b_ref[...])


def _vmem_limit_bytes():
    # Raise the default scoped-VMEM limit, staying well under physical VMEM
    # (128 MiB v5e/v6e, 64 MiB v7x).
    try:
        cap = int(pltpu.get_tpu_info().vmem_capacity_bytes)
    except Exception:
        cap = 64 * 1024 * 1024
    return int(cap * 3 // 4)


def _pick_seq_tile(S, vmem_limit):
    """Largest convenient multiple of 8 that divides S; 512 on big-VMEM chips
    (v5e/v6e), 256 otherwise (v7x); else full S."""
    max_t = 512 if vmem_limit >= (72 << 20) else 256
    if S <= max_t:
        return S
    for t in (512, 256, 128, 64, 32, 16, 8):
        if t <= max_t and S % t == 0:
            return t
    return S


def pack_params(params, num_heads):
    """One-time weight repack (hoisted out of the hot path): bf16 matmul
    weights, f32 biases/LN params, softmax 1/sqrt(hd) folded into wq/bq."""
    H = params["wq"].shape[0]
    hd = H // num_heads
    bf16, f32 = jnp.bfloat16, jnp.float32
    inv_scale = 1.0 / math.sqrt(hd)

    if hd % 128 == 0:
        wo = params["wo"].astype(bf16)                     # fused [H, H]
    else:
        # per-head [hd, H] slabs on the leading axis (last dim stays H,
        # so no lane padding).
        wo = params["wo"].reshape(num_heads, hd, H).astype(bf16)

    return dict(
        wq=(params["wq"] * inv_scale).astype(bf16),
        bq=(params["bq"] * inv_scale).astype(f32),
        wk=params["wk"].astype(bf16), bk=params["bk"].astype(f32),
        wv=params["wv"].astype(bf16), bv=params["bv"].astype(f32),
        wo=wo, bo=params["bo"].astype(f32),
        ln1_g=params["ln1_g"].astype(f32), ln1_b=params["ln1_b"].astype(f32),
        w1=params["w1"].astype(bf16), b1=params["b1"].astype(f32),
        w2=params["w2"].astype(bf16), b2=params["b2"].astype(f32),
        ln2_g=params["ln2_g"].astype(f32), ln2_b=params["ln2_b"].astype(f32),
    )


def encoder_layer_pallas(x, packed, num_heads):
    B, S, H = x.shape
    hd = H // num_heads
    f32 = jnp.float32

    vmem_limit = _vmem_limit_bytes()
    TQ = _pick_seq_tile(S, vmem_limit)
    n_q = S // TQ

    weight_names = ["wq", "bq", "wk", "bk", "wv", "bv", "wo", "bo",
                    "ln1_g", "ln1_b", "w1", "b1", "w2", "b2",
                    "ln2_g", "ln2_b"]
    weights = [packed[n] for n in weight_names]
    operands = [x] + weights

    kernel = functools.partial(encoder_layer_kernel, num_heads=num_heads,
                               head_dim=hd, tile_q=TQ)

    weight_bytes = sum(int(a.size) * a.dtype.itemsize for a in weights)
    cost = pl.CostEstimate(
        flops=int(2 * B * S * H * (6 * H + 2 * S)),
        transcendentals=int(B * num_heads * S * S),
        # weights once + x read once per batch + output write once.
        bytes_accessed=int(weight_bytes + 2 * B * S * H * 4),
    )

    def build(single_buffer_weights):
        def const_spec(shape):
            n = len(shape)

            def idx(b, q):
                return (0,) * n

            if single_buffer_weights:
                return pl.BlockSpec(shape, idx, pipeline_mode=pl.Buffered(1))
            return pl.BlockSpec(shape, idx)

        in_specs = [pl.BlockSpec((None, S, H), lambda b, q: (b, 0, 0))]
        in_specs += [const_spec(w.shape) for w in weights]

        return pl.pallas_call(
            kernel,
            out_shape=jax.ShapeDtypeStruct((B, S, H), f32),
            grid_spec=pltpu.PrefetchScalarGridSpec(
                num_scalar_prefetch=0,
                grid=(B, n_q),
                in_specs=in_specs,
                out_specs=pl.BlockSpec((None, TQ, H), lambda b, q: (b, q, 0)),
                scratch_shapes=[pltpu.VMEM((S, H), jnp.bfloat16),   # K cache
                                pltpu.VMEM((S, H), jnp.bfloat16)],  # V cache
            ),
            compiler_params=pltpu.CompilerParams(
                dimension_semantics=("parallel", "arbitrary"),
                vmem_limit_bytes=vmem_limit,
            ),
            cost_estimate=cost,
        )

    try:
        # Single-buffer the resident (constant-index) weight blocks.
        return build(True)(*operands)
    except Exception:
        # Fallback for jax versions without BlockSpec(pipeline_mode=...).
        return build(False)(*operands)


def encoder_layer_ref(x, params, num_heads):
    """Plain-JAX (f32) reference for validation."""
    B, S, H = x.shape
    hd = H // num_heads
    scale = jnp.sqrt(jnp.float32(hd))

    q = x @ params["wq"] + params["bq"]
    k = x @ params["wk"] + params["bk"]
    v = x @ params["wv"] + params["bv"]

    def split(t):  # [B,S,H] -> [B,nh,S,hd]
        return t.reshape(B, S, num_heads, hd).transpose(0, 2, 1, 3)

    qh, kh, vh = split(q), split(k), split(v)
    energy = jnp.einsum("bhqd,bhkd->bhqk", qh, kh) / scale
    attn = jax.nn.softmax(energy, axis=-1)
    ctx = jnp.einsum("bhqk,bhkd->bhqd", attn, vh)
    ctx = ctx.transpose(0, 2, 1, 3).reshape(B, S, H)
    attn_out = ctx @ params["wo"] + params["bo"]

    x1 = _layernorm(x + attn_out, params["ln1_g"], params["ln1_b"])
    h1 = jax.nn.relu(x1 @ params["w1"] + params["b1"])
    h2 = h1 @ params["w2"] + params["b2"]
    return _layernorm(x1 + h2, params["ln2_g"], params["ln2_b"])


def make_params(key, hidden_dim):
    """Deterministic parameter init (PyTorch-Linear-like uniform), [in,out]."""
    H = hidden_dim
    bound = 1.0 / (H ** 0.5)
    keys = jax.random.split(key, 12)

    def u(k, shape):
        return jax.random.uniform(k, shape, jnp.float32, -bound, bound)

    return {
        "wq": u(keys[0], (H, H)), "bq": u(keys[1], (1, H)),
        "wk": u(keys[2], (H, H)), "bk": u(keys[3], (1, H)),
        "wv": u(keys[4], (H, H)), "bv": u(keys[5], (1, H)),
        "wo": u(keys[6], (H, H)), "bo": u(keys[7], (1, H)),
        "w1": u(keys[8], (H, H)), "b1": u(keys[9], (1, H)),
        "w2": u(keys[10], (H, H)), "b2": u(keys[11], (1, H)),
        "ln1_g": jnp.ones((1, H), jnp.float32),
        "ln1_b": jnp.zeros((1, H), jnp.float32),
        "ln2_g": jnp.ones((1, H), jnp.float32),
        "ln2_b": jnp.zeros((1, H), jnp.float32),
    }


if __name__ == "__main__":
    B, S, H, NUM_HEADS = 2, 8, 32, 4

    root = jax.random.PRNGKey(0)
    kx, kp = jax.random.split(root)
    x = jax.random.normal(kx, (B, S, H), jnp.float32)
    params = make_params(kp, H)
    packed = pack_params(params, NUM_HEADS)     # one-time weight repack

    out = encoder_layer_pallas(x, packed, NUM_HEADS)
    out = jax.block_until_ready(out)

    ref = encoder_layer_ref(x, params, NUM_HEADS)
    assert out.shape == (B, S, H)
    max_err = float(jnp.max(jnp.abs(out - ref)))
    # bf16 matmuls + approx reciprocal in the kernel -> loosened tolerance vs
    # the pure-f32 reference.
    assert jnp.allclose(out, ref, atol=5e-2, rtol=5e-2), (
        f"mismatch vs JAX reference (max abs err {max_err})")

    print("KERNEL_OK")
</pallas_src>

<mosaic_0001>
module attributes {stable_mosaic.version = 11 : i64} {
  func.func @encoder_layer_kernel(%arg0: i32, %arg1: i32, %arg2: memref<1x8x32xf32, #tpu.memory_space<vmem>>, %arg3: memref<32x32xbf16, #tpu.memory_space<vmem>>, %arg4: memref<1x32xf32, #tpu.memory_space<vmem>>, %arg5: memref<32x32xbf16, #tpu.memory_space<vmem>>, %arg6: memref<1x32xf32, #tpu.memory_space<vmem>>, %arg7: memref<32x32xbf16, #tpu.memory_space<vmem>>, %arg8: memref<1x32xf32, #tpu.memory_space<vmem>>, %arg9: memref<4x8x32xbf16, #tpu.memory_space<vmem>>, %arg10: memref<1x32xf32, #tpu.memory_space<vmem>>, %arg11: memref<1x32xf32, #tpu.memory_space<vmem>>, %arg12: memref<1x32xf32, #tpu.memory_space<vmem>>, %arg13: memref<32x32xbf16, #tpu.memory_space<vmem>>, %arg14: memref<1x32xf32, #tpu.memory_space<vmem>>, %arg15: memref<32x32xbf16, #tpu.memory_space<vmem>>, %arg16: memref<1x32xf32, #tpu.memory_space<vmem>>, %arg17: memref<1x32xf32, #tpu.memory_space<vmem>>, %arg18: memref<1x32xf32, #tpu.memory_space<vmem>>, %arg19: memref<1x8x32xf32, #tpu.memory_space<vmem>>, %arg20: memref<8x32xbf16, #tpu.memory_space<vmem>>, %arg21: memref<8x32xbf16, #tpu.memory_space<vmem>>) attributes {dimension_semantics = [#tpu.dimension_semantics<parallel>, #tpu.dimension_semantics<arbitrary>], iteration_bounds = array<i64: 2, 1>, scalar_prefetch = 0 : i64, scratch_operands = 2 : i64, tpu.core_type = #tpu.core_type<tc>, window_params = [{transform_indices = @transform_0, window_bounds = array<i64: 1, 8, 32>}, {pipeline_mode = #tpu.pipeline_mode<synchronous>, transform_indices = @transform_1, window_bounds = array<i64: 32, 32>}, {pipeline_mode = #tpu.pipeline_mode<synchronous>, transform_indices = @transform_2, window_bounds = array<i64: 1, 32>}, {pipeline_mode = #tpu.pipeline_mode<synchronous>, transform_indices = @transform_3, window_bounds = array<i64: 32, 32>}, {pipeline_mode = #tpu.pipeline_mode<synchronous>, transform_indices = @transform_4, window_bounds = array<i64: 1, 32>}, {pipeline_mode = #tpu.pipeline_mode<synchronous>, transform_indices = @transform_5, window_bounds = array<i64: 32, 32>}, {pipeline_mode = #tpu.pipeline_mode<synchronous>, transform_indices = @transform_6, window_bounds = array<i64: 1, 32>}, {pipeline_mode = #tpu.pipeline_mode<synchronous>, transform_indices = @transform_7, window_bounds = array<i64: 4, 8, 32>}, {pipeline_mode = #tpu.pipeline_mode<synchronous>, transform_indices = @transform_8, window_bounds = array<i64: 1, 32>}, {pipeline_mode = #tpu.pipeline_mode<synchronous>, transform_indices = @transform_9, window_bounds = array<i64: 1, 32>}, {pipeline_mode = #tpu.pipeline_mode<synchronous>, transform_indices = @transform_10, window_bounds = array<i64: 1, 32>}, {pipeline_mode = #tpu.pipeline_mode<synchronous>, transform_indices = @transform_11, window_bounds = array<i64: 32, 32>}, {pipeline_mode = #tpu.pipeline_mode<synchronous>, transform_indices = @transform_12, window_bounds = array<i64: 1, 32>}, {pipeline_mode = #tpu.pipeline_mode<synchronous>, transform_indices = @transform_13, window_bounds = array<i64: 32, 32>}, {pipeline_mode = #tpu.pipeline_mode<synchronous>, transform_indices = @transform_14, window_bounds = array<i64: 1, 32>}, {pipeline_mode = #tpu.pipeline_mode<synchronous>, transform_indices = @transform_15, window_bounds = array<i64: 1, 32>}, {pipeline_mode = #tpu.pipeline_mode<synchronous>, transform_indices = @transform_16, window_bounds = array<i64: 1, 32>}, {transform_indices = @transform_17, window_bounds = array<i64: 1, 8, 32>}]} {
    %c0_i32 = arith.constant 0 : i32
    %0 = arith.cmpi eq, %arg1, %c0_i32 : i32
    %1 = arith.extui %0 : i1 to i32
    %c0_i32_0 = arith.constant 0 : i32
    %2 = arith.cmpi ne, %1, %c0_i32_0 : i32
    scf.if %2 {
      %c0_83 = arith.constant 0 : index
      %c0_84 = arith.constant 0 : index
      %c0_85 = arith.constant 0 : index
      %166 = vector.load %arg2[%c0_83, %c0_84, %c0_85] : memref<1x8x32xf32, #tpu.memory_space<vmem>>, vector<1x8x32xf32>
      %167 = vector.shape_cast %166 : vector<1x8x32xf32> to vector<8x32xf32>
      %168 = arith.truncf %167 : vector<8x32xf32> to vector<8x32xbf16>
      %c0_86 = arith.constant 0 : index
      %c0_87 = arith.constant 0 : index
      %169 = vector.load %arg5[%c0_86, %c0_87] : memref<32x32xbf16, #tpu.memory_space<vmem>>, vector<32x32xbf16>
      %cst_88 = arith.constant dense<0.000000e+00> : vector<8x32xf32>
      %170 = tpu.matmul %168, %169, %cst_88 {dimension_numbers = #tpu.dot_dimension_numbers<[1], [0], [0], [1], [0, 0, 1, 1], [], []>} : vector<8x32xbf16>, vector<32x32xbf16>, vector<8x32xf32> -> vector<8x32xf32>
      %c0_89 = arith.constant 0 : index
      %c0_90 = arith.constant 0 : index
      %171 = vector.load %arg6[%c0_89, %c0_90] : memref<1x32xf32, #tpu.memory_space<vmem>>, vector<1x32xf32>
      %172 = vector.broadcast %171 : vector<1x32xf32> to vector<8x32xf32>
      %173 = arith.addf %170, %172 : vector<8x32xf32>
      %174 = arith.truncf %173 : vector<8x32xf32> to vector<8x32xbf16>
      %c0_91 = arith.constant 0 : index
      %c0_92 = arith.constant 0 : index
      %175 = vector.load %arg20[%c0_91, %c0_92] : memref<8x32xbf16, #tpu.memory_space<vmem>>, vector<8x32xbf16>
      tpu.vector_store %arg20[%c0_91, %c0_92], %174 {strides = array<i32>} : memref<8x32xbf16, #tpu.memory_space<vmem>>, vector<8x32xbf16>,
      %c0_93 = arith.constant 0 : index
      %c0_94 = arith.constant 0 : index
      %176 = vector.load %arg7[%c0_93, %c0_94] : memref<32x32xbf16, #tpu.memory_space<vmem>>, vector<32x32xbf16>
      %cst_95 = arith.constant dense<0.000000e+00> : vector<8x32xf32>
      %177 = tpu.matmul %168, %176, %cst_95 {dimension_numbers = #tpu.dot_dimension_numbers<[1], [0], [0], [1], [0, 0, 1, 1], [], []>} : vector<8x32xbf16>, vector<32x32xbf16>, vector<8x32xf32> -> vector<8x32xf32>
      %c0_96 = arith.constant 0 : index
      %c0_97 = arith.constant 0 : index
      %178 = vector.load %arg8[%c0_96, %c0_97] : memref<1x32xf32, #tpu.memory_space<vmem>>, vector<1x32xf32>
      %179 = vector.broadcast %178 : vector<1x32xf32> to vector<8x32xf32>
      %180 = arith.addf %177, %179 : vector<8x32xf32>
      %181 = arith.truncf %180 : vector<8x32xf32> to vector<8x32xbf16>
      %c0_98 = arith.constant 0 : index
      %c0_99 = arith.constant 0 : index
      %182 = vector.load %arg21[%c0_98, %c0_99] : memref<8x32xbf16, #tpu.memory_space<vmem>>, vector<8x32xbf16>
      tpu.vector_store %arg21[%c0_98, %c0_99], %181 {strides = array<i32>} : memref<8x32xbf16, #tpu.memory_space<vmem>>, vector<8x32xbf16>,
    } else {
    }
    %c8_i32 = arith.constant 8 : i32
    %3 = arith.muli %arg1, %c8_i32 : i32
    %4 = tpu.assume_multiple %3, 8 : i32
    %c0 = arith.constant 0 : index
    %5 = arith.index_cast %4 : i32 to index
    %c0_1 = arith.constant 0 : index
    %6 = vector.load %arg2[%c0, %5, %c0_1] : memref<1x8x32xf32, #tpu.memory_space<vmem>>, vector<1x8x32xf32>
    %7 = vector.shape_cast %6 : vector<1x8x32xf32> to vector<8x32xf32>
    %8 = arith.truncf %7 : vector<8x32xf32> to vector<8x32xbf16>
    %c0_2 = arith.constant 0 : index
    %c0_3 = arith.constant 0 : index
    %9 = vector.load %arg3[%c0_2, %c0_3] : memref<32x32xbf16, #tpu.memory_space<vmem>>, vector<32x32xbf16>
    %cst = arith.constant dense<0.000000e+00> : vector<8x32xf32>
    %10 = tpu.matmul %8, %9, %cst {dimension_numbers = #tpu.dot_dimension_numbers<[1], [0], [0], [1], [0, 0, 1, 1], [], []>} : vector<8x32xbf16>, vector<32x32xbf16>, vector<8x32xf32> -> vector<8x32xf32>
    %c0_4 = arith.constant 0 : index
    %c0_5 = arith.constant 0 : index
    %11 = vector.load %arg4[%c0_4, %c0_5] : memref<1x32xf32, #tpu.memory_space<vmem>>, vector<1x32xf32>
    %12 = vector.broadcast %11 : vector<1x32xf32> to vector<8x32xf32>
    %13 = arith.addf %10, %12 : vector<8x32xf32>
    %14 = arith.truncf %13 : vector<8x32xf32> to vector<8x32xbf16>
    %cst_6 = arith.constant 0.000000e+00 : f32
    %15 = vector.broadcast %cst_6 : f32 to vector<8x32xf32>
    %16 = vector.extract_strided_slice %14 {offsets = [0, 0], sizes = [8, 8], strides = [1, 1]} : vector<8x32xbf16> to vector<8x8xbf16>
    %c0_7 = arith.constant 0 : index
    %c0_8 = arith.constant 0 : index
    %17 = vector.load %arg20[%c0_7, %c0_8] : memref<8x32xbf16, #tpu.memory_space<vmem>>, vector<8x8xbf16>
    %c0_9 = arith.constant 0 : index
    %c0_10 = arith.constant 0 : index
    %18 = vector.load %arg21[%c0_9, %c0_10] : memref<8x32xbf16, #tpu.memory_space<vmem>>, vector<8x8xbf16>
    %cst_11 = arith.constant dense<0.000000e+00> : vector<8x8xf32>
    %19 = tpu.matmul %16, %17, %cst_11 {dimension_numbers = #tpu.dot_dimension_numbers<[1], [1], [0], [0], [0, 0, 1, 0], [], []>} : vector<8x8xbf16>, vector<8x8xbf16>, vector<8x8xf32> -> vector<8x8xf32>
    %cst_12 = arith.constant dense<0xFF800000> : vector<8xf32>
    %20 = vector.multi_reduction <maximumf>, %19, %cst_12 [1] : vector<8x8xf32> to vector<8xf32>
    %21 = vector.shape_cast %20 : vector<8xf32> to vector<8x1xf32>
    %22 = vector.broadcast %21 : vector<8x1xf32> to vector<8x8xf32>
    %23 = arith.subf %19, %22 : vector<8x8xf32>
    %24 = math.exp %23 : vector<8x8xf32>
    %cst_13 = arith.constant dense<0.000000e+00> : vector<8xf32>
    %25 = vector.multi_reduction <add>, %24, %cst_13 [1] : vector<8x8xf32> to vector<8xf32>
    %26 = vector.shape_cast %25 : vector<8xf32> to vector<8x1xf32>
    %27 = tpu.reciprocal %26 {approx = true} : vector<8x1xf32> -> vector<8x1xf32>
    %28 = vector.broadcast %27 : vector<8x1xf32> to vector<8x8xf32>
    %29 = arith.mulf %24, %28 : vector<8x8xf32>
    %30 = arith.truncf %29 : vector<8x8xf32> to vector<8x8xbf16>
    %cst_14 = arith.constant dense<0.000000e+00> : vector<8x8xf32>
    %31 = tpu.matmul %30, %18, %cst_14 {dimension_numbers = #tpu.dot_dimension_numbers<[1], [0], [0], [1], [0, 0, 1, 1], [], []>} : vector<8x8xbf16>, vector<8x8xbf16>, vector<8x8xf32> -> vector<8x8xf32>
    %32 = arith.truncf %31 : vector<8x8xf32> to vector<8x8xbf16>
    %c0_15 = arith.constant 0 : index
    %c0_16 = arith.constant 0 : index
    %c0_17 = arith.constant 0 : index
    %33 = vector.load %arg9[%c0_15, %c0_16, %c0_17] : memref<4x8x32xbf16, #tpu.memory_space<vmem>>, vector<1x8x32xbf16>
    %34 = vector.shape_cast %33 : vector<1x8x32xbf16> to vector<8x32xbf16>
    %cst_18 = arith.constant dense<0.000000e+00> : vector<8x32xf32>
    %35 = tpu.matmul %32, %34, %cst_18 {dimension_numbers = #tpu.dot_dimension_numbers<[1], [0], [0], [1], [0, 0, 1, 1], [], []>} : vector<8x8xbf16>, vector<8x32xbf16>, vector<8x32xf32> -> vector<8x32xf32>
    %36 = arith.addf %15, %35 : vector<8x32xf32>
    %37 = vector.extract_strided_slice %14 {offsets = [0, 8], sizes = [8, 8], strides = [1, 1]} : vector<8x32xbf16> to vector<8x8xbf16>
    %c0_19 = arith.constant 0 : index
    %c8 = arith.constant 8 : index
    %38 = vector.load %arg20[%c0_19, %c8] : memref<8x32xbf16, #tpu.memory_space<vmem>>, vector<8x8xbf16>
    %c0_20 = arith.constant 0 : index
    %c8_21 = arith.constant 8 : index
    %39 = vector.load %arg21[%c0_20, %c8_21] : memref<8x32xbf16, #tpu.memory_space<vmem>>, vector<8x8xbf16>
    %cst_22 = arith.constant dense<0.000000e+00> : vector<8x8xf32>
    %40 = tpu.matmul %37, %38, %cst_22 {dimension_numbers = #tpu.dot_dimension_numbers<[1], [1], [0], [0], [0, 0, 1, 0], [], []>} : vector<8x8xbf16>, vector<8x8xbf16>, vector<8x8xf32> -> vector<8x8xf32>
    %cst_23 = arith.constant dense<0xFF800000> : vector<8xf32>
    %41 = vector.multi_reduction <maximumf>, %40, %cst_23 [1] : vector<8x8xf32> to vector<8xf32>
    %42 = vector.shape_cast %41 : vector<8xf32> to vector<8x1xf32>
    %43 = vector.broadcast %42 : vector<8x1xf32> to vector<8x8xf32>
    %44 = arith.subf %40, %43 : vector<8x8xf32>
    %45 = math.exp %44 : vector<8x8xf32>
    %cst_24 = arith.constant dense<0.000000e+00> : vector<8xf32>
    %46 = vector.multi_reduction <add>, %45, %cst_24 [1] : vector<8x8xf32> to vector<8xf32>
    %47 = vector.shape_cast %46 : vector<8xf32> to vector<8x1xf32>
    %48 = tpu.reciprocal %47 {approx = true} : vector<8x1xf32> -> vector<8x1xf32>
    %49 = vector.broadcast %48 : vector<8x1xf32> to vector<8x8xf32>
    %50 = arith.mulf %45, %49 : vector<8x8xf32>
    %51 = arith.truncf %50 : vector<8x8xf32> to vector<8x8xbf16>
    %cst_25 = arith.constant dense<0.000000e+00> : vector<8x8xf32>
    %52 = tpu.matmul %51, %39, %cst_25 {dimension_numbers = #tpu.dot_dimension_numbers<[1], [0], [0], [1], [0, 0, 1, 1], [], []>} : vector<8x8xbf16>, vector<8x8xbf16>, vector<8x8xf32> -> vector<8x8xf32>
    %53 = arith.truncf %52 : vector<8x8xf32> to vector<8x8xbf16>
    %c1 = arith.constant 1 : index
    %c0_26 = arith.constant 0 : index
    %c0_27 = arith.constant 0 : index
    %54 = vector.load %arg9[%c1, %c0_26, %c0_27] : memref<4x8x32xbf16, #tpu.memory_space<vmem>>, vector<1x8x32xbf16>
    %55 = vector.shape_cast %54 : vector<1x8x32xbf16> to vector<8x32xbf16>
    %cst_28 = arith.constant dense<0.000000e+00> : vector<8x32xf32>
    %56 = tpu.matmul %53, %55, %cst_28 {dimension_numbers = #tpu.dot_dimension_numbers<[1], [0], [0], [1], [0, 0, 1, 1], [], []>} : vector<8x8xbf16>, vector<8x32xbf16>, vector<8x32xf32> -> vector<8x32xf32>
    %57 = arith.addf %36, %56 : vector<8x32xf32>
    %58 = vector.extract_strided_slice %14 {offsets = [0, 16], sizes = [8, 8], strides = [1, 1]} : vector<8x32xbf16> to vector<8x8xbf16>
    %c0_29 = arith.constant 0 : index
    %c16 = arith.constant 16 : index
    %59 = vector.load %arg20[%c0_29, %c16] : memref<8x32xbf16, #tpu.memory_space<vmem>>, vector<8x8xbf16>
    %c0_30 = arith.constant 0 : index
    %c16_31 = arith.constant 16 : index
    %60 = vector.load %arg21[%c0_30, %c16_31] : memref<8x32xbf16, #tpu.memory_space<vmem>>, vector<8x8xbf16>
    %cst_32 = arith.constant dense<0.000000e+00> : vector<8x8xf32>
    %61 = tpu.matmul %58, %59, %cst_32 {dimension_numbers = #tpu.dot_dimension_numbers<[1], [1], [0], [0], [0, 0, 1, 0], [], []>} : vector<8x8xbf16>, vector<8x8xbf16>, vector<8x8xf32> -> vector<8x8xf32>
    %cst_33 = arith.constant dense<0xFF800000> : vector<8xf32>
    %62 = vector.multi_reduction <maximumf>, %61, %cst_33 [1] : vector<8x8xf32> to vector<8xf32>
    %63 = vector.shape_cast %62 : vector<8xf32> to vector<8x1xf32>
    %64 = vector.broadcast %63 : vector<8x1xf32> to vector<8x8xf32>
    %65 = arith.subf %61, %64 : vector<8x8xf32>
    %66 = math.exp %65 : vector<8x8xf32>
    %cst_34 = arith.constant dense<0.000000e+00> : vector<8xf32>
    %67 = vector.multi_reduction <add>, %66, %cst_34 [1] : vector<8x8xf32> to vector<8xf32>
    %68 = vector.shape_cast %67 : vector<8xf32> to vector<8x1xf32>
    %69 = tpu.reciprocal %68 {approx = true} : vector<8x1xf32> -> vector<8x1xf32>
    %70 = vector.broadcast %69 : vector<8x1xf32> to vector<8x8xf32>
    %71 = arith.mulf %66, %70 : vector<8x8xf32>
    %72 = arith.truncf %71 : vector<8x8xf32> to vector<8x8xbf16>
    %cst_35 = arith.constant dense<0.000000e+00> : vector<8x8xf32>
    %73 = tpu.matmul %72, %60, %cst_35 {dimension_numbers = #tpu.dot_dimension_numbers<[1], [0], [0], [1], [0, 0, 1, 1], [], []>} : vector<8x8xbf16>, vector<8x8xbf16>, vector<8x8xf32> -> vector<8x8xf32>
    %74 = arith.truncf %73 : vector<8x8xf32> to vector<8x8xbf16>
    %c2 = arith.constant 2 : index
    %c0_36 = arith.constant 0 : index
    %c0_37 = arith.constant 0 : index
    %75 = vector.load %arg9[%c2, %c0_36, %c0_37] : memref<4x8x32xbf16, #tpu.memory_space<vmem>>, vector<1x8x32xbf16>
    %76 = vector.shape_cast %75 : vector<1x8x32xbf16> to vector<8x32xbf16>
    %cst_38 = arith.constant dense<0.000000e+00> : vector<8x32xf32>
    %77 = tpu.matmul %74, %76, %cst_38 {dimension_numbers = #tpu.dot_dimension_numbers<[1], [0], [0], [1], [0, 0, 1, 1], [], []>} : vector<8x8xbf16>, vector<8x32xbf16>, vector<8x32xf32> -> vector<8x32xf32>
    %78 = arith.addf %57, %77 : vector<8x32xf32>
    %79 = vector.extract_strided_slice %14 {offsets = [0, 24], sizes = [8, 8], strides = [1, 1]} : vector<8x32xbf16> to vector<8x8xbf16>
    %c0_39 = arith.constant 0 : index
    %c24 = arith.constant 24 : index
    %80 = vector.load %arg20[%c0_39, %c24] : memref<8x32xbf16, #tpu.memory_space<vmem>>, vector<8x8xbf16>
    %c0_40 = arith.constant 0 : index
    %c24_41 = arith.constant 24 : index
    %81 = vector.load %arg21[%c0_40, %c24_41] : memref<8x32xbf16, #tpu.memory_space<vmem>>, vector<8x8xbf16>
    %cst_42 = arith.constant dense<0.000000e+00> : vector<8x8xf32>
    %82 = tpu.matmul %79, %80, %cst_42 {dimension_numbers = #tpu.dot_dimension_numbers<[1], [1], [0], [0], [0, 0, 1, 0], [], []>} : vector<8x8xbf16>, vector<8x8xbf16>, vector<8x8xf32> -> vector<8x8xf32>
    %cst_43 = arith.constant dense<0xFF800000> : vector<8xf32>
    %83 = vector.multi_reduction <maximumf>, %82, %cst_43 [1] : vector<8x8xf32> to vector<8xf32>
    %84 = vector.shape_cast %83 : vector<8xf32> to vector<8x1xf32>
    %85 = vector.broadcast %84 : vector<8x1xf32> to vector<8x8xf32>
    %86 = arith.subf %82, %85 : vector<8x8xf32>
    %87 = math.exp %86 : vector<8x8xf32>
    %cst_44 = arith.constant dense<0.000000e+00> : vector<8xf32>
    %88 = vector.multi_reduction <add>, %87, %cst_44 [1] : vector<8x8xf32> to vector<8xf32>
    %89 = vector.shape_cast %88 : vector<8xf32> to vector<8x1xf32>
    %90 = tpu.reciprocal %89 {approx = true} : vector<8x1xf32> -> vector<8x1xf32>
    %91 = vector.broadcast %90 : vector<8x1xf32> to vector<8x8xf32>
    %92 = arith.mulf %87, %91 : vector<8x8xf32>
    %93 = arith.truncf %92 : vector<8x8xf32> to vector<8x8xbf16>
    %cst_45 = arith.constant dense<0.000000e+00> : vector<8x8xf32>
    %94 = tpu.matmul %93, %81, %cst_45 {dimension_numbers = #tpu.dot_dimension_numbers<[1], [0], [0], [1], [0, 0, 1, 1], [], []>} : vector<8x8xbf16>, vector<8x8xbf16>, vector<8x8xf32> -> vector<8x8xf32>
    %95 = arith.truncf %94 : vector<8x8xf32> to vector<8x8xbf16>
    %c3 = arith.constant 3 : index
    %c0_46 = arith.constant 0 : index
    %c0_47 = arith.constant 0 : index
    %96 = vector.load %arg9[%c3, %c0_46, %c0_47] : memref<4x8x32xbf16, #tpu.memory_space<vmem>>, vector<1x8x32xbf16>
    %97 = vector.shape_cast %96 : vector<1x8x32xbf16> to vector<8x32xbf16>
    %cst_48 = arith.constant dense<0.000000e+00> : vector<8x32xf32>
    %98 = tpu.matmul %95, %97, %cst_48 {dimension_numbers = #tpu.dot_dimension_numbers<[1], [0], [0], [1], [0, 0, 1, 1], [], []>} : vector<8x8xbf16>, vector<8x32xbf16>, vector<8x32xf32> -> vector<8x32xf32>
    %99 = arith.addf %78, %98 : vector<8x32xf32>
    %c0_49 = arith.constant 0 : index
    %c0_50 = arith.constant 0 : index
    %100 = vector.load %arg10[%c0_49, %c0_50] : memref<1x32xf32, #tpu.memory_space<vmem>>, vector<1x32xf32>
    %101 = vector.broadcast %100 : vector<1x32xf32> to vector<8x32xf32>
    %102 = arith.addf %99, %101 : vector<8x32xf32>
    %103 = arith.addf %7, %102 : vector<8x32xf32>
    %c0_51 = arith.constant 0 : index
    %c0_52 = arith.constant 0 : index
    %104 = vector.load %arg11[%c0_51, %c0_52] : memref<1x32xf32, #tpu.memory_space<vmem>>, vector<1x32xf32>
    %c0_53 = arith.constant 0 : index
    %c0_54 = arith.constant 0 : index
    %105 = vector.load %arg12[%c0_53, %c0_54] : memref<1x32xf32, #tpu.memory_space<vmem>>, vector<1x32xf32>
    %cst_55 = arith.constant dense<0.000000e+00> : vector<8xf32>
    %106 = vector.multi_reduction <add>, %103, %cst_55 [1] : vector<8x32xf32> to vector<8xf32>
    %107 = vector.shape_cast %106 : vector<8xf32> to vector<8x1xf32>
    %cst_56 = arith.constant 3.200000e+01 : f32
    %108 = vector.broadcast %cst_56 : f32 to vector<8x1xf32>
    %109 = arith.divf %107, %108 : vector<8x1xf32>
    %110 = vector.broadcast %109 : vector<8x1xf32> to vector<8x32xf32>
    %111 = arith.subf %103, %110 : vector<8x32xf32>
    %112 = arith.mulf %111, %111 : vector<8x32xf32>
    %cst_57 = arith.constant dense<0.000000e+00> : vector<8xf32>
    %113 = vector.multi_reduction <add>, %112, %cst_57 [1] : vector<8x32xf32> to vector<8xf32>
    %114 = vector.shape_cast %113 : vector<8xf32> to vector<8x1xf32>
    %cst_58 = arith.constant 3.200000e+01 : f32
    %115 = vector.broadcast %cst_58 : f32 to vector<8x1xf32>
    %116 = arith.divf %114, %115 : vector<8x1xf32>
    %cst_59 = arith.constant 9.99999974E-6 : f32
    %117 = vector.broadcast %cst_59 : f32 to vector<8x1xf32>
    %118 = arith.addf %116, %117 : vector<8x1xf32>
    %119 = math.rsqrt %118 : vector<8x1xf32>
    %120 = vector.broadcast %119 : vector<8x1xf32> to vector<8x32xf32>
    %121 = arith.mulf %111, %120 : vector<8x32xf32>
    %122 = vector.broadcast %104 : vector<1x32xf32> to vector<8x32xf32>
    %123 = arith.mulf %121, %122 : vector<8x32xf32>
    %124 = vector.broadcast %105 : vector<1x32xf32> to vector<8x32xf32>
    %125 = arith.addf %123, %124 : vector<8x32xf32>
    %126 = arith.truncf %125 : vector<8x32xf32> to vector<8x32xbf16>
    %c0_60 = arith.constant 0 : index
    %c0_61 = arith.constant 0 : index
    %127 = vector.load %arg13[%c0_60, %c0_61] : memref<32x32xbf16, #tpu.memory_space<vmem>>, vector<32x32xbf16>
    %cst_62 = arith.constant dense<0.000000e+00> : vector<8x32xf32>
    %128 = tpu.matmul %126, %127, %cst_62 {dimension_numbers = #tpu.dot_dimension_numbers<[1], [0], [0], [1], [0, 0, 1, 1], [], []>} : vector<8x32xbf16>, vector<32x32xbf16>, vector<8x32xf32> -> vector<8x32xf32>
    %c0_63 = arith.constant 0 : index
    %c0_64 = arith.constant 0 : index
    %129 = vector.load %arg14[%c0_63, %c0_64] : memref<1x32xf32, #tpu.memory_space<vmem>>, vector<1x32xf32>
    %130 = vector.broadcast %129 : vector<1x32xf32> to vector<8x32xf32>
    %131 = arith.addf %128, %130 : vector<8x32xf32>
    %cst_65 = arith.constant 0.000000e+00 : f32
    %132 = vector.broadcast %cst_65 : f32 to vector<8x32xf32>
    %133 = arith.maximumf %131, %132 : vector<8x32xf32>
    %134 = arith.truncf %133 : vector<8x32xf32> to vector<8x32xbf16>
    %c0_66 = arith.constant 0 : index
    %c0_67 = arith.constant 0 : index
    %135 = vector.load %arg15[%c0_66, %c0_67] : memref<32x32xbf16, #tpu.memory_space<vmem>>, vector<32x32xbf16>
    %cst_68 = arith.constant dense<0.000000e+00> : vector<8x32xf32>
    %136 = tpu.matmul %134, %135, %cst_68 {dimension_numbers = #tpu.dot_dimension_numbers<[1], [0], [0], [1], [0, 0, 1, 1], [], []>} : vector<8x32xbf16>, vector<32x32xbf16>, vector<8x32xf32> -> vector<8x32xf32>
    %c0_69 = arith.constant 0 : index
    %c0_70 = arith.constant 0 : index
    %137 = vector.load %arg16[%c0_69, %c0_70] : memref<1x32xf32, #tpu.memory_space<vmem>>, vector<1x32xf32>
    %138 = vector.broadcast %137 : vector<1x32xf32> to vector<8x32xf32>
    %139 = arith.addf %136, %138 : vector<8x32xf32>
    %140 = arith.addf %125, %139 : vector<8x32xf32>
    %c0_71 = arith.constant 0 : index
    %c0_72 = arith.constant 0 : index
    %141 = vector.load %arg17[%c0_71, %c0_72] : memref<1x32xf32, #tpu.memory_space<vmem>>, vector<1x32xf32>
    %c0_73 = arith.constant 0 : index
    %c0_74 = arith.constant 0 : index
    %142 = vector.load %arg18[%c0_73, %c0_74] : memref<1x32xf32, #tpu.memory_space<vmem>>, vector<1x32xf32>
    %cst_75 = arith.constant dense<0.000000e+00> : vector<8xf32>
    %143 = vector.multi_reduction <add>, %140, %cst_75 [1] : vector<8x32xf32> to vector<8xf32>
    %144 = vector.shape_cast %143 : vector<8xf32> to vector<8x1xf32>
    %cst_76 = arith.constant 3.200000e+01 : f32
    %145 = vector.broadcast %cst_76 : f32 to vector<8x1xf32>
    %146 = arith.divf %144, %145 : vector<8x1xf32>
    %147 = vector.broadcast %146 : vector<8x1xf32> to vector<8x32xf32>
    %148 = arith.subf %140, %147 : vector<8x32xf32>
    %149 = arith.mulf %148, %148 : vector<8x32xf32>
    %cst_77 = arith.constant dense<0.000000e+00> : vector<8xf32>
    %150 = vector.multi_reduction <add>, %149, %cst_77 [1] : vector<8x32xf32> to vector<8xf32>
    %151 = vector.shape_cast %150 : vector<8xf32> to vector<8x1xf32>
    %cst_78 = arith.constant 3.200000e+01 : f32
    %152 = vector.broadcast %cst_78 : f32 to vector<8x1xf32>
    %153 = arith.divf %151, %152 : vector<8x1xf32>
    %cst_79 = arith.constant 9.99999974E-6 : f32
    %154 = vector.broadcast %cst_79 : f32 to vector<8x1xf32>
    %155 = arith.addf %153, %154 : vector<8x1xf32>
    %156 = math.rsqrt %155 : vector<8x1xf32>
    %157 = vector.broadcast %156 : vector<8x1xf32> to vector<8x32xf32>
    %158 = arith.mulf %148, %157 : vector<8x32xf32>
    %159 = vector.broadcast %141 : vector<1x32xf32> to vector<8x32xf32>
    %160 = arith.mulf %158, %159 : vector<8x32xf32>
    %161 = vector.broadcast %142 : vector<1x32xf32> to vector<8x32xf32>
    %162 = arith.addf %160, %161 : vector<8x32xf32>
    %c0_80 = arith.constant 0 : index
    %c0_81 = arith.constant 0 : index
    %c0_82 = arith.constant 0 : index
    %163 = vector.load %arg19[%c0_80, %c0_81, %c0_82] : memref<1x8x32xf32, #tpu.memory_space<vmem>>, vector<1x8x32xf32>
    %164 = vector.shape_cast %163 : vector<1x8x32xf32> to vector<8x32xf32>
    %165 = vector.shape_cast %162 : vector<8x32xf32> to vector<1x8x32xf32>
    tpu.vector_store %arg19[%c0_80, %c0_81, %c0_82], %165 {strides = array<i32>} : memref<1x8x32xf32, #tpu.memory_space<vmem>>, vector<1x8x32xf32>,
    return
  }
  func.func @transform_0(%arg0: i32, %arg1: i32) -> (i32, i32, i32) {
    %c0_i32 = arith.constant 0 : i32
    %c0_i32_0 = arith.constant 0 : i32
    %c0_i32_1 = arith.constant 0 : i32
    return %arg0, %c0_i32, %c0_i32_0 : i32, i32, i32
  }
  func.func @transform_1(%arg0: i32, %arg1: i32) -> (i32, i32) {
    %c0_i32 = arith.constant 0 : i32
    %c0_i32_0 = arith.constant 0 : i32
    %c0_i32_1 = arith.constant 0 : i32
    return %c0_i32, %c0_i32_0 : i32, i32
  }
  func.func @transform_2(%arg0: i32, %arg1: i32) -> (i32, i32) {
    %c0_i32 = arith.constant 0 : i32
    %c0_i32_0 = arith.constant 0 : i32
    %c0_i32_1 = arith.constant 0 : i32
    return %c0_i32, %c0_i32_0 : i32, i32
  }
  func.func @transform_3(%arg0: i32, %arg1: i32) -> (i32, i32) {
    %c0_i32 = arith.constant 0 : i32
    %c0_i32_0 = arith.constant 0 : i32
    %c0_i32_1 = arith.constant 0 : i32
    return %c0_i32, %c0_i32_0 : i32, i32
  }
  func.func @transform_4(%arg0: i32, %arg1: i32) -> (i32, i32) {
    %c0_i32 = arith.constant 0 : i32
    %c0_i32_0 = arith.constant 0 : i32
    %c0_i32_1 = arith.constant 0 : i32
    return %c0_i32, %c0_i32_0 : i32, i32
  }
  func.func @transform_5(%arg0: i32, %arg1: i32) -> (i32, i32) {
    %c0_i32 = arith.constant 0 : i32
    %c0_i32_0 = arith.constant 0 : i32
    %c0_i32_1 = arith.constant 0 : i32
    return %c0_i32, %c0_i32_0 : i32, i32
  }
  func.func @transform_6(%arg0: i32, %arg1: i32) -> (i32, i32) {
    %c0_i32 = arith.constant 0 : i32
    %c0_i32_0 = arith.constant 0 : i32
    %c0_i32_1 = arith.constant 0 : i32
    return %c0_i32, %c0_i32_0 : i32, i32
  }
  func.func @transform_7(%arg0: i32, %arg1: i32) -> (i32, i32, i32) {
    %c0_i32 = arith.constant 0 : i32
    %c0_i32_0 = arith.constant 0 : i32
    %c0_i32_1 = arith.constant 0 : i32
    %c0_i32_2 = arith.constant 0 : i32
    return %c0_i32, %c0_i32_0, %c0_i32_1 : i32, i32, i32
  }
  func.func @transform_8(%arg0: i32, %arg1: i32) -> (i32, i32) {
    %c0_i32 = arith.constant 0 : i32
    %c0_i32_0 = arith.constant 0 : i32
    %c0_i32_1 = arith.constant 0 : i32
    return %c0_i32, %c0_i32_0 : i32, i32
  }
  func.func @transform_9(%arg0: i32, %arg1: i32) -> (i32, i32) {
    %c0_i32 = arith.constant 0 : i32
    %c0_i32_0 = arith.constant 0 : i32
    %c0_i32_1 = arith.constant 0 : i32
    return %c0_i32, %c0_i32_0 : i32, i32
  }
  func.func @transform_10(%arg0: i32, %arg1: i32) -> (i32, i32) {
    %c0_i32 = arith.constant 0 : i32
    %c0_i32_0 = arith.constant 0 : i32
    %c0_i32_1 = arith.constant 0 : i32
    return %c0_i32, %c0_i32_0 : i32, i32
  }
  func.func @transform_11(%arg0: i32, %arg1: i32) -> (i32, i32) {
    %c0_i32 = arith.constant 0 : i32
    %c0_i32_0 = arith.constant 0 : i32
    %c0_i32_1 = arith.constant 0 : i32
    return %c0_i32, %c0_i32_0 : i32, i32
  }
  func.func @transform_12(%arg0: i32, %arg1: i32) -> (i32, i32) {
    %c0_i32 = arith.constant 0 : i32
    %c0_i32_0 = arith.constant 0 : i32
    %c0_i32_1 = arith.constant 0 : i32
    return %c0_i32, %c0_i32_0 : i32, i32
  }
  func.func @transform_13(%arg0: i32, %arg1: i32) -> (i32, i32) {
    %c0_i32 = arith.constant 0 : i32
    %c0_i32_0 = arith.constant 0 : i32
    %c0_i32_1 = arith.constant 0 : i32
    return %c0_i32, %c0_i32_0 : i32, i32
  }
  func.func @transform_14(%arg0: i32, %arg1: i32) -> (i32, i32) {
    %c0_i32 = arith.constant 0 : i32
    %c0_i32_0 = arith.constant 0 : i32
    %c0_i32_1 = arith.constant 0 : i32
    return %c0_i32, %c0_i32_0 : i32, i32
  }
  func.func @transform_15(%arg0: i32, %arg1: i32) -> (i32, i32) {
    %c0_i32 = arith.constant 0 : i32
    %c0_i32_0 = arith.constant 0 : i32
    %c0_i32_1 = arith.constant 0 : i32
    return %c0_i32, %c0_i32_0 : i32, i32
  }
  func.func @transform_16(%arg0: i32, %arg1: i32) -> (i32, i32) {
    %c0_i32 = arith.constant 0 : i32
    %c0_i32_0 = arith.constant 0 : i32
    %c0_i32_1 = arith.constant 0 : i32
    return %c0_i32, %c0_i32_0 : i32, i32
  }
  func.func @transform_17(%arg0: i32, %arg1: i32) -> (i32, i32, i32) {
    %c0_i32 = arith.constant 0 : i32
    %c0_i32_0 = arith.constant 0 : i32
    return %arg0, %arg1, %c0_i32 : i32, i32, i32
  }
}

module attributes {stable_mosaic.version = 11 : i64} {
  func.func @encoder_layer_kernel(%arg0: i32, %arg1: i32, %arg2: memref<1x8x32xf32, #tpu.memory_space<vmem>>, %arg3: memref<32x32xbf16, #tpu.memory_space<vmem>>, %arg4: memref<1x32xf32, #tpu.memory_space<vmem>>, %arg5: memref<32x32xbf16, #tpu.memory_space<vmem>>, %arg6: memref<1x32xf32, #tpu.memory_space<vmem>>, %arg7: memref<32x32xbf16, #tpu.memory_space<vmem>>, %arg8: memref<1x32xf32, #tpu.memory_space<vmem>>, %arg9: memref<4x8x32xbf16, #tpu.memory_space<vmem>>, %arg10: memref<1x32xf32, #tpu.memory_space<vmem>>, %arg11: memref<1x32xf32, #tpu.memory_space<vmem>>, %arg12: memref<1x32xf32, #tpu.memory_space<vmem>>, %arg13: memref<32x32xbf16, #tpu.memory_space<vmem>>, %arg14: memref<1x32xf32, #tpu.memory_space<vmem>>, %arg15: memref<32x32xbf16, #tpu.memory_space<vmem>>, %arg16: memref<1x32xf32, #tpu.memory_space<vmem>>, %arg17: memref<1x32xf32, #tpu.memory_space<vmem>>, %arg18: memref<1x32xf32, #tpu.memory_space<vmem>>, %arg19: memref<1x8x32xf32, #tpu.memory_space<vmem>>, %arg20: memref<8x32xbf16, #tpu.memory_space<vmem>>, %arg21: memref<8x32xbf16, #tpu.memory_space<vmem>>) attributes {dimension_semantics = [#tpu.dimension_semantics<parallel>, #tpu.dimension_semantics<arbitrary>], iteration_bounds = array<i64: 2, 1>, scalar_prefetch = 0 : i64, scratch_operands = 2 : i64, tpu.core_type = #tpu.core_type<tc>, window_params = [{transform_indices = @transform_0, window_bounds = array<i64: 1, 8, 32>}, {pipeline_mode = #tpu.pipeline_mode<synchronous>, transform_indices = @transform_1, window_bounds = array<i64: 32, 32>}, {pipeline_mode = #tpu.pipeline_mode<synchronous>, transform_indices = @transform_2, window_bounds = array<i64: 1, 32>}, {pipeline_mode = #tpu.pipeline_mode<synchronous>, transform_indices = @transform_3, window_bounds = array<i64: 32, 32>}, {pipeline_mode = #tpu.pipeline_mode<synchronous>, transform_indices = @transform_4, window_bounds = array<i64: 1, 32>}, {pipeline_mode = #tpu.pipeline_mode<synchronous>, transform_indices = @transform_5, window_bounds = array<i64: 32, 32>}, {pipeline_mode = #tpu.pipeline_mode<synchronous>, transform_indices = @transform_6, window_bounds = array<i64: 1, 32>}, {pipeline_mode = #tpu.pipeline_mode<synchronous>, transform_indices = @transform_7, window_bounds = array<i64: 4, 8, 32>}, {pipeline_mode = #tpu.pipeline_mode<synchronous>, transform_indices = @transform_8, window_bounds = array<i64: 1, 32>}, {pipeline_mode = #tpu.pipeline_mode<synchronous>, transform_indices = @transform_9, window_bounds = array<i64: 1, 32>}, {pipeline_mode = #tpu.pipeline_mode<synchronous>, transform_indices = @transform_10, window_bounds = array<i64: 1, 32>}, {pipeline_mode = #tpu.pipeline_mode<synchronous>, transform_indices = @transform_11, window_bounds = array<i64: 32, 32>}, {pipeline_mode = #tpu.pipeline_mode<synchronous>, transform_indices = @transform_12, window_bounds = array<i64: 1, 32>}, {pipeline_mode = #tpu.pipeline_mode<synchronous>, transform_indices = @transform_13, window_bounds = array<i64: 32, 32>}, {pipeline_mode = #tpu.pipeline_mode<synchronous>, transform_indices = @transform_14, window_bounds = array<i64: 1, 32>}, {pipeline_mode = #tpu.pipeline_mode<synchronous>, transform_indices = @transform_15, window_bounds = array<i64: 1, 32>}, {pipeline_mode = #tpu.pipeline_mode<synchronous>, transform_indices = @transform_16, window_bounds = array<i64: 1, 32>}, {transform_indices = @transform_17, window_bounds = array<i64: 1, 8, 32>}]} {
    %c0_i32 = arith.constant 0 : i32
    %0 = arith.cmpi eq, %arg1, %c0_i32 : i32
    %1 = arith.extui %0 : i1 to i32
    %c0_i32_0 = arith.constant 0 : i32
    %2 = arith.cmpi ne, %1, %c0_i32_0 : i32
    scf.if %2 {
      %c0_83 = arith.constant 0 : index
      %c0_84 = arith.constant 0 : index
      %c0_85 = arith.constant 0 : index
      %166 = vector.load %arg2[%c0_83, %c0_84, %c0_85] : memref<1x8x32xf32, #tpu.memory_space<vmem>>, vector<1x8x32xf32>
      %167 = vector.shape_cast %166 : vector<1x8x32xf32> to vector<8x32xf32>
      %168 = arith.truncf %167 : vector<8x32xf32> to vector<8x32xbf16>
      %c0_86 = arith.constant 0 : index
      %c0_87 = arith.constant 0 : index
      %169 = vector.load %arg5[%c0_86, %c0_87] : memref<32x32xbf16, #tpu.memory_space<vmem>>, vector<32x32xbf16>
      %cst_88 = arith.constant dense<0.000000e+00> : vector<8x32xf32>
      %170 = tpu.matmul %168, %169, %cst_88 {dimension_numbers = #tpu.dot_dimension_numbers<[1], [0], [0], [1], [0, 0, 1, 1], [], []>} : vector<8x32xbf16>, vector<32x32xbf16>, vector<8x32xf32> -> vector<8x32xf32>
      %c0_89 = arith.constant 0 : index
      %c0_90 = arith.constant 0 : index
      %171 = vector.load %arg6[%c0_89, %c0_90] : memref<1x32xf32, #tpu.memory_space<vmem>>, vector<1x32xf32>
      %172 = vector.broadcast %171 : vector<1x32xf32> to vector<8x32xf32>
      %173 = arith.addf %170, %172 : vector<8x32xf32>
      %174 = arith.truncf %173 : vector<8x32xf32> to vector<8x32xbf16>
      %c0_91 = arith.constant 0 : index
      %c0_92 = arith.constant 0 : index
      %175 = vector.load %arg20[%c0_91, %c0_92] : memref<8x32xbf16, #tpu.memory_space<vmem>>, vector<8x32xbf16>
      tpu.vector_store %arg20[%c0_91, %c0_92], %174 {strides = array<i32>} : memref<8x32xbf16, #tpu.memory_space<vmem>>, vector<8x32xbf16>,
      %c0_93 = arith.constant 0 : index
      %c0_94 = arith.constant 0 : index
      %176 = vector.load %arg7[%c0_93, %c0_94] : memref<32x32xbf16, #tpu.memory_space<vmem>>, vector<32x32xbf16>
      %cst_95 = arith.constant dense<0.000000e+00> : vector<8x32xf32>
      %177 = tpu.matmul %168, %176, %cst_95 {dimension_numbers = #tpu.dot_dimension_numbers<[1], [0], [0], [1], [0, 0, 1, 1], [], []>} : vector<8x32xbf16>, vector<32x32xbf16>, vector<8x32xf32> -> vector<8x32xf32>
      %c0_96 = arith.constant 0 : index
      %c0_97 = arith.constant 0 : index
      %178 = vector.load %arg8[%c0_96, %c0_97] : memref<1x32xf32, #tpu.memory_space<vmem>>, vector<1x32xf32>
      %179 = vector.broadcast %178 : vector<1x32xf32> to vector<8x32xf32>
      %180 = arith.addf %177, %179 : vector<8x32xf32>
      %181 = arith.truncf %180 : vector<8x32xf32> to vector<8x32xbf16>
      %c0_98 = arith.constant 0 : index
      %c0_99 = arith.constant 0 : index
      %182 = vector.load %arg21[%c0_98, %c0_99] : memref<8x32xbf16, #tpu.memory_space<vmem>>, vector<8x32xbf16>
      tpu.vector_store %arg21[%c0_98, %c0_99], %181 {strides = array<i32>} : memref<8x32xbf16, #tpu.memory_space<vmem>>, vector<8x32xbf16>,
    } else {
    }
    %c8_i32 = arith.constant 8 : i32
    %3 = arith.muli %arg1, %c8_i32 : i32
    %4 = tpu.assume_multiple %3, 8 : i32
    %c0 = arith.constant 0 : index
    %5 = arith.index_cast %4 : i32 to index
    %c0_1 = arith.constant 0 : index
    %6 = vector.load %arg2[%c0, %5, %c0_1] : memref<1x8x32xf32, #tpu.memory_space<vmem>>, vector<1x8x32xf32>
    %7 = vector.shape_cast %6 : vector<1x8x32xf32> to vector<8x32xf32>
    %8 = arith.truncf %7 : vector<8x32xf32> to vector<8x32xbf16>
    %c0_2 = arith.constant 0 : index
    %c0_3 = arith.constant 0 : index
    %9 = vector.load %arg3[%c0_2, %c0_3] : memref<32x32xbf16, #tpu.memory_space<vmem>>, vector<32x32xbf16>
    %cst = arith.constant dense<0.000000e+00> : vector<8x32xf32>
    %10 = tpu.matmul %8, %9, %cst {dimension_numbers = #tpu.dot_dimension_numbers<[1], [0], [0], [1], [0, 0, 1, 1], [], []>} : vector<8x32xbf16>, vector<32x32xbf16>, vector<8x32xf32> -> vector<8x32xf32>
    %c0_4 = arith.constant 0 : index
    %c0_5 = arith.constant 0 : index
    %11 = vector.load %arg4[%c0_4, %c0_5] : memref<1x32xf32, #tpu.memory_space<vmem>>, vector<1x32xf32>
    %12 = vector.broadcast %11 : vector<1x32xf32> to vector<8x32xf32>
    %13 = arith.addf %10, %12 : vector<8x32xf32>
    %14 = arith.truncf %13 : vector<8x32xf32> to vector<8x32xbf16>
    %cst_6 = arith.constant 0.000000e+00 : f32
    %15 = vector.broadcast %cst_6 : f32 to vector<8x32xf32>
    %16 = vector.extract_strided_slice %14 {offsets = [0, 0], sizes = [8, 8], strides = [1, 1]} : vector<8x32xbf16> to vector<8x8xbf16>
    %c0_7 = arith.constant 0 : index
    %c0_8 = arith.constant 0 : index
    %17 = vector.load %arg20[%c0_7, %c0_8] : memref<8x32xbf16, #tpu.memory_space<vmem>>, vector<8x8xbf16>
    %c0_9 = arith.constant 0 : index
    %c0_10 = arith.constant 0 : index
    %18 = vector.load %arg21[%c0_9, %c0_10] : memref<8x32xbf16, #tpu.memory_space<vmem>>, vector<8x8xbf16>
    %cst_11 = arith.constant dense<0.000000e+00> : vector<8x8xf32>
    %19 = tpu.matmul %16, %17, %cst_11 {dimension_numbers = #tpu.dot_dimension_numbers<[1], [1], [0], [0], [0, 0, 1, 0], [], []>} : vector<8x8xbf16>, vector<8x8xbf16>, vector<8x8xf32> -> vector<8x8xf32>
    %cst_12 = arith.constant dense<0xFF800000> : vector<8xf32>
    %20 = vector.multi_reduction <maximumf>, %19, %cst_12 [1] : vector<8x8xf32> to vector<8xf32>
    %21 = vector.shape_cast %20 : vector<8xf32> to vector<8x1xf32>
    %22 = vector.broadcast %21 : vector<8x1xf32> to vector<8x8xf32>
    %23 = arith.subf %19, %22 : vector<8x8xf32>
    %24 = math.exp %23 : vector<8x8xf32>
    %cst_13 = arith.constant dense<0.000000e+00> : vector<8xf32>
    %25 = vector.multi_reduction <add>, %24, %cst_13 [1] : vector<8x8xf32> to vector<8xf32>
    %26 = vector.shape_cast %25 : vector<8xf32> to vector<8x1xf32>
    %27 = tpu.reciprocal %26 {approx = true} : vector<8x1xf32> -> vector<8x1xf32>
    %28 = vector.broadcast %27 : vector<8x1xf32> to vector<8x8xf32>
    %29 = arith.mulf %24, %28 : vector<8x8xf32>
    %30 = arith.truncf %29 : vector<8x8xf32> to vector<8x8xbf16>
    %cst_14 = arith.constant dense<0.000000e+00> : vector<8x8xf32>
    %31 = tpu.matmul %30, %18, %cst_14 {dimension_numbers = #tpu.dot_dimension_numbers<[1], [0], [0], [1], [0, 0, 1, 1], [], []>} : vector<8x8xbf16>, vector<8x8xbf16>, vector<8x8xf32> -> vector<8x8xf32>
    %32 = arith.truncf %31 : vector<8x8xf32> to vector<8x8xbf16>
    %c0_15 = arith.constant 0 : index
    %c0_16 = arith.constant 0 : index
    %c0_17 = arith.constant 0 : index
    %33 = vector.load %arg9[%c0_15, %c0_16, %c0_17] : memref<4x8x32xbf16, #tpu.memory_space<vmem>>, vector<1x8x32xbf16>
    %34 = vector.shape_cast %33 : vector<1x8x32xbf16> to vector<8x32xbf16>
    %cst_18 = arith.constant dense<0.000000e+00> : vector<8x32xf32>
    %35 = tpu.matmul %32, %34, %cst_18 {dimension_numbers = #tpu.dot_dimension_numbers<[1], [0], [0], [1], [0, 0, 1, 1], [], []>} : vector<8x8xbf16>, vector<8x32xbf16>, vector<8x32xf32> -> vector<8x32xf32>
    %36 = arith.addf %15, %35 : vector<8x32xf32>
    %37 = vector.extract_strided_slice %14 {offsets = [0, 8], sizes = [8, 8], strides = [1, 1]} : vector<8x32xbf16> to vector<8x8xbf16>
    %c0_19 = arith.constant 0 : index
    %c8 = arith.constant 8 : index
    %38 = vector.load %arg20[%c0_19, %c8] : memref<8x32xbf16, #tpu.memory_space<vmem>>, vector<8x8xbf16>
    %c0_20 = arith.constant 0 : index
    %c8_21 = arith.constant 8 : index
    %39 = vector.load %arg21[%c0_20, %c8_21] : memref<8x32xbf16, #tpu.memory_space<vmem>>, vector<8x8xbf16>
    %cst_22 = arith.constant dense<0.000000e+00> : vector<8x8xf32>
    %40 = tpu.matmul %37, %38, %cst_22 {dimension_numbers = #tpu.dot_dimension_numbers<[1], [1], [0], [0], [0, 0, 1, 0], [], []>} : vector<8x8xbf16>, vector<8x8xbf16>, vector<8x8xf32> -> vector<8x8xf32>
    %cst_23 = arith.constant dense<0xFF800000> : vector<8xf32>
    %41 = vector.multi_reduction <maximumf>, %40, %cst_23 [1] : vector<8x8xf32> to vector<8xf32>
    %42 = vector.shape_cast %41 : vector<8xf32> to vector<8x1xf32>
    %43 = vector.broadcast %42 : vector<8x1xf32> to vector<8x8xf32>
    %44 = arith.subf %40, %43 : vector<8x8xf32>
    %45 = math.exp %44 : vector<8x8xf32>
    %cst_24 = arith.constant dense<0.000000e+00> : vector<8xf32>
    %46 = vector.multi_reduction <add>, %45, %cst_24 [1] : vector<8x8xf32> to vector<8xf32>
    %47 = vector.shape_cast %46 : vector<8xf32> to vector<8x1xf32>
    %48 = tpu.reciprocal %47 {approx = true} : vector<8x1xf32> -> vector<8x1xf32>
    %49 = vector.broadcast %48 : vector<8x1xf32> to vector<8x8xf32>
    %50 = arith.mulf %45, %49 : vector<8x8xf32>
    %51 = arith.truncf %50 : vector<8x8xf32> to vector<8x8xbf16>
    %cst_25 = arith.constant dense<0.000000e+00> : vector<8x8xf32>
    %52 = tpu.matmul %51, %39, %cst_25 {dimension_numbers = #tpu.dot_dimension_numbers<[1], [0], [0], [1], [0, 0, 1, 1], [], []>} : vector<8x8xbf16>, vector<8x8xbf16>, vector<8x8xf32> -> vector<8x8xf32>
    %53 = arith.truncf %52 : vector<8x8xf32> to vector<8x8xbf16>
    %c1 = arith.constant 1 : index
    %c0_26 = arith.constant 0 : index
    %c0_27 = arith.constant 0 : index
    %54 = vector.load %arg9[%c1, %c0_26, %c0_27] : memref<4x8x32xbf16, #tpu.memory_space<vmem>>, vector<1x8x32xbf16>
    %55 = vector.shape_cast %54 : vector<1x8x32xbf16> to vector<8x32xbf16>
    %cst_28 = arith.constant dense<0.000000e+00> : vector<8x32xf32>
    %56 = tpu.matmul %53, %55, %cst_28 {dimension_numbers = #tpu.dot_dimension_numbers<[1], [0], [0], [1], [0, 0, 1, 1], [], []>} : vector<8x8xbf16>, vector<8x32xbf16>, vector<8x32xf32> -> vector<8x32xf32>
    %57 = arith.addf %36, %56 : vector<8x32xf32>
    %58 = vector.extract_strided_slice %14 {offsets = [0, 16], sizes = [8, 8], strides = [1, 1]} : vector<8x32xbf16> to vector<8x8xbf16>
    %c0_29 = arith.constant 0 : index
    %c16 = arith.constant 16 : index
    %59 = vector.load %arg20[%c0_29, %c16] : memref<8x32xbf16, #tpu.memory_space<vmem>>, vector<8x8xbf16>
    %c0_30 = arith.constant 0 : index
    %c16_31 = arith.constant 16 : index
    %60 = vector.load %arg21[%c0_30, %c16_31] : memref<8x32xbf16, #tpu.memory_space<vmem>>, vector<8x8xbf16>
    %cst_32 = arith.constant dense<0.000000e+00> : vector<8x8xf32>
    %61 = tpu.matmul %58, %59, %cst_32 {dimension_numbers = #tpu.dot_dimension_numbers<[1], [1], [0], [0], [0, 0, 1, 0], [], []>} : vector<8x8xbf16>, vector<8x8xbf16>, vector<8x8xf32> -> vector<8x8xf32>
    %cst_33 = arith.constant dense<0xFF800000> : vector<8xf32>
    %62 = vector.multi_reduction <maximumf>, %61, %cst_33 [1] : vector<8x8xf32> to vector<8xf32>
    %63 = vector.shape_cast %62 : vector<8xf32> to vector<8x1xf32>
    %64 = vector.broadcast %63 : vector<8x1xf32> to vector<8x8xf32>
    %65 = arith.subf %61, %64 : vector<8x8xf32>
    %66 = math.exp %65 : vector<8x8xf32>
    %cst_34 = arith.constant dense<0.000000e+00> : vector<8xf32>
    %67 = vector.multi_reduction <add>, %66, %cst_34 [1] : vector<8x8xf32> to vector<8xf32>
    %68 = vector.shape_cast %67 : vector<8xf32> to vector<8x1xf32>
    %69 = tpu.reciprocal %68 {approx = true} : vector<8x1xf32> -> vector<8x1xf32>
    %70 = vector.broadcast %69 : vector<8x1xf32> to vector<8x8xf32>
    %71 = arith.mulf %66, %70 : vector<8x8xf32>
    %72 = arith.truncf %71 : vector<8x8xf32> to vector<8x8xbf16>
    %cst_35 = arith.constant dense<0.000000e+00> : vector<8x8xf32>
    %73 = tpu.matmul %72, %60, %cst_35 {dimension_numbers = #tpu.dot_dimension_numbers<[1], [0], [0], [1], [0, 0, 1, 1], [], []>} : vector<8x8xbf16>, vector<8x8xbf16>, vector<8x8xf32> -> vector<8x8xf32>
    %74 = arith.truncf %73 : vector<8x8xf32> to vector<8x8xbf16>
    %c2 = arith.constant 2 : index
    %c0_36 = arith.constant 0 : index
    %c0_37 = arith.constant 0 : index
    %75 = vector.load %arg9[%c2, %c0_36, %c0_37] : memref<4x8x32xbf16, #tpu.memory_space<vmem>>, vector<1x8x32xbf16>
    %76 = vector.shape_cast %75 : vector<1x8x32xbf16> to vector<8x32xbf16>
    %cst_38 = arith.constant dense<0.000000e+00> : vector<8x32xf32>
    %77 = tpu.matmul %74, %76, %cst_38 {dimension_numbers = #tpu.dot_dimension_numbers<[1], [0], [0], [1], [0, 0, 1, 1], [], []>} : vector<8x8xbf16>, vector<8x32xbf16>, vector<8x32xf32> -> vector<8x32xf32>
    %78 = arith.addf %57, %77 : vector<8x32xf32>
    %79 = vector.extract_strided_slice %14 {offsets = [0, 24], sizes = [8, 8], strides = [1, 1]} : vector<8x32xbf16> to vector<8x8xbf16>
    %c0_39 = arith.constant 0 : index
    %c24 = arith.constant 24 : index
    %80 = vector.load %arg20[%c0_39, %c24] : memref<8x32xbf16, #tpu.memory_space<vmem>>, vector<8x8xbf16>
    %c0_40 = arith.constant 0 : index
    %c24_41 = arith.constant 24 : index
    %81 = vector.load %arg21[%c0_40, %c24_41] : memref<8x32xbf16, #tpu.memory_space<vmem>>, vector<8x8xbf16>
    %cst_42 = arith.constant dense<0.000000e+00> : vector<8x8xf32>
    %82 = tpu.matmul %79, %80, %cst_42 {dimension_numbers = #tpu.dot_dimension_numbers<[1], [1], [0], [0], [0, 0, 1, 0], [], []>} : vector<8x8xbf16>, vector<8x8xbf16>, vector<8x8xf32> -> vector<8x8xf32>
    %cst_43 = arith.constant dense<0xFF800000> : vector<8xf32>
    %83 = vector.multi_reduction <maximumf>, %82, %cst_43 [1] : vector<8x8xf32> to vector<8xf32>
    %84 = vector.shape_cast %83 : vector<8xf32> to vector<8x1xf32>
    %85 = vector.broadcast %84 : vector<8x1xf32> to vector<8x8xf32>
    %86 = arith.subf %82, %85 : vector<8x8xf32>
    %87 = math.exp %86 : vector<8x8xf32>
    %cst_44 = arith.constant dense<0.000000e+00> : vector<8xf32>
    %88 = vector.multi_reduction <add>, %87, %cst_44 [1] : vector<8x8xf32> to vector<8xf32>
    %89 = vector.shape_cast %88 : vector<8xf32> to vector<8x1xf32>
    %90 = tpu.reciprocal %89 {approx = true} : vector<8x1xf32> -> vector<8x1xf32>
    %91 = vector.broadcast %90 : vector<8x1xf32> to vector<8x8xf32>
    %92 = arith.mulf %87, %91 : vector<8x8xf32>
    %93 = arith.truncf %92 : vector<8x8xf32> to vector<8x8xbf16>
    %cst_45 = arith.constant dense<0.000000e+00> : vector<8x8xf32>
    %94 = tpu.matmul %93, %81, %cst_45 {dimension_numbers = #tpu.dot_dimension_numbers<[1], [0], [0], [1], [0, 0, 1, 1], [], []>} : vector<8x8xbf16>, vector<8x8xbf16>, vector<8x8xf32> -> vector<8x8xf32>
    %95 = arith.truncf %94 : vector<8x8xf32> to vector<8x8xbf16>
    %c3 = arith.constant 3 : index
    %c0_46 = arith.constant 0 : index
    %c0_47 = arith.constant 0 : index
    %96 = vector.load %arg9[%c3, %c0_46, %c0_47] : memref<4x8x32xbf16, #tpu.memory_space<vmem>>, vector<1x8x32xbf16>
    %97 = vector.shape_cast %96 : vector<1x8x32xbf16> to vector<8x32xbf16>
    %cst_48 = arith.constant dense<0.000000e+00> : vector<8x32xf32>
    %98 = tpu.matmul %95, %97, %cst_48 {dimension_numbers = #tpu.dot_dimension_numbers<[1], [0], [0], [1], [0, 0, 1, 1], [], []>} : vector<8x8xbf16>, vector<8x32xbf16>, vector<8x32xf32> -> vector<8x32xf32>
    %99 = arith.addf %78, %98 : vector<8x32xf32>
    %c0_49 = arith.constant 0 : index
    %c0_50 = arith.constant 0 : index
    %100 = vector.load %arg10[%c0_49, %c0_50] : memref<1x32xf32, #tpu.memory_space<vmem>>, vector<1x32xf32>
    %101 = vector.broadcast %100 : vector<1x32xf32> to vector<8x32xf32>
    %102 = arith.addf %99, %101 : vector<8x32xf32>
    %103 = arith.addf %7, %102 : vector<8x32xf32>
    %c0_51 = arith.constant 0 : index
    %c0_52 = arith.constant 0 : index
    %104 = vector.load %arg11[%c0_51, %c0_52] : memref<1x32xf32, #tpu.memory_space<vmem>>, vector<1x32xf32>
    %c0_53 = arith.constant 0 : index
    %c0_54 = arith.constant 0 : index
    %105 = vector.load %arg12[%c0_53, %c0_54] : memref<1x32xf32, #tpu.memory_space<vmem>>, vector<1x32xf32>
    %cst_55 = arith.constant dense<0.000000e+00> : vector<8xf32>
    %106 = vector.multi_reduction <add>, %103, %cst_55 [1] : vector<8x32xf32> to vector<8xf32>
    %107 = vector.shape_cast %106 : vector<8xf32> to vector<8x1xf32>
    %cst_56 = arith.constant 3.200000e+01 : f32
    %108 = vector.broadcast %cst_56 : f32 to vector<8x1xf32>
    %109 = arith.divf %107, %108 : vector<8x1xf32>
    %110 = vector.broadcast %109 : vector<8x1xf32> to vector<8x32xf32>
    %111 = arith.subf %103, %110 : vector<8x32xf32>
    %112 = arith.mulf %111, %111 : vector<8x32xf32>
    %cst_57 = arith.constant dense<0.000000e+00> : vector<8xf32>
    %113 = vector.multi_reduction <add>, %112, %cst_57 [1] : vector<8x32xf32> to vector<8xf32>
    %114 = vector.shape_cast %113 : vector<8xf32> to vector<8x1xf32>
    %cst_58 = arith.constant 3.200000e+01 : f32
    %115 = vector.broadcast %cst_58 : f32 to vector<8x1xf32>
    %116 = arith.divf %114, %115 : vector<8x1xf32>
    %cst_59 = arith.constant 9.99999974E-6 : f32
    %117 = vector.broadcast %cst_59 : f32 to vector<8x1xf32>
    %118 = arith.addf %116, %117 : vector<8x1xf32>
    %119 = math.rsqrt %118 : vector<8x1xf32>
    %120 = vector.broadcast %119 : vector<8x1xf32> to vector<8x32xf32>
    %121 = arith.mulf %111, %120 : vector<8x32xf32>
    %122 = vector.broadcast %104 : vector<1x32xf32> to vector<8x32xf32>
    %123 = arith.mulf %121, %122 : vector<8x32xf32>
    %124 = vector.broadcast %105 : vector<1x32xf32> to vector<8x32xf32>
    %125 = arith.addf %123, %124 : vector<8x32xf32>
    %126 = arith.truncf %125 : vector<8x32xf32> to vector<8x32xbf16>
    %c0_60 = arith.constant 0 : index
    %c0_61 = arith.constant 0 : index
    %127 = vector.load %arg13[%c0_60, %c0_61] : memref<32x32xbf16, #tpu.memory_space<vmem>>, vector<32x32xbf16>
    %cst_62 = arith.constant dense<0.000000e+00> : vector<8x32xf32>
    %128 = tpu.matmul %126, %127, %cst_62 {dimension_numbers = #tpu.dot_dimension_numbers<[1], [0], [0], [1], [0, 0, 1, 1], [], []>} : vector<8x32xbf16>, vector<32x32xbf16>, vector<8x32xf32> -> vector<8x32xf32>
    %c0_63 = arith.constant 0 : index
    %c0_64 = arith.constant 0 : index
    %129 = vector.load %arg14[%c0_63, %c0_64] : memref<1x32xf32, #tpu.memory_space<vmem>>, vector<1x32xf32>
    %130 = vector.broadcast %129 : vector<1x32xf32> to vector<8x32xf32>
    %131 = arith.addf %128, %130 : vector<8x32xf32>
    %cst_65 = arith.constant 0.000000e+00 : f32
    %132 = vector.broadcast %cst_65 : f32 to vector<8x32xf32>
    %133 = arith.maximumf %131, %132 : vector<8x32xf32>
    %134 = arith.truncf %133 : vector<8x32xf32> to vector<8x32xbf16>
    %c0_66 = arith.constant 0 : index
    %c0_67 = arith.constant 0 : index
    %135 = vector.load %arg15[%c0_66, %c0_67] : memref<32x32xbf16, #tpu.memory_space<vmem>>, vector<32x32xbf16>
    %cst_68 = arith.constant dense<0.000000e+00> : vector<8x32xf32>
    %136 = tpu.matmul %134, %135, %cst_68 {dimension_numbers = #tpu.dot_dimension_numbers<[1], [0], [0], [1], [0, 0, 1, 1], [], []>} : vector<8x32xbf16>, vector<32x32xbf16>, vector<8x32xf32> -> vector<8x32xf32>
    %c0_69 = arith.constant 0 : index
    %c0_70 = arith.constant 0 : index
    %137 = vector.load %arg16[%c0_69, %c0_70] : memref<1x32xf32, #tpu.memory_space<vmem>>, vector<1x32xf32>
    %138 = vector.broadcast %137 : vector<1x32xf32> to vector<8x32xf32>
    %139 = arith.addf %136, %138 : vector<8x32xf32>
    %140 = arith.addf %125, %139 : vector<8x32xf32>
    %c0_71 = arith.constant 0 : index
    %c0_72 = arith.constant 0 : index
    %141 = vector.load %arg17[%c0_71, %c0_72] : memref<1x32xf32, #tpu.memory_space<vmem>>, vector<1x32xf32>
    %c0_73 = arith.constant 0 : index
    %c0_74 = arith.constant 0 : index
    %142 = vector.load %arg18[%c0_73, %c0_74] : memref<1x32xf32, #tpu.memory_space<vmem>>, vector<1x32xf32>
    %cst_75 = arith.constant dense<0.000000e+00> : vector<8xf32>
    %143 = vector.multi_reduction <add>, %140, %cst_75 [1] : vector<8x32xf32> to vector<8xf32>
    %144 = vector.shape_cast %143 : vector<8xf32> to vector<8x1xf32>
    %cst_76 = arith.constant 3.200000e+01 : f32
    %145 = vector.broadcast %cst_76 : f32 to vector<8x1xf32>
    %146 = arith.divf %144, %145 : vector<8x1xf32>
    %147 = vector.broadcast %146 : vector<8x1xf32> to vector<8x32xf32>
    %148 = arith.subf %140, %147 : vector<8x32xf32>
    %149 = arith.mulf %148, %148 : vector<8x32xf32>
    %cst_77 = arith.constant dense<0.000000e+00> : vector<8xf32>
    %150 = vector.multi_reduction <add>, %149, %cst_77 [1] : vector<8x32xf32> to vector<8xf32>
    %151 = vector.shape_cast %150 : vector<8xf32> to vector<8x1xf32>
    %cst_78 = arith.constant 3.200000e+01 : f32
    %152 = vector.broadcast %cst_78 : f32 to vector<8x1xf32>
    %153 = arith.divf %151, %152 : vector<8x1xf32>
    %cst_79 = arith.constant 9.99999974E-6 : f32
    %154 = vector.broadcast %cst_79 : f32 to vector<8x1xf32>
    %155 = arith.addf %153, %154 : vector<8x1xf32>
    %156 = math.rsqrt %155 : vector<8x1xf32>
    %157 = vector.broadcast %156 : vector<8x1xf32> to vector<8x32xf32>
    %158 = arith.mulf %148, %157 : vector<8x32xf32>
    %159 = vector.broadcast %141 : vector<1x32xf32> to vector<8x32xf32>
    %160 = arith.mulf %158, %159 : vector<8x32xf32>
    %161 = vector.broadcast %142 : vector<1x32xf32> to vector<8x32xf32>
    %162 = arith.addf %160, %161 : vector<8x32xf32>
    %c0_80 = arith.constant 0 : index
    %c0_81 = arith.constant 0 : index
    %c0_82 = arith.constant 0 : index
    %163 = vector.load %arg19[%c0_80, %c0_81, %c0_82] : memref<1x8x32xf32, #tpu.memory_space<vmem>>, vector<1x8x32xf32>
    %164 = vector.shape_cast %163 : vector<1x8x32xf32> to vector<8x32xf32>
    %165 = vector.shape_cast %162 : vector<8x32xf32> to vector<1x8x32xf32>
    tpu.vector_store %arg19[%c0_80, %c0_81, %c0_82], %165 {strides = array<i32>} : memref<1x8x32xf32, #tpu.memory_space<vmem>>, vector<1x8x32xf32>,
    return
  }
  func.func @transform_0(%arg0: i32, %arg1: i32) -> (i32, i32, i32) {
    %c0_i32 = arith.constant 0 : i32
    %c0_i32_0 = arith.constant 0 : i32
    %c0_i32_1 = arith.constant 0 : i32
    return %arg0, %c0_i32, %c0_i32_0 : i32, i32, i32
  }
  func.func @transform_1(%arg0: i32, %arg1: i32) -> (i32, i32) {
    %c0_i32 = arith.constant 0 : i32
    %c0_i32_0 = arith.constant 0 : i32
    %c0_i32_1 = arith.constant 0 : i32
    return %c0_i32, %c0_i32_0 : i32, i32
  }
  func.func @transform_2(%arg0: i32, %arg1: i32) -> (i32, i32) {
    %c0_i32 = arith.constant 0 : i32
    %c0_i32_0 = arith.constant 0 : i32
    %c0_i32_1 = arith.constant 0 : i32
    return %c0_i32, %c0_i32_0 : i32, i32
  }
  func.func @transform_3(%arg0: i32, %arg1: i32) -> (i32, i32) {
    %c0_i32 = arith.constant 0 : i32
    %c0_i32_0 = arith.constant 0 : i32
    %c0_i32_1 = arith.constant 0 : i32
    return %c0_i32, %c0_i32_0 : i32, i32
  }
  func.func @transform_4(%arg0: i32, %arg1: i32) -> (i32, i32) {
    %c0_i32 = arith.constant 0 : i32
    %c0_i32_0 = arith.constant 0 : i32
    %c0_i32_1 = arith.constant 0 : i32
    return %c0_i32, %c0_i32_0 : i32, i32
  }
  func.func @transform_5(%arg0: i32, %arg1: i32) -> (i32, i32) {
    %c0_i32 = arith.constant 0 : i32
    %c0_i32_0 = arith.constant 0 : i32
    %c0_i32_1 = arith.constant 0 : i32
    return %c0_i32, %c0_i32_0 : i32, i32
  }
  func.func @transform_6(%arg0: i32, %arg1: i32) -> (i32, i32) {
    %c0_i32 = arith.constant 0 : i32
    %c0_i32_0 = arith.constant 0 : i32
    %c0_i32_1 = arith.constant 0 : i32
    return %c0_i32, %c0_i32_0 : i32, i32
  }
  func.func @transform_7(%arg0: i32, %arg1: i32) -> (i32, i32, i32) {
    %c0_i32 = arith.constant 0 : i32
    %c0_i32_0 = arith.constant 0 : i32
    %c0_i32_1 = arith.constant 0 : i32
    %c0_i32_2 = arith.constant 0 : i32
    return %c0_i32, %c0_i32_0, %c0_i32_1 : i32, i32, i32
  }
  func.func @transform_8(%arg0: i32, %arg1: i32) -> (i32, i32) {
    %c0_i32 = arith.constant 0 : i32
    %c0_i32_0 = arith.constant 0 : i32
    %c0_i32_1 = arith.constant 0 : i32
    return %c0_i32, %c0_i32_0 : i32, i32
  }
  func.func @transform_9(%arg0: i32, %arg1: i32) -> (i32, i32) {
    %c0_i32 = arith.constant 0 : i32
    %c0_i32_0 = arith.constant 0 : i32
    %c0_i32_1 = arith.constant 0 : i32
    return %c0_i32, %c0_i32_0 : i32, i32
  }
  func.func @transform_10(%arg0: i32, %arg1: i32) -> (i32, i32) {
    %c0_i32 = arith.constant 0 : i32
    %c0_i32_0 = arith.constant 0 : i32
    %c0_i32_1 = arith.constant 0 : i32
    return %c0_i32, %c0_i32_0 : i32, i32
  }
  func.func @transform_11(%arg0: i32, %arg1: i32) -> (i32, i32) {
    %c0_i32 = arith.constant 0 : i32
    %c0_i32_0 = arith.constant 0 : i32
    %c0_i32_1 = arith.constant 0 : i32
    return %c0_i32, %c0_i32_0 : i32, i32
  }
  func.func @transform_12(%arg0: i32, %arg1: i32) -> (i32, i32) {
    %c0_i32 = arith.constant 0 : i32
    %c0_i32_0 = arith.constant 0 : i32
    %c0_i32_1 = arith.constant 0 : i32
    return %c0_i32, %c0_i32_0 : i32, i32
  }
  func.func @transform_13(%arg0: i32, %arg1: i32) -> (i32, i32) {
    %c0_i32 = arith.constant 0 : i32
    %c0_i32_0 = arith.constant 0 : i32
    %c0_i32_1 = arith.constant 0 : i32
    return %c0_i32, %c0_i32_0 : i32, i32
  }
  func.func @transform_14(%arg0: i32, %arg1: i32) -> (i32, i32) {
    %c0_i32 = arith.constant 0 : i32
    %c0_i32_0 = arith.constant 0 : i32
    %c0_i32_1 = arith.constant 0 : i32
    return %c0_i32, %c0_i32_0 : i32, i32
  }
  func.func @transform_15(%arg0: i32, %arg1: i32) -> (i32, i32) {
    %c0_i32 = arith.constant 0 : i32
    %c0_i32_0 = arith.constant 0 : i32
    %c0_i32_1 = arith.constant 0 : i32
    return %c0_i32, %c0_i32_0 : i32, i32
  }
  func.func @transform_16(%arg0: i32, %arg1: i32) -> (i32, i32) {
    %c0_i32 = arith.constant 0 : i32
    %c0_i32_0 = arith.constant 0 : i32
    %c0_i32_1 = arith.constant 0 : i32
    return %c0_i32, %c0_i32_0 : i32, i32
  }
  func.func @transform_17(%arg0: i32, %arg1: i32) -> (i32, i32, i32) {
    %c0_i32 = arith.constant 0 : i32
    %c0_i32_0 = arith.constant 0 : i32
    return %arg0, %arg1, %c0_i32 : i32, i32, i32
  }
}

</mosaic_0001>

<bundles_post_ra>
// kernel: tpu_custom_call.1
= control target key start
LH: loop header
LB: loop body
LE: loop exit
PB: predicated region body
PF: predicated region fallthrough
CT: control target
= control target key end

     0   :  { %s3418_s0 = inlined_call_operand.hbm [shape: f32[2,8,32], index: 0, kind: input, shape index: {}]   ;;  %s3419_s1 = inlined_call_operand.hbm [shape: bf16[32,32], index: 1, kind: input, shape index: {}]   ;;  %s3420_s2 = inlined_call_operand.vmem [shape: f32[1,32], index: 2, kind: input, shape index: {}]   ;;  %s3421_s3 = inlined_call_operand.hbm [shape: bf16[32,32], index: 3, kind: input, shape index: {}]   ;;  %s3422_s4 = inlined_call_operand.hbm [shape: f32[1,32], index: 4, kind: input, shape index: {}]   ;;  %s3423_s5 = inlined_call_operand.vmem [shape: bf16[32,32], index: 5, kind: input, shape index: {}]   ;;  %s3424_s6 = inlined_call_operand.hbm [shape: f32[1,32], index: 6, kind: input, shape index: {}]   ;;  %s3425_s7 = inlined_call_operand.hbm [shape: bf16[4,8,32], index: 7, kind: input, shape index: {}]   ;;  %s3426_s8 = inlined_call_operand.hbm [shape: f32[1,32], index: 8, kind: input, shape index: {}]   ;;  %s3427_s9 = inlined_call_operand.hbm [shape: f32[1,32], index: 9, kind: input, shape index: {}]   ;;  %s3428_s10 = inlined_call_operand.hbm [shape: f32[1,32], index: 10, kind: input, shape index: {}]   ;;  %s3429_s11 = inlined_call_operand.vmem [shape: bf16[32,32], index: 11, kind: input, shape index: {}]   ;;  %s3430_s12 = inlined_call_operand.hbm [shape: f32[1,32], index: 12, kind: input, shape index: {}]   ;;  %s3431_s13 = inlined_call_operand.vmem [shape: bf16[32,32], index: 13, kind: input, shape index: {}]   ;;  %s3432_s14 = inlined_call_operand.vmem [shape: f32[1,32], index: 14, kind: input, shape index: {}]   ;;  %s3433_s15 = inlined_call_operand.vmem [shape: f32[1,32], index: 15, kind: input, shape index: {}]   ;;  %s3434_s16 = inlined_call_operand.vmem [shape: f32[1,32], index: 16, kind: input, shape index: {}]   ;;  %s3435_s17 = inlined_call_operand.hbm [shape: f32[2,8,32], index: 17, kind: output, shape index: {}]  }
   0x1   :  { %3450 = sst [smem:[#allocation31_spill]] %s3418_s0 }
   0x2   :  { %3451 = sst [smem:[#allocation32_spill]] %s3419_s1 }
   0x3   :  { %3452 = sst [smem:[#allocation33_spill]] %s3420_s2 }
   0x4   :  { %3453 = sst [smem:[#allocation34_spill]] %s3421_s3 }
   0x5   :  { %3454 = sst [smem:[#allocation35_spill]] %s3422_s4 }
   0x6   :  { %3455 = sst [smem:[#allocation36_spill]] %s3423_s5 }
   0x7   :  { %3456 = sst [smem:[#allocation37_spill]] %s3424_s6 }
   0x8   :  { %3457 = sst [smem:[#allocation38_spill]] %s3425_s7 }
   0x9   :  { %3458 = sst [smem:[#allocation39_spill]] %s3426_s8 }
   0xa   :  { %3459 = sst [smem:[#allocation40_spill]] %s3429_s11 }
   0xb   :  { %3460 = sst [smem:[#allocation41_spill]] %s3431_s13 }
   0xc   :  { %3461 = sst [smem:[#allocation42_spill]] %s3432_s14 }
   0xd   :  { %3462 = sst [smem:[#allocation43_spill]] %s3433_s15 }
   0xe   :  { %3463 = sst [smem:[#allocation44_spill]] %s3434_s16 }
   0xf   :  { %3464 = sst [smem:[#allocation45_spill]] %s3435_s17 }
  0x10   :  { %22 = vsyncpa [#allocation5], 0 }
  0x11   :  { %24 = vsyncpa [#allocation5 + $0x1], 0 }
  0x12   :  { %25 = vsyncpa [#allocation8], 0 }
  0x13   :  { %26 = vsyncpa [#allocation11], 0 }
  0x14   :  { %27 = vsyncpa [#allocation14], 0 }
  0x15   :  { %28 = vsyncpa [#allocation17], 0 }
  0x16   :  { %29 = vsyncpa [#allocation20], 0 }
  0x17   :  { %30 = vsyncpa [#allocation6], 0 }
  0x18   :  { %32 = vsyncpa [#allocation6 + $0x1], 0  ;;  %s2847_s24 = smov 0   ;;  %s2849_s25 = smov 0  }
  0x19   :  { %s2851_s26 = smov 0   ;;  %s2853_s27 = smov 0  }
  0x1a   :  { %s2855_s28 = smov 0   ;;  %s2857_s29 = smov 0  }
  0x1b LB: > { %3465 = sst [smem:[#allocation29_spill]] %s2729_s27  ;;  %s3438_s0 = sadd.s32 4294967295, %s2737_s29   ;;  %s2737_s29 = sphi %s2857_s29, %s38_s29   ;;  %s2733_s28 = sphi %s2855_s28, %s3505_s28   ;;  %s2729_s27 = sphi %s2853_s27, %s3504_s27   ;;  %s2725_s26 = sphi %s2851_s26, %s3503_s26   ;;  %s2721_s25 = sphi %s2849_s25, %s3502_s25   ;;  %s2717_s24 = sphi %s2847_s24, %s3501_s24  }
  0x1c   : > { %p1942_p0 = scmp.ge.s32.totalorder %s2737_s29, 1  ;;  %p2881_p1 = scmp.eq.s32.totalorder %s3438_s0, 0 }
  0x1d   : > { %p445_p2 = scmp.lt.s32.totalorder %s2737_s29, 3  ;;  %s2739_s19 = smov [#allocation7]  }
  0x1e   : > { %s3466_s30 = scalar_select %p2881_p1, 1, 0 }
  0x1f   : > { %p2886_p3 = pnand %p1942_p0, %p445_p2  ;;  %s457_s1 = sshll.u32 %s2739_s19, 4  ;;  %s2890_s1 = int_to_ptr.vmem [resolvable:$true] %s457_s1 }
  0x20   : > { %s2740_s21 = smov [#allocation10]   ;;  %s2741_s23 = smov [#allocation13]  }
  0x21   : > { %s3467_s18 = scalar_select %p2886_p3, 1, 0 }
  0x22   : > { %p2201_p4 = pneg %p2886_p3  ;;  %s487_s22 = sshll.u32 %s2740_s21, 4  ;;  %s2901_s22 = int_to_ptr.vmem [resolvable:$true] %s487_s22 }
  0x23   : > { %3468 = sst [smem:[#allocation30_spill]] %s3467_s18  ;;  %s2903_s0 = sshll.u32 %s2741_s23, 4  ;;  %s512_s0 = int_to_ptr.vmem [resolvable:$true] %s2903_s0 }
  0x24   : > { %p2897_p6 = pnand %p2201_p4, %p2881_p1  ;;  %s3470_s16 = sld [smem:[#allocation32_spill]] }
  0x26   : > { %p2913_p8 = pneg %p2897_p6 }
  0x2a   : > { %s2353_s15 = scalar_lea.hbm %s3470_s16, 256 }
  0x2b   : > { %p2354_p7 = scmp.ne.s32.totalorder %s3470_s16, %s2353_s15  ;;  %p2360_p11 = scmp.lt.u32.totalorder %s2353_s15, %s3470_s16 }
  0x2d   : > { %p2356_p9 = pnand %p2913_p8, %p2354_p7 }
  0x2f   : > { %p2357_p10 = pneg %p2356_p9 }
  0x31   : > { %p2362_p12 = pnand %p2360_p11, %p2357_p10 }
  0x33   : > { %2365 = shalt.err (!%p2362_p12)
}
  0x34   : > { %s2366_s14 = scalar_lea.vmem %s2890_s1, 256  ;;  %p2374_p4 = scmp.lt.s32.totalorder %s2890_s1, %s2890_s1 }
  0x35   : > { %p2367_p13 = scmp.ne.s32.totalorder %s2890_s1, %s2366_s14  ;;  %p2375_p5 = scmp.lt.s32.totalorder %s2366_s14, %s2366_s14 }
  0x37   : > { %p2369_p0 = pnand %p2367_p13, %p2913_p8  ;;  %p2376_p7 = por %p2375_p5, %p2374_p4 }
  0x39   : > { %p2370_p2 = pneg %p2369_p0 }
  0x3b   : > { %p2377_p9 = pnand %p2376_p7, %p2370_p2 }
  0x3d   : > { %2380 = shalt.err (!%p2377_p9)
}
  0x3e   : > { %s2742_s17 = smov 64   ;;  %s2743_s15 = smov 4  }
  0x3f   : > { %2204 = dma.hbm_to_vmem [thread:$0]  (!%p2897_p6), %s3470_s16, 256, %s2890_s1, [#allocation8], %s2742_s17, %s2742_s17, %s2743_s15  }
  0x40   : > { %s3472_s4 = sld [smem:[#allocation35_spill]] }
  0x46   : > { %s2381_s14 = scalar_lea.hbm %s3472_s4, 16 }
  0x47   : > { %p2382_p5 = scmp.ne.s32.totalorder %s3472_s4, %s2381_s14  ;;  %p2388_p12 = scmp.lt.u32.totalorder %s2381_s14, %s3472_s4 }
  0x49   : > { %p2384_p10 = pnand %p2382_p5, %p2913_p8 }
  0x4b   : > { %p2385_p11 = pneg %p2384_p10 }
  0x4d   : > { %p2390_p13 = pnand %p2388_p12, %p2385_p11 }
  0x4f   : > { %2393 = shalt.err (!%p2390_p13)
}
  0x50   : > { %s2394_s1 = scalar_lea.vmem %s2901_s22, 16  ;;  %s2401_s2 = scalar_lea.vmem %s2901_s22, 32 }
  0x51   : > { %p2395_p0 = scmp.ne.s32.totalorder %s2901_s22, %s2394_s1  ;;  %p2402_p7 = scmp.lt.s32.totalorder %s2901_s22, %s2901_s22 }
  0x52   : > { %p2403_p9 = scmp.lt.s32.totalorder %s2401_s2, %s2394_s1 }
  0x53   : > { %p2397_p2 = pnand %p2395_p0, %p2913_p8 }
  0x54   : > { %p2404_p5 = por %p2403_p9, %p2402_p7 }
  0x55   : > { %p2398_p4 = pneg %p2397_p2 }
  0x57   : > { %p2405_p10 = pnand %p2404_p5, %p2398_p4 }
  0x59   : > { %2408 = shalt.err (!%p2405_p10)
}
  0x5a   : > { %2210 = dma.hbm_to_vmem [thread:$0]  (!%p2897_p6), %s3472_s4, 16, %s2901_s22, [#allocation11]  }
  0x5b   : > { %s3473_s7 = sld [smem:[#allocation38_spill]] }
  0x61   : > { %s2409_s19 = scalar_lea.hbm %s3473_s7, 256 }
  0x62   : > { %p2410_p11 = scmp.ne.s32.totalorder %s3473_s7, %s2409_s19  ;;  %p2416_p0 = scmp.lt.u32.totalorder %s2409_s19, %s3473_s7 }
  0x64   : > { %p2412_p12 = pnand %p2410_p11, %p2913_p8 }
  0x66   : > { %p2413_p13 = pneg %p2412_p12 }
  0x68   : > { %p2418_p2 = pnand %p2416_p0, %p2413_p13 }
  0x6a   : > { %2421 = shalt.err (!%p2418_p2)
}
  0x6b   : > { %s2422_s2 = scalar_lea.vmem %s512_s0, 256  ;;  %p2430_p5 = scmp.lt.s32.totalorder %s512_s0, %s512_s0 }
  0x6c   : > { %p2423_p4 = scmp.ne.s32.totalorder %s512_s0, %s2422_s2  ;;  %p2431_p10 = scmp.lt.s32.totalorder %s2422_s2, %s2422_s2 }
  0x6e   : > { %p2425_p7 = pnand %p2423_p4, %p2913_p8  ;;  %p2432_p3 = por %p2431_p10, %p2430_p5 }
  0x70   : > { %p2426_p9 = pneg %p2425_p7 }
  0x72   : > { %p2433_p1 = pnand %p2432_p3, %p2426_p9 }
  0x74   : > { %2436 = shalt.err (!%p2433_p1)
}
  0x75   : > { %2216 = dma.hbm_to_vmem [thread:$0]  (!%p2897_p6), %s3473_s7, 256, %s512_s0, [#allocation14], %s2742_s17, %s2742_s17, %s2743_s15  }
  0x76   : > { %s2744_s11 = smov [#allocation16]   ;;  %s2745_s27 = smov [#allocation9]  }
  0x77   : > { %s536_s18 = sshll.u32 %s2744_s11, 4  ;;  %s473_s19 = sshll.u32 %s2745_s27, 4  ;;  %s537_s18 = int_to_ptr.vmem [resolvable:$true] %s536_s18  ;;  %s474_s19 = int_to_ptr.vmem [resolvable:$true] %s473_s19 }
  0x78   : > { %s2437_s14 = scalar_lea.hbm %s3427_s9, 16 }
  0x79   : > { %p2438_p1 = scmp.ne.s32.totalorder %s3427_s9, %s2437_s14  ;;  %p2444_p12 = scmp.lt.u32.totalorder %s2437_s14, %s3427_s9 }
  0x7b   : > { %p2440_p3 = pnand %p2438_p1, %p2913_p8 }
  0x7d   : > { %p2441_p11 = pneg %p2440_p3 }
  0x7f   : > { %p2446_p13 = pnand %p2444_p12, %p2441_p11 }
  0x81   : > { %2449 = shalt.err (!%p2446_p13)
}
  0x82   : > { %s2450_s0 = scalar_lea.vmem %s537_s18, 16  ;;  %s2457_s5 = scalar_lea.vmem %s537_s18, 32 }
  0x83   : > { %p2451_p0 = scmp.ne.s32.totalorder %s537_s18, %s2450_s0  ;;  %p2458_p7 = scmp.lt.s32.totalorder %s537_s18, %s537_s18 }
  0x84   : > { %p2459_p9 = scmp.lt.s32.totalorder %s2457_s5, %s2450_s0 }
  0x85   : > { %p2453_p2 = pnand %p2451_p0, %p2913_p8 }
  0x86   : > { %p2460_p5 = por %p2459_p9, %p2458_p7 }
  0x87   : > { %p2454_p4 = pneg %p2453_p2 }
  0x89   : > { %p2461_p10 = pnand %p2460_p5, %p2454_p4 }
  0x8b   : > { %2464 = shalt.err (!%p2461_p10)
}
  0x8c   : > { %2222 = dma.hbm_to_vmem [thread:$0]  (!%p2897_p6), %s3427_s9, 16, %s537_s18, [#allocation17]  }
  0x8d   : > { %s3474_s3 = sld [smem:[#allocation34_spill]] }
  0x93   : > { %s2465_s23 = scalar_lea.hbm %s3474_s3, 256 }
  0x94   : > { %p2466_p1 = scmp.ne.s32.totalorder %s3474_s3, %s2465_s23  ;;  %p2472_p12 = scmp.lt.u32.totalorder %s2465_s23, %s3474_s3 }
  0x96   : > { %p2468_p3 = pnand %p2466_p1, %p2913_p8 }
  0x98   : > { %p2469_p11 = pneg %p2468_p3 }
  0x9a   : > { %p2474_p13 = pnand %p2472_p12, %p2469_p11 }
  0x9c   : > { %2477 = shalt.err (!%p2474_p13)
}
  0x9d   : > { %s2478_s0 = scalar_lea.vmem %s474_s19, 256  ;;  %p2486_p7 = scmp.lt.s32.totalorder %s474_s19, %s474_s19 }
  0x9e   : > { %p2479_p0 = scmp.ne.s32.totalorder %s474_s19, %s2478_s0  ;;  %p2487_p9 = scmp.lt.s32.totalorder %s2478_s0, %s2478_s0 }
  0xa0   : > { %p2481_p2 = pnand %p2479_p0, %p2913_p8  ;;  %p2488_p5 = por %p2487_p9, %p2486_p7 }
  0xa2   : > { %p2482_p4 = pneg %p2481_p2 }
  0xa4   : > { %p2489_p10 = pnand %p2488_p5, %p2482_p4 }
  0xa6   : > { %2492 = shalt.err (!%p2489_p10)
}
  0xa7   : > { %2207 = dma.hbm_to_vmem [thread:$0]  (!%p2897_p6), %s3474_s3, 256, %s474_s19, [#allocation8], %s2742_s17, %s2742_s17, %s2743_s15  }
  0xa8   : > { %s2746_s11 = smov [#allocation12]   ;;  %s2747_s4 = smov [#allocation15]  }
  0xa9   : > { %s501_s27 = sshll.u32 %s2746_s11, 4  ;;  %s525_s21 = sshll.u32 %s2747_s4, 4  ;;  %s502_s27 = int_to_ptr.vmem [resolvable:$true] %s501_s27  ;;  %s526_s21 = int_to_ptr.vmem [resolvable:$true] %s525_s21 }
  0xaa   : > { %s3475_s6 = sld [smem:[#allocation37_spill]] }
  0xb0   : > { %s2493_s1 = scalar_lea.hbm %s3475_s6, 16 }
  0xb1   : > { %p2494_p1 = scmp.ne.s32.totalorder %s3475_s6, %s2493_s1  ;;  %p2500_p12 = scmp.lt.u32.totalorder %s2493_s1, %s3475_s6 }
  0xb3   : > { %p2496_p3 = pnand %p2494_p1, %p2913_p8 }
  0xb5   : > { %p2497_p11 = pneg %p2496_p3 }
  0xb7   : > { %p2502_p13 = pnand %p2500_p12, %p2497_p11 }
  0xb9   : > { %2505 = shalt.err (!%p2502_p13)
}
  0xba   : > { %s2506_s17 = scalar_lea.vmem %s502_s27, 16  ;;  %s2513_s15 = scalar_lea.vmem %s502_s27, 32 }
  0xbb   : > { %p2507_p0 = scmp.ne.s32.totalorder %s502_s27, %s2506_s17  ;;  %p2514_p7 = scmp.lt.s32.totalorder %s502_s27, %s502_s27 }
  0xbc   : > { %p2515_p9 = scmp.lt.s32.totalorder %s2513_s15, %s2506_s17 }
  0xbd   : > { %p2509_p2 = pnand %p2507_p0, %p2913_p8 }
  0xbe   : > { %p2516_p5 = por %p2515_p9, %p2514_p7 }
  0xbf   : > { %p2510_p4 = pneg %p2509_p2 }
  0xc1   : > { %p2517_p10 = pnand %p2516_p5, %p2510_p4 }
  0xc3   : > { %2520 = shalt.err (!%p2517_p10)
}
  0xc4   : > { %2213 = dma.hbm_to_vmem [thread:$0]  (!%p2897_p6), %s3475_s6, 16, %s502_s27, [#allocation11]  }
  0xc5   : > { %s3476_s8 = sld [smem:[#allocation39_spill]] }
  0xcb   : > { %s2521_s23 = scalar_lea.hbm %s3476_s8, 16 }
  0xcc   : > { %p2522_p1 = scmp.ne.s32.totalorder %s3476_s8, %s2521_s23  ;;  %p2528_p12 = scmp.lt.u32.totalorder %s2521_s23, %s3476_s8 }
  0xce   : > { %p2524_p3 = pnand %p2522_p1, %p2913_p8 }
  0xd0   : > { %p2525_p11 = pneg %p2524_p3 }
  0xd2   : > { %p2530_p13 = pnand %p2528_p12, %p2525_p11 }
  0xd4   : > { %2533 = shalt.err (!%p2530_p13)
}
  0xd5   : > { %s2534_s0 = scalar_lea.vmem %s526_s21, 16  ;;  %s2541_s27 = scalar_lea.vmem %s526_s21, 32 }
  0xd6   : > { %p2535_p0 = scmp.ne.s32.totalorder %s526_s21, %s2534_s0  ;;  %p2542_p7 = scmp.lt.s32.totalorder %s526_s21, %s526_s21 }
  0xd7   : > { %p2543_p9 = scmp.lt.s32.totalorder %s2541_s27, %s2534_s0 }
  0xd8   : > { %p2537_p2 = pnand %p2535_p0, %p2913_p8 }
  0xd9   : > { %p2544_p5 = por %p2543_p9, %p2542_p7 }
  0xda   : > { %p2538_p4 = pneg %p2537_p2 }
  0xdc   : > { %p2545_p10 = pnand %p2544_p5, %p2538_p4 }
  0xde   : > { %2548 = shalt.err (!%p2545_p10)
}
  0xdf   : > { %2219 = dma.hbm_to_vmem [thread:$0]  (!%p2897_p6), %s3476_s8, 16, %s526_s21, [#allocation14]  }
  0xe0   : > { %s2748_s15 = smov [#allocation18]   ;;  %s2749_s5 = smov [#allocation19]  }
  0xe1   : > { %s547_s19 = sshll.u32 %s2748_s15, 4  ;;  %s561_s11 = sshll.u32 %s2749_s5, 4  ;;  %s548_s19 = int_to_ptr.vmem [resolvable:$true] %s547_s19  ;;  %s562_s11 = int_to_ptr.vmem [resolvable:$true] %s561_s11 }
  0xe2   : > { %s2549_s14 = scalar_lea.hbm %s3428_s10, 16 }
  0xe3   : > { %p2550_p1 = scmp.ne.s32.totalorder %s3428_s10, %s2549_s14  ;;  %p2556_p12 = scmp.lt.u32.totalorder %s2549_s14, %s3428_s10 }
  0xe5   : > { %p2552_p3 = pnand %p2550_p1, %p2913_p8 }
  0xe7   : > { %p2553_p11 = pneg %p2552_p3 }
  0xe9   : > { %p2558_p13 = pnand %p2556_p12, %p2553_p11 }
  0xeb   : > { %2561 = shalt.err (!%p2558_p13)
}
  0xec   : > { %s2562_s21 = scalar_lea.vmem %s548_s19, 16  ;;  %s2569_s27 = scalar_lea.vmem %s548_s19, 32 }
  0xed   : > { %p2563_p0 = scmp.ne.s32.totalorder %s548_s19, %s2562_s21  ;;  %p2570_p7 = scmp.lt.s32.totalorder %s548_s19, %s548_s19 }
  0xee   : > { %p2571_p9 = scmp.lt.s32.totalorder %s2569_s27, %s2562_s21 }
  0xef   : > { %p2565_p2 = pnand %p2563_p0, %p2913_p8 }
  0xf0   : > { %p2572_p5 = por %p2571_p9, %p2570_p7 }
  0xf1   : > { %p2566_p4 = pneg %p2565_p2 }
  0xf3   : > { %p2573_p10 = pnand %p2572_p5, %p2566_p4 }
  0xf5   : > { %2576 = shalt.err (!%p2573_p10)
}
  0xf6   : > { %2225 = dma.hbm_to_vmem [thread:$0]  (!%p2897_p6), %s3428_s10, 16, %s548_s19, [#allocation17]  }
  0xf7   : > { %s2577_s4 = scalar_lea.hbm %s3430_s12, 16 }
  0xf8   : > { %p2578_p1 = scmp.ne.s32.totalorder %s3430_s12, %s2577_s4  ;;  %p2584_p12 = scmp.lt.u32.totalorder %s2577_s4, %s3430_s12 }
  0xfa   : > { %p2580_p3 = pnand %p2578_p1, %p2913_p8 }
  0xfc   : > { %p2581_p11 = pneg %p2580_p3 }
  0xfe   : > { %p2586_p13 = pnand %p2584_p12, %p2581_p11 }
 0x100   : > { %2589 = shalt.err (!%p2586_p13)
}
 0x101   : > { %s2590_s22 = scalar_lea.vmem %s562_s11, 16  ;;  %s2597_s19 = scalar_lea.vmem %s562_s11, 32 }
 0x102   : > { %p2591_p0 = scmp.ne.s32.totalorder %s562_s11, %s2590_s22  ;;  %p2598_p7 = scmp.lt.s32.totalorder %s562_s11, %s562_s11 }
 0x103   : > { %p2599_p9 = scmp.lt.s32.totalorder %s2597_s19, %s2590_s22 }
 0x104   : > { %p2593_p2 = pnand %p2591_p0, %p2913_p8 }
 0x105   : > { %p2600_p5 = por %p2599_p9, %p2598_p7 }
 0x106   : > { %p2594_p4 = pneg %p2593_p2 }
 0x108   : > { %p2601_p10 = pnand %p2600_p5, %p2594_p4 }
 0x10a   : > { %2604 = shalt.err (!%p2601_p10)
}
 0x10b   : > { %2228 = dma.hbm_to_vmem [thread:$0]  (!%p2897_p6), %s3430_s12, 16, %s562_s11, [#allocation20]  }
 0x10c   : > { %s1941_s13 = sadd.s32 4294967294, %s2737_s29   ;;  %s50_s27 = sadd.s32 1, %s2733_s28 }
 0x10d   : > { %s57_s20 = sadd.s32 1, %s2725_s26  ;;  %p52_p8 = scmp.ge.s32.totalorder %s50_s27, 2 }
 0x10e   : > { %p64_p1 = scmp.ne.s32.totalorder %s2725_s26, %s2721_s25  ;;  %p65_p3 = scmp.eq.s32.totalorder %s2737_s29, 0 }
 0x10f   : > { %p70_p11 = scmp.ne.s32.totalorder %s2721_s25, %s2717_s24  ;;  %s3507_s27 = smov (%p52_p8, %s50_s27), 0 }
 0x110   : > { %p3104_p12 = por %p65_p3, %p64_p1  ;;  %p3478_p13 = scmp.ne.s32.totalorder %s3466_s30, 0 }
 0x111   : > { %s54_s17 = ssub.s32 %s2733_s28, %s3507_s27  ;;  %s3480_s15 = sadd.s32 4294967295, %s2737_s29  }
 0x112   : > { %p3110_p6 = por %p3478_p13, %p70_p11  ;;  %p432_p0 = scmp.eq.s32.totalorder %s3480_s15, 1 }
 0x113   : > { %p55_p2 = scmp.eq.s32.totalorder %s54_s17, 0  ;;  %p438_p4 = scmp.eq.s32.totalorder %s1941_s13, 1 }
 0x114   : > { %p3118_p7 = por %p432_p0, %p64_p1  ;;  %p2246_p9 = scmp.lt.s32.totalorder %s2737_s29, 2 }
 0x115   : > { %s3124_s4 = scalar_select %p55_p2, %s2725_s26, %s57_s20  }
 0x116   : > { %s3481_s5 = scalar_select %p3118_p7, 1, 0 }
 0x117   : > { %p3126_p5 = por %p438_p4, %p70_p11  ;;  %s584_s14 = sand.u32 1, %s2725_s26  }
 0x118   : > { %s1953_s1 = sshll.u32 %s584_s14, 3  ;;  %s1954_s2 = sshll.u32 %s2733_s28, 7 }
 0x119   : > { %s3482_s23 = scalar_select %p3126_p5, 1, 0 }
 0x11a   : > { %s3483_s0 = sld [smem:[#allocation31_spill]]  ;;  %s588_s13 = scalar_lea.vmem [#allocation4], %s1953_s1 }
 0x11b   : > { %s595_s17 = sshll.u32 %s588_s13, 4  ;;  %p3141_p10 = pnand %p2246_p9, %p3104_p12  ;;  %s3137_s17 = int_to_ptr.vmem [resolvable:$true] %s595_s17 }
 0x11c   : > { %s585_s15 = scalar_lea.sflag [#allocation5], %s584_s14 }
 0x11d   : > { %p2607_p1 = pneg %p3141_p10 }
 0x120   : > { %s3135_s21 = scalar_lea.hbm %s3483_s0, %s1954_s2  ;;  %s2610_s22 = scalar_lea.hbm %s3483_s0, 256 }
 0x121   : > { %s2605_s3 = scalar_lea.hbm %s3135_s21, 128  ;;  %p2611_p12 = scmp.lt.u32.totalorder %s3135_s21, %s3483_s0 }
 0x122   : > { %p2606_p8 = scmp.ne.s32.totalorder %s3135_s21, %s2605_s3  ;;  %p2612_p13 = scmp.lt.u32.totalorder %s2610_s22, %s2605_s3 }
 0x123   : > { %p2614_p2 = scmp.lt.u32.totalorder %s2605_s3, %s3135_s21 }
 0x124   : > { %p2608_p3 = pnand %p2607_p1, %p2606_p8  ;;  %p2613_p0 = por %p2612_p13, %p2611_p12 }
 0x126   : > { %p2609_p11 = pneg %p2608_p3  ;;  %p2615_p4 = por %p2614_p2, %p2613_p0 }
 0x128   : > { %p2616_p9 = pnand %p2615_p4, %p2609_p11 }
 0x12a   : > { %2619 = shalt.err (!%p2616_p9)
}
 0x12b   : > { %s2620_s14 = scalar_lea.vmem %s3137_s17, 128  ;;  %s2750_s13 = smov [#allocation4]  }
 0x12c   : > { %p2621_p8 = scmp.ne.s32.totalorder %s3137_s17, %s2620_s14  ;;  %s2625_s1 = sshll.u32 %s2750_s13, 4  ;;  %s2626_s1 = int_to_ptr.vmem [resolvable:$false] %s2625_s1 }
 0x12d   : > { %s2627_s2 = scalar_lea.vmem %s2626_s1, 256  ;;  %p2628_p7 = scmp.lt.s32.totalorder %s3137_s17, %s2626_s1 }
 0x12e   : > { %p2623_p3 = pnand %p2621_p8, %p2607_p1  ;;  %p2629_p12 = scmp.lt.s32.totalorder %s2627_s2, %s2620_s14 }
 0x130   : > { %p2624_p5 = pneg %p2623_p3  ;;  %p2630_p13 = por %p2629_p12, %p2628_p7 }
 0x132   : > { %p2631_p0 = pnand %p2630_p13, %p2624_p5 }
 0x134   : > { %2634 = shalt.err (!%p2631_p0)
}
 0x135   : > { %2232 = dma.hbm_to_vmem [thread:$0]  (!%p3141_p10), %s3135_s21, 128, %s3137_s17, %s585_s15  }
 0x136   : > { %s3485_s3 = sld [smem:[#allocation30_spill]] }
 0x13c   : > { %p3486_p11 = scmp.ne.s32.totalorder %s3485_s3, 0 }
 0x13d   : > { %s3173_s22 = sand.u32 (!%p3486_p11), 1, %s2721_s25  }
 0x13e   : > { %604 = sbr.rel (%p3486_p11) target bundleno = 4018 (0xfb2), region = 88  ;;  %s1956_s18 = sshll.u32 (!%p3486_p11), %s3173_s22, 3 }
 0x13f   : > { %s607_s19 = scalar_lea.sflag (!%p3486_p11), [#allocation5], %s3173_s22  ;;  %s610_s14 = scalar_lea.vmem (!%p3486_p11), [#allocation4], %s1956_s18 }
 0x145   : > { %2688 = dma.done.wait (%p3110_p6), %s607_s19, 128  }
 0x146   : > { %2690 = vsyncadd (%p3110_p6), %s607_s19, 4294967168  ;;  %p3487_p7 = scmp.ne.s32.totalorder %s3466_s30, 0 }
 0x148   : > { %2692 = dma.done.wait (%p3487_p7), [#allocation8], 512  }
 0x149   : > { %2694 = vsyncadd (%p3487_p7), [#allocation8], 4294966784 }
 0x14a   : > { %2696 = dma.done.wait (%p3487_p7), [#allocation11], 32  }
 0x14b   : > { %2698 = vsyncadd (%p3487_p7), [#allocation11], 4294967264 }
 0x14c   : > { %2700 = dma.done.wait (%p3487_p7), [#allocation14], 272  }
 0x14d   : > { %2702 = vsyncadd (%p3487_p7), [#allocation14], 4294967024 }
 0x14e   : > { %2704 = dma.done.wait (%p3487_p7), [#allocation17], 32  }
 0x14f   : > { %2706 = vsyncadd (%p3487_p7), [#allocation17], 4294967264 }
 0x150   : > { %2708 = dma.done.wait (%p3487_p7), [#allocation20], 16  }
 0x151   : > { %2710 = vsyncadd (%p3487_p7), [#allocation20], 4294967280  ;;  %v2751_v0 = vmov 0.0   ;;  %vm2752_vm0 = vmmov 0   ;;  %v2321_v1 = vld [vmem:[#allocation9] sm:$0xff]   ;;  %v2322_v2 = vld [vmem:[#allocation9 + $0x8] sm:$0xff]  }
 0x152   : > { %2049 = vmatprep.subr.bf16.mxu0 %v2751_v0  ;;  %2053 = vmatprep.mubr.msk.bf16.mxu0 %vm2752_vm0, %v2751_v0  ;;  %v3209_v3 = vld [vmem:[%s610_s14] sm:$0xff]  ;;  %vm727_vm1 = vcmask 261120   ;;  %v2323_v4 = vld [vmem:[#allocation7] sm:$0xff]   ;;  %v2324_v6 = vld [vmem:[#allocation7 + $0x8] sm:$0xff]   ;;  %s3488_s21 = sld [smem:[#allocation36_spill]]  ;;  %vm772_vm2 = vcmask 257024  }
 0x153   : > { %2057 = vmatprep.subr.bf16.mxu1 %v2751_v0  ;;  %2061 = vmatprep.mubr.msk.bf16.mxu1 %vm2752_vm0, %v2751_v0  ;;  %v703_v5 = vpack.c.bf16 %v3209_v3, %v3209_v3  ;;  %v1967_v9 = vld [vmem:[#allocation10] ss:$0 sm:$0xff]  ;;  %vm913_vm3 = vcmask 64512   ;;  %s3489_s1 = sld [smem:[#allocation33_spill]]  ;;  %s2753_s2 = smov 120   ;;  %vm975_vm4 = vcmask 1043456  }
 0x154   : > { %2050 = vmatpush3.bf16.msra.mxu0 %v2321_v1  ;;  %v1971_v26 = vld [vmem:[#allocation12] ss:$0 sm:$0xff]  ;;  %s2754_s3 = smov 112   ;;  %v1140_v63 = vld [vmem:[#allocation13 + $0x4] sm:$0xf]  ;;  %s2755_s19 = smov 104  }
 0x155   : > { %2051 = vmatprep.subr.bf16.mxu0 %v2751_v0  ;;  %v1145_v1 = vsel %vm975_vm4, %v1140_v63, 0  ;;  %s3490_s11 = sld [smem:[#allocation40_spill]]  ;;  %s3492_s30 = sld [smem:[#allocation42_spill]] }
 0x156   : > { %s3493_s17 = sld [smem:[#allocation29_spill]]  ;;  %s3494_s13 = sld [smem:[#allocation43_spill]] }
 0x157   : > { %s3496_s7 = sld [smem:[#allocation45_spill]]  ;;  %s1759_s20 = scalar_lea.sflag [#allocation6], %s3173_s22 }
 0x158   : > { %2052 = vmatpush3.bf16.msra.mxu0 %v2322_v2  ;;  %v2325_v7 = vld [vmem:[%s3488_s21] sm:$0xff]   ;;  %v2326_v8 = vld [vmem:[%s3488_s21 + $0x8] sm:$0xff]   ;;  %p3497_p5 = scmp.ne.s32.totalorder %s3481_s5, 0 }
 0x159   : > { %2065 = vmatprep.subr.bf16.mxu0 %v2751_v0  ;;  %2058 = vmatpush3.bf16.msra.mxu1 %v2325_v7  ;;  %v1975_v18 = vld [vmem:[%s3489_s1] ss:$0 sm:$0xff]  ;;  %v1020_v7 = vld [vmem:[#allocation13] sm:$0xf]  ;;  %s3491_s1 = sld [smem:[#allocation41_spill]] }
 0x15a   : > { %2059 = vmatprep.subr.bf16.mxu1 %v2751_v0 }
 0x15b   : > { %2054 = vmatmul.mubr.msk.bf16.vlgmr.msra.gmra.mrb[0].mxu0 %vm727_vm1, %v703_v5 }
 0x15c   : > { %2066 = vmatpush3.bf16.msra.mxu0 %v2323_v4  ;;  %2069 = vmatprep.mubr.msk.bf16.mxu0 %vm2752_vm0, %v2751_v0  ;;  %s2007_s14 = sshll.u32 %s3493_s17, 7 }
 0x15d   : > { %2067 = vmatprep.subr.bf16.mxu0 %v2751_v0  ;;  %2060 = vmatpush3.bf16.msra.mxu1 %v2326_v8  ;;  %s3368_s8 = scalar_lea.hbm %s3496_s7, %s2007_s14 }
 0x15e   : > { %2073 = vmatprep.subr.bf16.mxu1 %v2751_v0 }
 0x160   : > { %2068 = vmatpush3.bf16.msra.mxu0 %v2324_v6  ;;  %2062 = vmatmul.mubr.msk.bf16.vlgmr.msra.gmra.mrb[0].mxu1 %vm727_vm1, %v703_v5 }
 0x161   : > { %2079 = vmatprep.subr.bf16.mxu0 %v2751_v0  ;;  %2075 = vmatprep.mubr.msk.bf16.mxu1 %vm2752_vm0, %v2751_v0 }
 0x163   : > { %2070 = vmatmul.mubr.msk.bf16.vlgmr.msra.gmra.mrb[4].mxu0 %vm727_vm1, %v703_v5 }
 0x164   : > { %2081 = vmatprep.mubr.msk.bf16.mxu0 %vm2752_vm0, %v2751_v0 }
 0x22e   : > { %v765_v10 = vpop.f32.mrb[0].mxu0 }
 0x22f   : > { %v766_v11 = vadd.f32 %v1967_v9, %v765_v10  ;;  %v2055_v12 = vpop.f32.mrb[1].mxu0  ;;  %v1191_v10 = vsel %vm975_vm4, %v1020_v7, 0 }
 0x230   : > { %v768_v13 = vpop.f32.mrb[2].mxu0 }
 0x231   : > { %v771_v14 = vpack.c.bf16 %v766_v11, %v766_v11  ;;  %v2056_v15 = vpop.f32.mrb[3].mxu0 }
 0x233   : > { %773 = vst.msk [vmem:[#allocation2] sm:$0xf] %vm772_vm2, %v771_v14  ;;  %v831_v27 = vpop.f32.mrb[0].mxu1 }
 0x234   : > { %v832_v28 = vadd.f32 %v1971_v26, %v831_v27  ;;  %v2063_v29 = vpop.f32.mrb[1].mxu1 }
 0x235   : > { %v834_v30 = vpop.f32.mrb[2].mxu1 }
 0x236   : > { %v904_v16 = vpop.f32.mrb[4].mxu0  ;;  %v837_v31 = vpack.c.bf16 %v832_v28, %v832_v28  ;;  %v2064_v32 = vpop.f32.mrb[3].mxu1 }
 0x237   : > { %v2071_v17 = vpop.f32.mrb[5].mxu0  ;;  %v905_v24 = vadd.f32 %v1975_v18, %v904_v16 }
 0x238   : > { %v907_v19 = vpop.f32.mrb[6].mxu0  ;;  %838 = vst.msk [vmem:[#allocation3] sm:$0xf] %vm772_vm2, %v837_v31 }
 0x239   : > { %v2072_v20 = vpop.f32.mrb[7].mxu0  ;;  %v3244_v25 = vpack.c.bf16 %v905_v24, %v905_v24 }
 0x23a   : > { %v911_v21 = vld [vmem:[#allocation2] sm:$0xf] }
 0x23b   : > { %v918_v22 = vsel %vm913_vm3, %v911_v21, 0  ;;  %v3239_v23 = vcombine.low %v911_v21, %v911_v21 }
 0x23c   : > { %2074 = vmatpush3.bf16.xpose.msra.mxu1 %v918_v22 }
 0x23d   : > { %1027 = vrot.lane.b32.xlu0 %v3239_v23, %s2753_s2  ;;  %2085 = vmatprep.subr.bf16.mxu1 %v2751_v0 }
 0x23f   : > { %v912_v33 = vld [vmem:[#allocation3] sm:$0xf] }
 0x240   : > { %v977_v34 = vsel %vm975_vm4, %v912_v33, 0  ;;  %v3263_v53 = vcombine.low %v912_v33, %v912_v33 }
 0x241   : > { %1022 = vrot.lane.b32.xlu0 %v3244_v25, %s2753_s2  ;;  %2080 = vmatpush3.bf16.msra.mxu0 %v977_v34 }
 0x242   : > { %2091 = vmatprep.subr.bf16.mxu0 %v2751_v0 }
 0x243   : > { %2076 = vmatmul.mubr.msk.bf16.vlgmr.msra.gmra.mrb[4].mxu1 %vm913_vm3, %v3244_v25 }
 0x244   : > { %2087 = vmatprep.mubr.msk.bf16.mxu1 %vm2752_vm0, %v2751_v0 }
 0x2af   : > { %v1028_v35 = vpop.permute.xlu0 %1027 }
 0x2b0   : > { %v1033_v36 = vsel %vm913_vm3, %v1028_v35, 0 }
 0x2b1   : > { %2086 = vmatpush3.bf16.xpose.msra.mxu1 %v1033_v36 }
 0x2b2   : > { %2097 = vmatprep.subr.bf16.mxu1 %v2751_v0 }
 0x2b3   : > { %v1023_v37 = vpop.permute.xlu0 %1022 }
 0x2b8   : > { %2088 = vmatmul.mubr.msk.bf16.vlgmr.msra.gmra.mrb[8].mxu1 %vm913_vm3, %v1023_v37 }
 0x2b9   : > { %2099 = vmatprep.mubr.msk.bf16.mxu1 %vm2752_vm0, %v2751_v0  ;;  %2098 = vmatpush3.bf16.msra.mxu1 %v1145_v1 }
 0x2ba   : > { %2109 = vmatprep.subr.bf16.mxu1 %v2751_v0 }
 0x316   : > { %v954_v38 = vpop.f32.mrb[4].mxu1 }
 0x317   : > { %v2077_v39 = vpop.f32.mrb[5].mxu1  ;;  %v960_v40 = vsel %vm913_vm3, %v954_v38, -inf }
 0x318   : > { %961 = vmax.xlane.f32.xlu1 %v960_v40  ;;  %v957_v41 = vpop.f32.mrb[6].mxu1 }
 0x319   : > { %v2078_v42 = vpop.f32.mrb[7].mxu1 }
 0x38b   : > { %v1069_v43 = vpop.f32.mrb[8].mxu1 }
 0x38c   : > { %v2089_v44 = vpop.f32.mrb[9].mxu1  ;;  %v1075_v45 = vsel %vm913_vm3, %v1069_v43, -inf }
 0x38d   : > { %1076 = vmax.xlane.f32.xlu1 %v1075_v45  ;;  %v1072_v46 = vpop.f32.mrb[10].mxu1 }
 0x38e   : > { %v2090_v47 = vpop.f32.mrb[11].mxu1 }
 0x3a5   : > { %v962_v48 = vpop.xlane.xlu1 %961 }
 0x3a6   : > { %v963_v49 = vsub.f32 %v954_v38, %v962_v48 }
 0x3a8   : > { %v964_v50 = vmul.f32 1.442695, %v963_v49 }
 0x3aa   : > { %2333 = vpow2.f32 %v964_v50 }
 0x3b4   : > { %v2334_v51 = vpop.eup %2333 }
 0x3b5   : > { %v966_v52 = vsel %vm913_vm3, %v2334_v51, 0.0 }
 0x3b6   : > { %967 = vadd.xlane.f32.xlu0 %v966_v52 }
 0x3cc   : > { %1295 = vrot.lane.b32.xlu0 %v3263_v53, %s2754_s3 }
 0x41a   : > { %v1077_v54 = vpop.xlane.xlu1 %1076 }
 0x41b   : > { %v1078_v55 = vsub.f32 %v1069_v43, %v1077_v54 }
 0x41d   : > { %v1079_v56 = vmul.f32 1.442695, %v1078_v55 }
 0x41f   : > { %2335 = vpow2.f32 %v1079_v56 }
 0x429   : > { %v2336_v57 = vpop.eup %2335 }
 0x42a   : > { %v1081_v58 = vsel %vm913_vm3, %v2336_v57, 0.0 }
 0x42b   : > { %1082 = vadd.xlane.f32.xlu1 %v1081_v58 }
 0x43c   : > { %1090 = vrot.lane.b32.xlu1 %v3263_v53, %s2753_s2 }
 0x440   : > { %1235 = vrot.lane.b32.xlu1 %v3239_v23, %s2754_s3 }
 0x443   : > { %v968_v59 = vpop.xlane.xlu0 %967 }
 0x444   : > { %2337 = vrcp.f32 %v968_v59  ;;  %1233 = vrot.lane.b32.xlu1 %v3244_v25, %s2754_s3 }
 0x447   : > { %v1296_v11 = vpop.permute.xlu0 %1295 }
 0x448   : > { %v1301_v16 = vsel %vm975_vm4, %v1296_v11, 0 }
 0x44e   : > { %v2338_v60 = vpop.eup %2337 }
 0x44f   : > { %v970_v61 = vmul.f32 %v2338_v60, %v2334_v51 }
 0x451   : > { %v971_v62 = vpack.c.bf16 %v970_v61, %v970_v61 }
 0x453   : > { %2082 = vmatmul.mubr.msk.bf16.vlgmr.msra.gmra.mrb[8].mxu0 %vm913_vm3, %v971_v62 }
 0x454   : > { %2093 = vmatprep.mubr.msk.bf16.mxu0 %vm2752_vm0, %v2751_v0 }
 0x4b8   : > { %v1083_v2 = vpop.xlane.xlu1 %1082 }
 0x4b9   : > { %2339 = vrcp.f32 %v1083_v2 }
 0x4bc   : > { %v1091_v4 = vpop.permute.xlu1 %1090 }
 0x4bd   : > { %v1096_v5 = vsel %vm975_vm4, %v1091_v4, 0 }
 0x4be   : > { %2092 = vmatpush3.bf16.msra.mxu0 %v1096_v5 }
 0x4bf   : > { %2103 = vmatprep.subr.bf16.mxu0 %v2751_v0 }
 0x4c0   : > { %v1236_v18 = vpop.permute.xlu1 %1235 }
 0x4c1   : > { %v1241_v24 = vsel %vm913_vm3, %v1236_v18, 0 }
 0x4c3   : > { %v2340_v6 = vpop.eup %2339 }
 0x4c4   : > { %v1085_v8 = vmul.f32 %v2340_v6, %v2336_v57  ;;  %v1234_v27 = vpop.permute.xlu1 %1233 }
 0x4c6   : > { %v1086_v9 = vpack.c.bf16 %v1085_v8, %v1085_v8  ;;  %v1505_v8 = vld [vmem:[#allocation13 + $0xc] sm:$0xf] }
 0x4c8   : > { %2094 = vmatmul.mubr.msk.bf16.vlgmr.msra.gmra.mrb[12].mxu0 %vm913_vm3, %v1086_v9  ;;  %v1510_v9 = vsel %vm975_vm4, %v1505_v8, 0 }
 0x4c9   : > { %2104 = vmatpush3.bf16.msra.mxu0 %v1191_v10  ;;  %2105 = vmatprep.mubr.msk.bf16.mxu0 %vm2752_vm0, %v2751_v0 }
 0x4ca   : > { %2115 = vmatprep.subr.bf16.mxu0 %v2751_v0 }
 0x526   : > { %v1013_v12 = vpop.f32.mrb[8].mxu0 }
 0x527   : > { %v1019_v13 = vpack.c.bf16 %v1013_v12, %v1013_v12  ;;  %v2083_v14 = vpop.f32.mrb[9].mxu0 }
 0x528   : > { %v1016_v15 = vpop.f32.mrb[10].mxu0 }
 0x529   : > { %v2084_v17 = vpop.f32.mrb[11].mxu0  ;;  %2106 = vmatmul.mubr.msk.bf16.vlgmr.msra.gmra.mrb[16].mxu0 %vm913_vm3, %v1019_v13 }
 0x52a   : > { %2116 = vmatpush3.bf16.msra.mxu0 %v1301_v16  ;;  %2117 = vmatprep.mubr.msk.bf16.mxu0 %vm2752_vm0, %v2751_v0 }
 0x52b   : > { %2127 = vmatprep.subr.bf16.mxu0 %v2751_v0 }
 0x59b   : > { %v1132_v19 = vpop.f32.mrb[12].mxu0 }
 0x59c   : > { %v1138_v20 = vpack.c.bf16 %v1132_v19, %v1132_v19  ;;  %v2095_v21 = vpop.f32.mrb[13].mxu0 }
 0x59d   : > { %v1135_v22 = vpop.f32.mrb[14].mxu0 }
 0x59e   : > { %v2096_v26 = vpop.f32.mrb[15].mxu0  ;;  %2100 = vmatmul.mubr.msk.bf16.vlgmr.msra.gmra.mrb[12].mxu1 %vm913_vm3, %v1138_v20 }
 0x59f   : > { %2110 = vmatpush3.bf16.xpose.msra.mxu1 %v1241_v24  ;;  %2111 = vmatprep.mubr.msk.bf16.mxu1 %vm2752_vm0, %v2751_v0 }
 0x5a0   : > { %2121 = vmatprep.subr.bf16.mxu1 %v2751_v0 }
 0x5a6   : > { %2112 = vmatmul.mubr.msk.bf16.vlgmr.msra.gmra.mrb[16].mxu1 %vm913_vm3, %v1234_v27 }
 0x5a7   : > { %2123 = vmatprep.mubr.msk.bf16.mxu1 %vm2752_vm0, %v2751_v0 }
 0x5fc   : > { %v1227_v28 = vpop.f32.mrb[16].mxu0 }
 0x5fd   : > { %v2107_v29 = vpop.f32.mrb[17].mxu0 }
 0x5fe   : > { %v1230_v30 = vpop.f32.mrb[18].mxu0 }
 0x5ff   : > { %v2108_v31 = vpop.f32.mrb[19].mxu0 }
 0x671   : > { %v1181_v32 = vpop.f32.mrb[12].mxu1 }
 0x672   : > { %v3296_v33 = vadd.f32 %v1227_v28, %v1181_v32  ;;  %v2101_v34 = vpop.f32.mrb[13].mxu1  ;;  %v1993_v28 = vld [vmem:[#allocation15] ss:$0 sm:$0xff] }
 0x673   : > { %v1184_v35 = vpop.f32.mrb[14].mxu1 }
 0x674   : > { %v2102_v36 = vpop.f32.mrb[15].mxu1 }
 0x679   : > { %v1277_v37 = vpop.f32.mrb[16].mxu1 }
 0x67a   : > { %v2113_v38 = vpop.f32.mrb[17].mxu1  ;;  %v1283_v39 = vsel %vm913_vm3, %v1277_v37, -inf }
 0x67b   : > { %1284 = vmax.xlane.f32.xlu1 %v1283_v39  ;;  %v1280_v40 = vpop.f32.mrb[18].mxu1 }
 0x67c   : > { %v2114_v41 = vpop.f32.mrb[19].mxu1 }
 0x67d   : > { %v2329_v41 = vld [vmem:[%s3490_s11] sm:$0xff]  }
 0x708   : > { %v1285_v42 = vpop.xlane.xlu1 %1284 }
 0x709   : > { %v1286_v43 = vsub.f32 %v1277_v37, %v1285_v42  ;;  %v2330_v42 = vld [vmem:[%s3490_s11 + $0x8] sm:$0xff]  }
 0x70b   : > { %v1287_v44 = vmul.f32 1.442695, %v1286_v43 }
 0x70d   : > { %2341 = vpow2.f32 %v1287_v44 }
 0x717   : > { %v2342_v45 = vpop.eup %2341 }
 0x718   : > { %v1289_v46 = vsel %vm913_vm3, %v2342_v45, 0.0 }
 0x719   : > { %1290 = vadd.xlane.f32.xlu0 %v1289_v46  ;;  %v1994_v46 = vld [vmem:[#allocation16] ss:$0 sm:$0xff] }
 0x72f   : > { %1395 = vrot.lane.b32.xlu0 %v3239_v23, %s2755_s19 }
 0x733   : > { %1393 = vrot.lane.b32.xlu0 %v3244_v25, %s2755_s19  ;;  %v1345_v25 = vld [vmem:[#allocation13 + $0x8] sm:$0xf] }
 0x734   : > { %v1350_v54 = vsel %vm975_vm4, %v1345_v25, 0  ;;  %v1996_v25 = vld [vmem:[#allocation19] ss:$0 sm:$0xff] }
 0x735   : > { %2122 = vmatpush3.bf16.msra.mxu1 %v1350_v54 }
 0x736   : > { %2133 = vmatprep.subr.bf16.mxu1 %v2751_v0 }
 0x7a6   : > { %v1291_v47 = vpop.xlane.xlu0 %1290 }
 0x7a7   : > { %2343 = vrcp.f32 %v1291_v47 }
 0x7aa   : > { %v1396_v50 = vpop.permute.xlu0 %1395 }
 0x7ab   : > { %v1401_v52 = vsel %vm913_vm3, %v1396_v50, 0 }
 0x7ae   : > { %v1394_v23 = vpop.permute.xlu0 %1393 }
 0x7b1   : > { %v2344_v48 = vpop.eup %2343 }
 0x7b2   : > { %v1293_v49 = vmul.f32 %v2344_v48, %v2342_v45  ;;  %v1995_v48 = vld [vmem:[#allocation18] ss:$0 sm:$0xff] }
 0x7b4   : > { %v1294_v51 = vpack.c.bf16 %v1293_v49, %v1293_v49 }
 0x7b6   : > { %2118 = vmatmul.mubr.msk.bf16.vlgmr.msra.gmra.mrb[20].mxu0 %vm913_vm3, %v1294_v51 }
 0x7b7   : > { %2128 = vmatpush3.bf16.xpose.msra.mxu0 %v1401_v52  ;;  %2129 = vmatprep.mubr.msk.bf16.mxu0 %vm2752_vm0, %v2751_v0  ;;  %v2331_v52 = vld [vmem:[%s3491_s1] sm:$0xff]  }
 0x7b8   : > { %2139 = vmatprep.subr.bf16.mxu0 %v2751_v0 }
 0x7be   : > { %2130 = vmatmul.mubr.msk.bf16.vlgmr.msra.gmra.mrb[24].mxu0 %vm913_vm3, %v1394_v23  ;;  %v2332_v23 = vld [vmem:[%s3491_s1 + $0x8] sm:$0xff]  }
 0x7bf   : > { %2141 = vmatprep.mubr.msk.bf16.mxu0 %vm2752_vm0, %v2751_v0  ;;  %2140 = vmatpush3.bf16.msra.mxu0 %v1510_v9 }
 0x7c0   : > { %2153 = vmatprep.subr.bf16.mxu0 %v2751_v0 }
 0x889   : > { %v1337_v55 = vpop.f32.mrb[20].mxu0 }
 0x88a   : > { %v1343_v56 = vpack.c.bf16 %v1337_v55, %v1337_v55  ;;  %v2119_v57 = vpop.f32.mrb[21].mxu0 }
 0x88b   : > { %v1340_v58 = vpop.f32.mrb[22].mxu0 }
 0x88c   : > { %v2120_v59 = vpop.f32.mrb[23].mxu0  ;;  %2124 = vmatmul.mubr.msk.bf16.vlgmr.msra.gmra.mrb[20].mxu1 %vm913_vm3, %v1343_v56 }
 0x88d   : > { %2135 = vmatprep.mubr.msk.bf16.mxu1 %vm2752_vm0, %v2751_v0 }
 0x891   : > { %v1437_v60 = vpop.f32.mrb[24].mxu0 }
 0x892   : > { %v2131_v61 = vpop.f32.mrb[25].mxu0  ;;  %v1443_v62 = vsel %vm913_vm3, %v1437_v60, -inf }
 0x893   : > { %1444 = vmax.xlane.f32.xlu0 %v1443_v62  ;;  %v1440_v63 = vpop.f32.mrb[26].mxu0  ;;  %v2000_v61 = vld [vmem:[%s3492_s30] ss:$0 sm:$0xff]  ;;  %s696_s30 = scalar_lea.vmem [#allocation21], %s1956_s18  ;;  %s2756_s18 = smov [#allocation21]  }
 0x894   : > { %v2132_v1 = vpop.f32.mrb[27].mxu0  ;;  %s1773_s0 = sshll.u32 %s696_s30, 4  ;;  %s2639_s17 = sshll.u32 %s2756_s18, 4  ;;  %s3370_s0 = int_to_ptr.vmem [resolvable:$true] %s1773_s0  ;;  %s2640_s17 = int_to_ptr.vmem [resolvable:$false] %s2639_s17 }
 0x895   : > { %s2635_s15 = scalar_lea.vmem %s3370_s0, 128  ;;  %p2642_p2 = scmp.lt.s32.totalorder %s3370_s0, %s2640_s17 }
 0x896   : > { %p2636_p6 = scmp.ne.s32.totalorder %s3370_s0, %s2635_s15 }
 0x898   : > { %p2637_p10 = pnand %p2636_p6, %p3497_p5 }
 0x89a   : > { %p2638_p1 = pneg %p2637_p10 }
 0x920   : > { %v1445_v2 = vpop.xlane.xlu0 %1444 }
 0x921   : > { %v1446_v4 = vsub.f32 %v1437_v60, %v1445_v2 }
 0x923   : > { %v1447_v5 = vmul.f32 1.442695, %v1446_v4 }
 0x925   : > { %2345 = vpow2.f32 %v1447_v5 }
 0x92f   : > { %v2346_v6 = vpop.eup %2345 }
 0x930   : > { %v1449_v7 = vsel %vm913_vm3, %v2346_v6, 0.0 }
 0x931   : > { %1450 = vadd.xlane.f32.xlu1 %v1449_v7 }
 0x942   : > { %1455 = vrot.lane.b32.xlu1 %v3263_v53, %s2755_s19  ;;  %s3495_s19 = sld [smem:[#allocation44_spill]] }
 0x95f   : > { %v1386_v10 = vpop.f32.mrb[20].mxu1 }
 0x960   : > { %v1392_v11 = vadd.f32 %v1386_v10, %v3296_v33  ;;  %v2125_v12 = vpop.f32.mrb[21].mxu1 }
 0x961   : > { %v1389_v13 = vpop.f32.mrb[22].mxu1 }
 0x962   : > { %v2126_v14 = vpop.f32.mrb[23].mxu1 }
 0x9be   : > { %v1451_v15 = vpop.xlane.xlu1 %1450 }
 0x9bf   : > { %2347 = vrcp.f32 %v1451_v15  ;;  %v2004_v15 = vld [vmem:[%s3494_s13] ss:$0 sm:$0xff]  ;;  %s2641_s13 = scalar_lea.vmem %s2640_s17, 256 }
 0x9c0   : > { %p2643_p4 = scmp.lt.s32.totalorder %s2641_s13, %s2635_s15 }
 0x9c2   : > { %v1456_v16 = vpop.permute.xlu1 %1455  ;;  %p2644_p9 = por %p2643_p4, %p2642_p2 }
 0x9c3   : > { %v1461_v17 = vsel %vm975_vm4, %v1456_v16, 0 }
 0x9c4   : > { %2134 = vmatpush3.bf16.msra.mxu1 %v1461_v17  ;;  %v2005_v17 = vld [vmem:[%s3495_s19] ss:$0 sm:$0xff]  ;;  %p2645_p8 = pnand %p2644_p9, %p2638_p1 }
 0x9c5   : > { %2145 = vmatprep.subr.bf16.mxu1 %v2751_v0 }
 0x9c9   : > { %v2348_v53 = vpop.eup %2347 }
 0x9ca   : > { %v1453_v18 = vmul.f32 %v2348_v53, %v2346_v6 }
 0x9cc   : > { %v1454_v19 = vpack.c.bf16 %v1453_v18, %v1453_v18 }
 0x9ce   : > { %2136 = vmatmul.mubr.msk.bf16.vlgmr.msra.gmra.mrb[24].mxu1 %vm913_vm3, %v1454_v19 }
 0x9cf   : > { %2149 = vmatprep.mubr.msk.bf16.mxu1 %vm2752_vm0, %v2751_v0  ;;  %2146 = vmatpush3.bf16.msra.mxu1 %v2329_v41 }
 0x9d0   : > { %2147 = vmatprep.subr.bf16.mxu1 %v2751_v0 }
 0x9d3   : > { %2148 = vmatpush3.bf16.msra.mxu1 %v2330_v42 }
 0xaa1   : > { %v1497_v20 = vpop.f32.mrb[24].mxu1 }
 0xaa2   : > { %v1503_v21 = vpack.c.bf16 %v1497_v20, %v1497_v20  ;;  %v2137_v22 = vpop.f32.mrb[25].mxu1 }
 0xaa3   : > { %v1500_v24 = vpop.f32.mrb[26].mxu1 }
 0xaa4   : > { %v2138_v26 = vpop.f32.mrb[27].mxu1  ;;  %2142 = vmatmul.mubr.msk.bf16.vlgmr.msra.gmra.mrb[28].mxu0 %vm913_vm3, %v1503_v21 }
 0xaa5   : > { %2157 = vmatprep.mubr.msk.bf16.mxu0 %vm2752_vm0, %v2751_v0  ;;  %2154 = vmatpush3.bf16.msra.mxu0 %v2331_v52 }
 0xaa6   : > { %2155 = vmatprep.subr.bf16.mxu0 %v2751_v0 }
 0xaa9   : > { %2156 = vmatpush3.bf16.msra.mxu0 %v2332_v23 }
 0xb77   : > { %v1546_v27 = vpop.f32.mrb[28].mxu0 }
 0xb78   : > { %v1552_v29 = vadd.f32 %v1546_v27, %v1392_v11  ;;  %v2143_v30 = vpop.f32.mrb[29].mxu0 }
 0xb79   : > { %v1549_v31 = vpop.f32.mrb[30].mxu0 }
 0xb7a   : > { %v1560_v32 = vadd.f32 %v1993_v28, %v1552_v29  ;;  %v2144_v33 = vpop.f32.mrb[31].mxu0 }
 0xb7c   : > { %v1561_v34 = vadd.f32 %v1560_v32, %v3209_v3 }
 0xb7e   : > { %v1564_v35 = vsel %vm727_vm1, %v1561_v34, 0.0 }
 0xb7f   : > { %1565 = vadd.xlane.f32.xlu1 %v1564_v35 }
 0xc0c   : > { %v1566_v36 = vpop.xlane.xlu1 %1565 }
 0xc0d   : > { %v1568_v37 = vmul.f32 0.03125, %v1566_v36 }
 0xc0f   : > { %v1569_v38 = vsub.f32 %v1561_v34, %v1568_v37 }
 0xc11   : > { %v1570_v39 = vmul.f32 %v1569_v38, %v1569_v38 }
 0xc13   : > { %v1571_v40 = vsel %vm727_vm1, %v1570_v39, 0.0 }
 0xc14   : > { %1572 = vadd.xlane.f32.xlu0 %v1571_v40 }
 0xca1   : > { %v1573_v3 = vpop.xlane.xlu0 %1572 }
 0xca2   : > { %v1574_v43 = vmul.f32 0.03125, %v1573_v3 }
 0xca4   : > { %v1575_v44 = vadd.f32 1e-05, %v1574_v43 }
 0xca6   : > { %2349 = vrsqrt.f32 %v1575_v44 }
 0xcb0   : > { %v2350_v45 = vpop.eup %2349 }
 0xcb1   : > { %v1577_v47 = vmul.f32 %v2350_v45, %v1569_v38 }
 0xcb3   : > { %v1584_v49 = vmul.f32 %v1994_v46, %v1577_v47 }
 0xcb5   : > { %v1591_v50 = vadd.f32 %v1995_v48, %v1584_v49 }
 0xcb7   : > { %v1592_v51 = vpack.c.bf16 %v1591_v50, %v1591_v50 }
 0xcb9   : > { %2150 = vmatmul.mubr.msk.bf16.vlgmr.msra.gmra.mrb[28].mxu1 %vm727_vm1, %v1592_v51 }
 0xd8c   : > { %v1653_v54 = vpop.f32.mrb[28].mxu1 }
 0xd8d   : > { %v1654_v55 = vadd.f32 %v1996_v25, %v1653_v54  ;;  %v2151_v56 = vpop.f32.mrb[29].mxu1 }
 0xd8e   : > { %v1656_v57 = vpop.f32.mrb[30].mxu1 }
 0xd8f   : > { %v1659_v58 = vmax.f32 %v1654_v55, 0.0  ;;  %v2152_v59 = vpop.f32.mrb[31].mxu1 }
 0xd91   : > { %v1660_v60 = vpack.c.bf16 %v1659_v58, %v1659_v58 }
 0xd93   : > { %2158 = vmatmul.mubr.msk.bf16.vlgmr.msra.gmra.mrb[32].mxu0 %vm727_vm1, %v1660_v60 }
 0xe66   : > { %v1721_v0 = vpop.f32.mrb[32].mxu0 }
 0xe67   : > { %v1722_v62 = vadd.f32 %v2000_v61, %v1721_v0  ;;  %v2159_v63 = vpop.f32.mrb[33].mxu0 }
 0xe68   : > { %v1724_v1 = vpop.f32.mrb[34].mxu0 }
 0xe69   : > { %v2160_v2 = vpop.f32.mrb[35].mxu0  ;;  %v1727_v4 = vadd.f32 %v1722_v62, %v1591_v50 }
 0xe6b   : > { %v1730_v5 = vsel %vm727_vm1, %v1727_v4, 0.0 }
 0xe6c   : > { %1731 = vadd.xlane.f32.xlu0 %v1730_v5 }
 0xef9   : > { %v1732_v6 = vpop.xlane.xlu0 %1731 }
 0xefa   : > { %v1733_v7 = vmul.f32 0.03125, %v1732_v6 }
 0xefc   : > { %v1734_v8 = vsub.f32 %v1727_v4, %v1733_v7 }
 0xefe   : > { %v1735_v9 = vmul.f32 %v1734_v8, %v1734_v8 }
 0xf00   : > { %v1736_v10 = vsel %vm727_vm1, %v1735_v9, 0.0 }
 0xf01   : > { %1737 = vadd.xlane.f32.xlu0 %v1736_v10 }
 0xf8e   : > { %v1738_v11 = vpop.xlane.xlu0 %1737 }
 0xf8f   : > { %v1739_v12 = vmul.f32 0.03125, %v1738_v11 }
 0xf91   : > { %v1740_v13 = vadd.f32 1e-05, %v1739_v12 }
 0xf93   : > { %2351 = vrsqrt.f32 %v1740_v13 }
 0xf9d   : > { %v2352_v14 = vpop.eup %2351 }
 0xf9e   : > { %v1742_v16 = vmul.f32 %v2352_v14, %v1734_v8 }
 0xfa0   : > { %v1749_v53 = vmul.f32 %v2004_v15, %v1742_v16 }
 0xfa2   : > { %v1756_v18 = vadd.f32 %v2005_v17, %v1749_v53 }
 0xfa4   : > { %1757 = vst.msk [vmem:[%s696_s30] sm:$0xff] %vm727_vm1, %v1756_v18 }
 0xfa5   : > { %2648 = shalt.err (!%p2645_p8)
}
 0xfa6   : > { %s2649_s6 = scalar_lea.hbm %s3368_s8, 128  ;;  %s2653_s2 = scalar_lea.hbm %s3496_s7, 256 }
 0xfa7   : > { %p2650_p3 = scmp.ne.s32.totalorder %s3368_s8, %s2649_s6  ;;  %p2654_p0 = scmp.lt.u32.totalorder %s3368_s8, %s3496_s7 }
 0xfa8   : > { %p2655_p11 = scmp.lt.u32.totalorder %s2653_s2, %s2649_s6  ;;  %p2657_p6 = scmp.lt.u32.totalorder %s2649_s6, %s3368_s8 }
 0xfa9   : > { %p2651_p12 = pnand %p2650_p3, %p3497_p5 }
 0xfaa   : > { %p2656_p7 = por %p2655_p11, %p2654_p0 }
 0xfab   : > { %p2652_p13 = pneg %p2651_p12 }
 0xfac   : > { %p2658_p10 = por %p2657_p6, %p2656_p7 }
 0xfae   : > { %p2659_p1 = pnand %p2658_p10, %p2652_p13 }
 0xfb0   : > { %2662 = shalt.err (!%p2659_p1)
}
 0xfb1   : > { %2199 = dma.vmem_to_hbm [thread:$0]  (%p3497_p5), %s3370_s0, 128, %s3368_s8, %s1759_s20  }
 0xfb2 PF: > { %s1785_s14 = sand.u32 1, %s2717_s24   ;;  %p3498_p2 = scmp.ne.s32.totalorder %s3482_s23, 0 }
 0xfb3   : > { %p3499_p4 = scmp.ge.s32.totalorder %s2737_s29, 2  ;;  %s1786_s30 = scalar_lea.sflag [#allocation6], %s1785_s14 }
 0xfb5   : > { %p2234_p9 = pnand %p3499_p4, %p3498_p2 }
 0xfb7   : > { %2712 = dma.done.wait (!%p2234_p9), %s1786_s30, 128  }
 0xfb8   : > { %2714 = vsyncadd (!%p2234_p9), %s1786_s30, 4294967168  ;;  %s38_s29 = sadd.s32 1, %s2737_s29   ;;  %s3500_s5 = smov %s3507_s27 }
 0xfb9   : > { %p35_p8 = scmp.ge.s32.totalorder %s38_s29, 4   ;;  %s3501_s24 = smov %s2721_s25 }
 0xfba   : > { %s3502_s25 = smov %s2725_s26  ;;  %s3503_s26 = smov %s3124_s4 }
 0xfbb   : > { %s3504_s27 = smov %s2733_s28  ;;  %s3505_s28 = smov %s3500_s5 }
 0xfbc   :  { %37 = sbr.rel (!%p35_p8) target bundleno = 27 (0x1b), region = 177 }
 0xfc3   :  { %1791 = vsyncpa [#allocation5], 1 }
 0xfc4   :  { %1793 = vsyncpa [#allocation5 + $0x1], 1 }
 0xfc5   :  { %1794 = vsyncpa [#allocation8], 1 }
 0xfc6   :  { %1795 = vsyncpa [#allocation11], 1 }
 0xfc7   :  { %1796 = vsyncpa [#allocation14], 1 }
 0xfc8   :  { %1797 = vsyncpa [#allocation17], 1 }
 0xfc9   :  { %1798 = vsyncpa [#allocation20], 1 }
 0xfca   :  { %1799 = vsyncpa [#allocation6], 1 }
 0xfcb   :  { %1801 = vsyncpa [#allocation6 + $0x1], 1 }

// kernel: tpu_custom_call.1
= control target key start
LH: loop header
LB: loop body
LE: loop exit
PB: predicated region body
PF: predicated region fallthrough
CT: control target
= control target key end

     0   :  { %s3418_s0 = inlined_call_operand.hbm [shape: f32[2,8,32], index: 0, kind: input, shape index: {}]   ;;  %s3419_s1 = inlined_call_operand.hbm [shape: bf16[32,32], index: 1, kind: input, shape index: {}]   ;;  %s3420_s2 = inlined_call_operand.vmem [shape: f32[1,32], index: 2, kind: input, shape index: {}]   ;;  %s3421_s3 = inlined_call_operand.hbm [shape: bf16[32,32], index: 3, kind: input, shape index: {}]   ;;  %s3422_s4 = inlined_call_operand.hbm [shape: f32[1,32], index: 4, kind: input, shape index: {}]   ;;  %s3423_s5 = inlined_call_operand.vmem [shape: bf16[32,32], index: 5, kind: input, shape index: {}]   ;;  %s3424_s6 = inlined_call_operand.hbm [shape: f32[1,32], index: 6, kind: input, shape index: {}]   ;;  %s3425_s7 = inlined_call_operand.hbm [shape: bf16[4,8,32], index: 7, kind: input, shape index: {}]   ;;  %s3426_s8 = inlined_call_operand.hbm [shape: f32[1,32], index: 8, kind: input, shape index: {}]   ;;  %s3427_s9 = inlined_call_operand.hbm [shape: f32[1,32], index: 9, kind: input, shape index: {}]   ;;  %s3428_s10 = inlined_call_operand.hbm [shape: f32[1,32], index: 10, kind: input, shape index: {}]   ;;  %s3429_s11 = inlined_call_operand.vmem [shape: bf16[32,32], index: 11, kind: input, shape index: {}]   ;;  %s3430_s12 = inlined_call_operand.hbm [shape: f32[1,32], index: 12, kind: input, shape index: {}]   ;;  %s3431_s13 = inlined_call_operand.vmem [shape: bf16[32,32], index: 13, kind: input, shape index: {}]   ;;  %s3432_s14 = inlined_call_operand.vmem [shape: f32[1,32], index: 14, kind: input, shape index: {}]   ;;  %s3433_s15 = inlined_call_operand.vmem [shape: f32[1,32], index: 15, kind: input, shape index: {}]   ;;  %s3434_s16 = inlined_call_operand.vmem [shape: f32[1,32], index: 16, kind: input, shape index: {}]   ;;  %s3435_s17 = inlined_call_operand.hbm [shape: f32[2,8,32], index: 17, kind: output, shape index: {}]  }
   0x1   :  { %3450 = sst [smem:[#allocation31_spill]] %s3418_s0 }
   0x2   :  { %3451 = sst [smem:[#allocation32_spill]] %s3419_s1 }
   0x3   :  { %3452 = sst [smem:[#allocation33_spill]] %s3420_s2 }
   0x4   :  { %3453 = sst [smem:[#allocation34_spill]] %s3421_s3 }
   0x5   :  { %3454 = sst [smem:[#allocation35_spill]] %s3422_s4 }
   0x6   :  { %3455 = sst [smem:[#allocation36_spill]] %s3423_s5 }
   0x7   :  { %3456 = sst [smem:[#allocation37_spill]] %s3424_s6 }
   0x8   :  { %3457 = sst [smem:[#allocation38_spill]] %s3425_s7 }
   0x9   :  { %3458 = sst [smem:[#allocation39_spill]] %s3426_s8 }
   0xa   :  { %3459 = sst [smem:[#allocation40_spill]] %s3429_s11 }
   0xb   :  { %3460 = sst [smem:[#allocation41_spill]] %s3431_s13 }
   0xc   :  { %3461 = sst [smem:[#allocation42_spill]] %s3432_s14 }
   0xd   :  { %3462 = sst [smem:[#allocation43_spill]] %s3433_s15 }
   0xe   :  { %3463 = sst [smem:[#allocation44_spill]] %s3434_s16 }
   0xf   :  { %3464 = sst [smem:[#allocation45_spill]] %s3435_s17 }
  0x10   :  { %22 = vsyncpa [#allocation5], 0 }
  0x11   :  { %24 = vsyncpa [#allocation5 + $0x1], 0 }
  0x12   :  { %25 = vsyncpa [#allocation8], 0 }
  0x13   :  { %26 = vsyncpa [#allocation11], 0 }
  0x14   :  { %27 = vsyncpa [#allocation14], 0 }
  0x15   :  { %28 = vsyncpa [#allocation17], 0 }
  0x16   :  { %29 = vsyncpa [#allocation20], 0 }
  0x17   :  { %30 = vsyncpa [#allocation6], 0 }
  0x18   :  { %32 = vsyncpa [#allocation6 + $0x1], 0  ;;  %s2847_s24 = smov 0   ;;  %s2849_s25 = smov 0  }
  0x19   :  { %s2851_s26 = smov 0   ;;  %s2853_s27 = smov 0  }
  0x1a   :  { %s2855_s28 = smov 0   ;;  %s2857_s29 = smov 0  }
  0x1b LB: > { %3465 = sst [smem:[#allocation29_spill]] %s2729_s27  ;;  %s3438_s0 = sadd.s32 4294967295, %s2737_s29   ;;  %s2737_s29 = sphi %s2857_s29, %s38_s29   ;;  %s2733_s28 = sphi %s2855_s28, %s3505_s28   ;;  %s2729_s27 = sphi %s2853_s27, %s3504_s27   ;;  %s2725_s26 = sphi %s2851_s26, %s3503_s26   ;;  %s2721_s25 = sphi %s2849_s25, %s3502_s25   ;;  %s2717_s24 = sphi %s2847_s24, %s3501_s24  }
  0x1c   : > { %p1942_p0 = scmp.ge.s32.totalorder %s2737_s29, 1  ;;  %p2881_p1 = scmp.eq.s32.totalorder %s3438_s0, 0 }
  0x1d   : > { %p445_p2 = scmp.lt.s32.totalorder %s2737_s29, 3  ;;  %s2739_s19 = smov [#allocation7]  }
  0x1e   : > { %s3466_s30 = scalar_select %p2881_p1, 1, 0 }
  0x1f   : > { %p2886_p3 = pnand %p1942_p0, %p445_p2  ;;  %s457_s1 = sshll.u32 %s2739_s19, 4  ;;  %s2890_s1 = int_to_ptr.vmem [resolvable:$true] %s457_s1 }
  0x20   : > { %s2740_s21 = smov [#allocation10]   ;;  %s2741_s23 = smov [#allocation13]  }
  0x21   : > { %s3467_s18 = scalar_select %p2886_p3, 1, 0 }
  0x22   : > { %p2201_p4 = pneg %p2886_p3  ;;  %s487_s22 = sshll.u32 %s2740_s21, 4  ;;  %s2901_s22 = int_to_ptr.vmem [resolvable:$true] %s487_s22 }
  0x23   : > { %3468 = sst [smem:[#allocation30_spill]] %s3467_s18  ;;  %s2903_s0 = sshll.u32 %s2741_s23, 4  ;;  %s512_s0 = int_to_ptr.vmem [resolvable:$true] %s2903_s0 }
  0x24   : > { %p2897_p6 = pnand %p2201_p4, %p2881_p1  ;;  %s3470_s16 = sld [smem:[#allocation32_spill]] }
  0x26   : > { %p2913_p8 = pneg %p2897_p6 }
  0x2a   : > { %s2353_s15 = scalar_lea.hbm %s3470_s16, 256 }
  0x2b   : > { %p2354_p7 = scmp.ne.s32.totalorder %s3470_s16, %s2353_s15  ;;  %p2360_p11 = scmp.lt.u32.totalorder %s2353_s15, %s3470_s16 }
  0x2d   : > { %p2356_p9 = pnand %p2913_p8, %p2354_p7 }
  0x2f   : > { %p2357_p10 = pneg %p2356_p9 }
  0x31   : > { %p2362_p12 = pnand %p2360_p11, %p2357_p10 }
  0x33   : > { %2365 = shalt.err (!%p2362_p12)
}
  0x34   : > { %s2366_s14 = scalar_lea.vmem %s2890_s1, 256  ;;  %p2374_p4 = scmp.lt.s32.totalorder %s2890_s1, %s2890_s1 }
  0x35   : > { %p2367_p13 = scmp.ne.s32.totalorder %s2890_s1, %s2366_s14  ;;  %p2375_p5 = scmp.lt.s32.totalorder %s2366_s14, %s2366_s14 }
  0x37   : > { %p2369_p0 = pnand %p2367_p13, %p2913_p8  ;;  %p2376_p7 = por %p2375_p5, %p2374_p4 }
  0x39   : > { %p2370_p2 = pneg %p2369_p0 }
  0x3b   : > { %p2377_p9 = pnand %p2376_p7, %p2370_p2 }
  0x3d   : > { %2380 = shalt.err (!%p2377_p9)
}
  0x3e   : > { %s2742_s17 = smov 64   ;;  %s2743_s15 = smov 4  }
  0x3f   : > { %2204 = dma.hbm_to_vmem [thread:$0]  (!%p2897_p6), %s3470_s16, 256, %s2890_s1, [#allocation8], %s2742_s17, %s2742_s17, %s2743_s15  }
  0x40   : > { %s3472_s4 = sld [smem:[#allocation35_spill]] }
  0x46   : > { %s2381_s14 = scalar_lea.hbm %s3472_s4, 16 }
  0x47   : > { %p2382_p5 = scmp.ne.s32.totalorder %s3472_s4, %s2381_s14  ;;  %p2388_p12 = scmp.lt.u32.totalorder %s2381_s14, %s3472_s4 }
  0x49   : > { %p2384_p10 = pnand %p2382_p5, %p2913_p8 }
  0x4b   : > { %p2385_p11 = pneg %p2384_p10 }
  0x4d   : > { %p2390_p13 = pnand %p2388_p12, %p2385_p11 }
  0x4f   : > { %2393 = shalt.err (!%p2390_p13)
}
  0x50   : > { %s2394_s1 = scalar_lea.vmem %s2901_s22, 16  ;;  %s2401_s2 = scalar_lea.vmem %s2901_s22, 32 }
  0x51   : > { %p2395_p0 = scmp.ne.s32.totalorder %s2901_s22, %s2394_s1  ;;  %p2402_p7 = scmp.lt.s32.totalorder %s2901_s22, %s2901_s22 }
  0x52   : > { %p2403_p9 = scmp.lt.s32.totalorder %s2401_s2, %s2394_s1 }
  0x53   : > { %p2397_p2 = pnand %p2395_p0, %p2913_p8 }
  0x54   : > { %p2404_p5 = por %p2403_p9, %p2402_p7 }
  0x55   : > { %p2398_p4 = pneg %p2397_p2 }
  0x57   : > { %p2405_p10 = pnand %p2404_p5, %p2398_p4 }
  0x59   : > { %2408 = shalt.err (!%p2405_p10)
}
  0x5a   : > { %2210 = dma.hbm_to_vmem [thread:$0]  (!%p2897_p6), %s3472_s4, 16, %s2901_s22, [#allocation11]  }
  0x5b   : > { %s3473_s7 = sld [smem:[#allocation38_spill]] }
  0x61   : > { %s2409_s19 = scalar_lea.hbm %s3473_s7, 256 }
  0x62   : > { %p2410_p11 = scmp.ne.s32.totalorder %s3473_s7, %s2409_s19  ;;  %p2416_p0 = scmp.lt.u32.totalorder %s2409_s19, %s3473_s7 }
  0x64   : > { %p2412_p12 = pnand %p2410_p11, %p2913_p8 }
  0x66   : > { %p2413_p13 = pneg %p2412_p12 }
  0x68   : > { %p2418_p2 = pnand %p2416_p0, %p2413_p13 }
  0x6a   : > { %2421 = shalt.err (!%p2418_p2)
}
  0x6b   : > { %s2422_s2 = scalar_lea.vmem %s512_s0, 256  ;;  %p2430_p5 = scmp.lt.s32.totalorder %s512_s0, %s512_s0 }
  0x6c   : > { %p2423_p4 = scmp.ne.s32.totalorder %s512_s0, %s2422_s2  ;;  %p2431_p10 = scmp.lt.s32.totalorder %s2422_s2, %s2422_s2 }
  0x6e   : > { %p2425_p7 = pnand %p2423_p4, %p2913_p8  ;;  %p2432_p3 = por %p2431_p10, %p2430_p5 }
  0x70   : > { %p2426_p9 = pneg %p2425_p7 }
  0x72   : > { %p2433_p1 = pnand %p2432_p3, %p2426_p9 }
  0x74   : > { %2436 = shalt.err (!%p2433_p1)
}
  0x75   : > { %2216 = dma.hbm_to_vmem [thread:$0]  (!%p2897_p6), %s3473_s7, 256, %s512_s0, [#allocation14], %s2742_s17, %s2742_s17, %s2743_s15  }
  0x76   : > { %s2744_s11 = smov [#allocation16]   ;;  %s2745_s27 = smov [#allocation9]  }
  0x77   : > { %s536_s18 = sshll.u32 %s2744_s11, 4  ;;  %s473_s19 = sshll.u32 %s2745_s27, 4  ;;  %s537_s18 = int_to_ptr.vmem [resolvable:$true] %s536_s18  ;;  %s474_s19 = int_to_ptr.vmem [resolvable:$true] %s473_s19 }
  0x78   : > { %s2437_s14 = scalar_lea.hbm %s3427_s9, 16 }
  0x79   : > { %p2438_p1 = scmp.ne.s32.totalorder %s3427_s9, %s2437_s14  ;;  %p2444_p12 = scmp.lt.u32.totalorder %s2437_s14, %s3427_s9 }
  0x7b   : > { %p2440_p3 = pnand %p2438_p1, %p2913_p8 }
  0x7d   : > { %p2441_p11 = pneg %p2440_p3 }
  0x7f   : > { %p2446_p13 = pnand %p2444_p12, %p2441_p11 }
  0x81   : > { %2449 = shalt.err (!%p2446_p13)
}
  0x82   : > { %s2450_s0 = scalar_lea.vmem %s537_s18, 16  ;;  %s2457_s5 = scalar_lea.vmem %s537_s18, 32 }
  0x83   : > { %p2451_p0 = scmp.ne.s32.totalorder %s537_s18, %s2450_s0  ;;  %p2458_p7 = scmp.lt.s32.totalorder %s537_s18, %s537_s18 }
  0x84   : > { %p2459_p9 = scmp.lt.s32.totalorder %s2457_s5, %s2450_s0 }
  0x85   : > { %p2453_p2 = pnand %p2451_p0, %p2913_p8 }
  0x86   : > { %p2460_p5 = por %p2459_p9, %p2458_p7 }
  0x87   : > { %p2454_p4 = pneg %p2453_p2 }
  0x89   : > { %p2461_p10 = pnand %p2460_p5, %p2454_p4 }
  0x8b   : > { %2464 = shalt.err (!%p2461_p10)
}
  0x8c   : > { %2222 = dma.hbm_to_vmem [thread:$0]  (!%p2897_p6), %s3427_s9, 16, %s537_s18, [#allocation17]  }
  0x8d   : > { %s3474_s3 = sld [smem:[#allocation34_spill]] }
  0x93   : > { %s2465_s23 = scalar_lea.hbm %s3474_s3, 256 }
  0x94   : > { %p2466_p1 = scmp.ne.s32.totalorder %s3474_s3, %s2465_s23  ;;  %p2472_p12 = scmp.lt.u32.totalorder %s2465_s23, %s3474_s3 }
  0x96   : > { %p2468_p3 = pnand %p2466_p1, %p2913_p8 }
  0x98   : > { %p2469_p11 = pneg %p2468_p3 }
  0x9a   : > { %p2474_p13 = pnand %p2472_p12, %p2469_p11 }
  0x9c   : > { %2477 = shalt.err (!%p2474_p13)
}
  0x9d   : > { %s2478_s0 = scalar_lea.vmem %s474_s19, 256  ;;  %p2486_p7 = scmp.lt.s32.totalorder %s474_s19, %s474_s19 }
  0x9e   : > { %p2479_p0 = scmp.ne.s32.totalorder %s474_s19, %s2478_s0  ;;  %p2487_p9 = scmp.lt.s32.totalorder %s2478_s0, %s2478_s0 }
  0xa0   : > { %p2481_p2 = pnand %p2479_p0, %p2913_p8  ;;  %p2488_p5 = por %p2487_p9, %p2486_p7 }
  0xa2   : > { %p2482_p4 = pneg %p2481_p2 }
  0xa4   : > { %p2489_p10 = pnand %p2488_p5, %p2482_p4 }
  0xa6   : > { %2492 = shalt.err (!%p2489_p10)
}
  0xa7   : > { %2207 = dma.hbm_to_vmem [thread:$0]  (!%p2897_p6), %s3474_s3, 256, %s474_s19, [#allocation8], %s2742_s17, %s2742_s17, %s2743_s15  }
  0xa8   : > { %s2746_s11 = smov [#allocation12]   ;;  %s2747_s4 = smov [#allocation15]  }
  0xa9   : > { %s501_s27 = sshll.u32 %s2746_s11, 4  ;;  %s525_s21 = sshll.u32 %s2747_s4, 4  ;;  %s502_s27 = int_to_ptr.vmem [resolvable:$true] %s501_s27  ;;  %s526_s21 = int_to_ptr.vmem [resolvable:$true] %s525_s21 }
  0xaa   : > { %s3475_s6 = sld [smem:[#allocation37_spill]] }
  0xb0   : > { %s2493_s1 = scalar_lea.hbm %s3475_s6, 16 }
  0xb1   : > { %p2494_p1 = scmp.ne.s32.totalorder %s3475_s6, %s2493_s1  ;;  %p2500_p12 = scmp.lt.u32.totalorder %s2493_s1, %s3475_s6 }
  0xb3   : > { %p2496_p3 = pnand %p2494_p1, %p2913_p8 }
  0xb5   : > { %p2497_p11 = pneg %p2496_p3 }
  0xb7   : > { %p2502_p13 = pnand %p2500_p12, %p2497_p11 }
  0xb9   : > { %2505 = shalt.err (!%p2502_p13)
}
  0xba   : > { %s2506_s17 = scalar_lea.vmem %s502_s27, 16  ;;  %s2513_s15 = scalar_lea.vmem %s502_s27, 32 }
  0xbb   : > { %p2507_p0 = scmp.ne.s32.totalorder %s502_s27, %s2506_s17  ;;  %p2514_p7 = scmp.lt.s32.totalorder %s502_s27, %s502_s27 }
  0xbc   : > { %p2515_p9 = scmp.lt.s32.totalorder %s2513_s15, %s2506_s17 }
  0xbd   : > { %p2509_p2 = pnand %p2507_p0, %p2913_p8 }
  0xbe   : > { %p2516_p5 = por %p2515_p9, %p2514_p7 }
  0xbf   : > { %p2510_p4 = pneg %p2509_p2 }
  0xc1   : > { %p2517_p10 = pnand %p2516_p5, %p2510_p4 }
  0xc3   : > { %2520 = shalt.err (!%p2517_p10)
}
  0xc4   : > { %2213 = dma.hbm_to_vmem [thread:$0]  (!%p2897_p6), %s3475_s6, 16, %s502_s27, [#allocation11]  }
  0xc5   : > { %s3476_s8 = sld [smem:[#allocation39_spill]] }
  0xcb   : > { %s2521_s23 = scalar_lea.hbm %s3476_s8, 16 }
  0xcc   : > { %p2522_p1 = scmp.ne.s32.totalorder %s3476_s8, %s2521_s23  ;;  %p2528_p12 = scmp.lt.u32.totalorder %s2521_s23, %s3476_s8 }
  0xce   : > { %p2524_p3 = pnand %p2522_p1, %p2913_p8 }
  0xd0   : > { %p2525_p11 = pneg %p2524_p3 }
  0xd2   : > { %p2530_p13 = pnand %p2528_p12, %p2525_p11 }
  0xd4   : > { %2533 = shalt.err (!%p2530_p13)
}
  0xd5   : > { %s2534_s0 = scalar_lea.vmem %s526_s21, 16  ;;  %s2541_s27 = scalar_lea.vmem %s526_s21, 32 }
  0xd6   : > { %p2535_p0 = scmp.ne.s32.totalorder %s526_s21, %s2534_s0  ;;  %p2542_p7 = scmp.lt.s32.totalorder %s526_s21, %s526_s21 }
  0xd7   : > { %p2543_p9 = scmp.lt.s32.totalorder %s2541_s27, %s2534_s0 }
  0xd8   : > { %p2537_p2 = pnand %p2535_p0, %p2913_p8 }
  0xd9   : > { %p2544_p5 = por %p2543_p9, %p2542_p7 }
  0xda   : > { %p2538_p4 = pneg %p2537_p2 }
  0xdc   : > { %p2545_p10 = pnand %p2544_p5, %p2538_p4 }
  0xde   : > { %2548 = shalt.err (!%p2545_p10)
}
  0xdf   : > { %2219 = dma.hbm_to_vmem [thread:$0]  (!%p2897_p6), %s3476_s8, 16, %s526_s21, [#allocation14]  }
  0xe0   : > { %s2748_s15 = smov [#allocation18]   ;;  %s2749_s5 = smov [#allocation19]  }
  0xe1   : > { %s547_s19 = sshll.u32 %s2748_s15, 4  ;;  %s561_s11 = sshll.u32 %s2749_s5, 4  ;;  %s548_s19 = int_to_ptr.vmem [resolvable:$true] %s547_s19  ;;  %s562_s11 = int_to_ptr.vmem [resolvable:$true] %s561_s11 }
  0xe2   : > { %s2549_s14 = scalar_lea.hbm %s3428_s10, 16 }
  0xe3   : > { %p2550_p1 = scmp.ne.s32.totalorder %s3428_s10, %s2549_s14  ;;  %p2556_p12 = scmp.lt.u32.totalorder %s2549_s14, %s3428_s10 }
  0xe5   : > { %p2552_p3 = pnand %p2550_p1, %p2913_p8 }
  0xe7   : > { %p2553_p11 = pneg %p2552_p3 }
  0xe9   : > { %p2558_p13 = pnand %p2556_p12, %p2553_p11 }
  0xeb   : > { %2561 = shalt.err (!%p2558_p13)
}
  0xec   : > { %s2562_s21 = scalar_lea.vmem %s548_s19, 16  ;;  %s2569_s27 = scalar_lea.vmem %s548_s19, 32 }
  0xed   : > { %p2563_p0 = scmp.ne.s32.totalorder %s548_s19, %s2562_s21  ;;  %p2570_p7 = scmp.lt.s32.totalorder %s548_s19, %s548_s19 }
  0xee   : > { %p2571_p9 = scmp.lt.s32.totalorder %s2569_s27, %s2562_s21 }
  0xef   : > { %p2565_p2 = pnand %p2563_p0, %p2913_p8 }
  0xf0   : > { %p2572_p5 = por %p2571_p9, %p2570_p7 }
  0xf1   : > { %p2566_p4 = pneg %p2565_p2 }
  0xf3   : > { %p2573_p10 = pnand %p2572_p5, %p2566_p4 }
  0xf5   : > { %2576 = shalt.err (!%p2573_p10)
}
  0xf6   : > { %2225 = dma.hbm_to_vmem [thread:$0]  (!%p2897_p6), %s3428_s10, 16, %s548_s19, [#allocation17]  }
  0xf7   : > { %s2577_s4 = scalar_lea.hbm %s3430_s12, 16 }
  0xf8   : > { %p2578_p1 = scmp.ne.s32.totalorder %s3430_s12, %s2577_s4  ;;  %p2584_p12 = scmp.lt.u32.totalorder %s2577_s4, %s3430_s12 }
  0xfa   : > { %p2580_p3 = pnand %p2578_p1, %p2913_p8 }
  0xfc   : > { %p2581_p11 = pneg %p2580_p3 }
  0xfe   : > { %p2586_p13 = pnand %p2584_p12, %p2581_p11 }
 0x100   : > { %2589 = shalt.err (!%p2586_p13)
}
 0x101   : > { %s2590_s22 = scalar_lea.vmem %s562_s11, 16  ;;  %s2597_s19 = scalar_lea.vmem %s562_s11, 32 }
 0x102   : > { %p2591_p0 = scmp.ne.s32.totalorder %s562_s11, %s2590_s22  ;;  %p2598_p7 = scmp.lt.s32.totalorder %s562_s11, %s562_s11 }
 0x103   : > { %p2599_p9 = scmp.lt.s32.totalorder %s2597_s19, %s2590_s22 }
 0x104   : > { %p2593_p2 = pnand %p2591_p0, %p2913_p8 }
 0x105   : > { %p2600_p5 = por %p2599_p9, %p2598_p7 }
 0x106   : > { %p2594_p4 = pneg %p2593_p2 }
 0x108   : > { %p2601_p10 = pnand %p2600_p5, %p2594_p4 }
 0x10a   : > { %2604 = shalt.err (!%p2601_p10)
}
 0x10b   : > { %2228 = dma.hbm_to_vmem [thread:$0]  (!%p2897_p6), %s3430_s12, 16, %s562_s11, [#allocation20]  }
 0x10c   : > { %s1941_s13 = sadd.s32 4294967294, %s2737_s29   ;;  %s50_s27 = sadd.s32 1, %s2733_s28 }
 0x10d   : > { %s57_s20 = sadd.s32 1, %s2725_s26  ;;  %p52_p8 = scmp.ge.s32.totalorder %s50_s27, 2 }
 0x10e   : > { %p64_p1 = scmp.ne.s32.totalorder %s2725_s26, %s2721_s25  ;;  %p65_p3 = scmp.eq.s32.totalorder %s2737_s29, 0 }
 0x10f   : > { %p70_p11 = scmp.ne.s32.totalorder %s2721_s25, %s2717_s24  ;;  %s3507_s27 = smov (%p52_p8, %s50_s27), 0 }
 0x110   : > { %p3104_p12 = por %p65_p3, %p64_p1  ;;  %p3478_p13 = scmp.ne.s32.totalorder %s3466_s30, 0 }
 0x111   : > { %s54_s17 = ssub.s32 %s2733_s28, %s3507_s27  ;;  %s3480_s15 = sadd.s32 4294967295, %s2737_s29  }
 0x112   : > { %p3110_p6 = por %p3478_p13, %p70_p11  ;;  %p432_p0 = scmp.eq.s32.totalorder %s3480_s15, 1 }
 0x113   : > { %p55_p2 = scmp.eq.s32.totalorder %s54_s17, 0  ;;  %p438_p4 = scmp.eq.s32.totalorder %s1941_s13, 1 }
 0x114   : > { %p3118_p7 = por %p432_p0, %p64_p1  ;;  %p2246_p9 = scmp.lt.s32.totalorder %s2737_s29, 2 }
 0x115   : > { %s3124_s4 = scalar_select %p55_p2, %s2725_s26, %s57_s20  }
 0x116   : > { %s3481_s5 = scalar_select %p3118_p7, 1, 0 }
 0x117   : > { %p3126_p5 = por %p438_p4, %p70_p11  ;;  %s584_s14 = sand.u32 1, %s2725_s26  }
 0x118   : > { %s1953_s1 = sshll.u32 %s584_s14, 3  ;;  %s1954_s2 = sshll.u32 %s2733_s28, 7 }
 0x119   : > { %s3482_s23 = scalar_select %p3126_p5, 1, 0 }
 0x11a   : > { %s3483_s0 = sld [smem:[#allocation31_spill]]  ;;  %s588_s13 = scalar_lea.vmem [#allocation4], %s1953_s1 }
 0x11b   : > { %s595_s17 = sshll.u32 %s588_s13, 4  ;;  %p3141_p10 = pnand %p2246_p9, %p3104_p12  ;;  %s3137_s17 = int_to_ptr.vmem [resolvable:$true] %s595_s17 }
 0x11c   : > { %s585_s15 = scalar_lea.sflag [#allocation5], %s584_s14 }
 0x11d   : > { %p2607_p1 = pneg %p3141_p10 }
 0x120   : > { %s3135_s21 = scalar_lea.hbm %s3483_s0, %s1954_s2  ;;  %s2610_s22 = scalar_lea.hbm %s3483_s0, 256 }
 0x121   : > { %s2605_s3 = scalar_lea.hbm %s3135_s21, 128  ;;  %p2611_p12 = scmp.lt.u32.totalorder %s3135_s21, %s3483_s0 }
 0x122   : > { %p2606_p8 = scmp.ne.s32.totalorder %s3135_s21, %s2605_s3  ;;  %p2612_p13 = scmp.lt.u32.totalorder %s2610_s22, %s2605_s3 }
 0x123   : > { %p2614_p2 = scmp.lt.u32.totalorder %s2605_s3, %s3135_s21 }
 0x124   : > { %p2608_p3 = pnand %p2607_p1, %p2606_p8  ;;  %p2613_p0 = por %p2612_p13, %p2611_p12 }
 0x126   : > { %p2609_p11 = pneg %p2608_p3  ;;  %p2615_p4 = por %p2614_p2, %p2613_p0 }
 0x128   : > { %p2616_p9 = pnand %p2615_p4, %p2609_p11 }
 0x12a   : > { %2619 = shalt.err (!%p2616_p9)
}
 0x12b   : > { %s2620_s14 = scalar_lea.vmem %s3137_s17, 128  ;;  %s2750_s13 = smov [#allocation4]  }
 0x12c   : > { %p2621_p8 = scmp.ne.s32.totalorder %s3137_s17, %s2620_s14  ;;  %s2625_s1 = sshll.u32 %s2750_s13, 4  ;;  %s2626_s1 = int_to_ptr.vmem [resolvable:$false] %s2625_s1 }
 0x12d   : > { %s2627_s2 = scalar_lea.vmem %s2626_s1, 256  ;;  %p2628_p7 = scmp.lt.s32.totalorder %s3137_s17, %s2626_s1 }
 0x12e   : > { %p2623_p3 = pnand %p2621_p8, %p2607_p1  ;;  %p2629_p12 = scmp.lt.s32.totalorder %s2627_s2, %s2620_s14 }
 0x130   : > { %p2624_p5 = pneg %p2623_p3  ;;  %p2630_p13 = por %p2629_p12, %p2628_p7 }
 0x132   : > { %p2631_p0 = pnand %p2630_p13, %p2624_p5 }
 0x134   : > { %2634 = shalt.err (!%p2631_p0)
}
 0x135   : > { %2232 = dma.hbm_to_vmem [thread:$0]  (!%p3141_p10), %s3135_s21, 128, %s3137_s17, %s585_s15  }
 0x136   : > { %s3485_s3 = sld [smem:[#allocation30_spill]] }
 0x13c   : > { %p3486_p11 = scmp.ne.s32.totalorder %s3485_s3, 0 }
 0x13d   : > { %s3173_s22 = sand.u32 (!%p3486_p11), 1, %s2721_s25  }
 0x13e   : > { %604 = sbr.rel (%p3486_p11) target bundleno = 4018 (0xfb2), region = 88  ;;  %s1956_s18 = sshll.u32 (!%p3486_p11), %s3173_s22, 3 }
 0x13f   : > { %s607_s19 = scalar_lea.sflag (!%p3486_p11), [#allocation5], %s3173_s22  ;;  %s610_s14 = scalar_lea.vmem (!%p3486_p11), [#allocation4], %s1956_s18 }
 0x145   : > { %2688 = dma.done.wait (%p3110_p6), %s607_s19, 128  }
 0x146   : > { %2690 = vsyncadd (%p3110_p6), %s607_s19, 4294967168  ;;  %p3487_p7 = scmp.ne.s32.totalorder %s3466_s30, 0 }
 0x148   : > { %2692 = dma.done.wait (%p3487_p7), [#allocation8], 512  }
 0x149   : > { %2694 = vsyncadd (%p3487_p7), [#allocation8], 4294966784 }
 0x14a   : > { %2696 = dma.done.wait (%p3487_p7), [#allocation11], 32  }
 0x14b   : > { %2698 = vsyncadd (%p3487_p7), [#allocation11], 4294967264 }
 0x14c   : > { %2700 = dma.done.wait (%p3487_p7), [#allocation14], 272  }
 0x14d   : > { %2702 = vsyncadd (%p3487_p7), [#allocation14], 4294967024 }
 0x14e   : > { %2704 = dma.done.wait (%p3487_p7), [#allocation17], 32  }
 0x14f   : > { %2706 = vsyncadd (%p3487_p7), [#allocation17], 4294967264 }
 0x150   : > { %2708 = dma.done.wait (%p3487_p7), [#allocation20], 16  }
 0x151   : > { %2710 = vsyncadd (%p3487_p7), [#allocation20], 4294967280  ;;  %v2751_v0 = vmov 0.0   ;;  %vm2752_vm0 = vmmov 0   ;;  %v2321_v1 = vld [vmem:[#allocation9] sm:$0xff]   ;;  %v2322_v2 = vld [vmem:[#allocation9 + $0x8] sm:$0xff]  }
 0x152   : > { %2049 = vmatprep.subr.bf16.mxu0 %v2751_v0  ;;  %2053 = vmatprep.mubr.msk.bf16.mxu0 %vm2752_vm0, %v2751_v0  ;;  %v3209_v3 = vld [vmem:[%s610_s14] sm:$0xff]  ;;  %vm727_vm1 = vcmask 261120   ;;  %v2323_v4 = vld [vmem:[#allocation7] sm:$0xff]   ;;  %v2324_v6 = vld [vmem:[#allocation7 + $0x8] sm:$0xff]   ;;  %s3488_s21 = sld [smem:[#allocation36_spill]]  ;;  %vm772_vm2 = vcmask 257024  }
 0x153   : > { %2057 = vmatprep.subr.bf16.mxu1 %v2751_v0  ;;  %2061 = vmatprep.mubr.msk.bf16.mxu1 %vm2752_vm0, %v2751_v0  ;;  %v703_v5 = vpack.c.bf16 %v3209_v3, %v3209_v3  ;;  %v1967_v9 = vld [vmem:[#allocation10] ss:$0 sm:$0xff]  ;;  %vm913_vm3 = vcmask 64512   ;;  %s3489_s1 = sld [smem:[#allocation33_spill]]  ;;  %s2753_s2 = smov 120   ;;  %vm975_vm4 = vcmask 1043456  }
 0x154   : > { %2050 = vmatpush3.bf16.msra.mxu0 %v2321_v1  ;;  %v1971_v26 = vld [vmem:[#allocation12] ss:$0 sm:$0xff]  ;;  %s2754_s3 = smov 112   ;;  %v1140_v63 = vld [vmem:[#allocation13 + $0x4] sm:$0xf]  ;;  %s2755_s19 = smov 104  }
 0x155   : > { %2051 = vmatprep.subr.bf16.mxu0 %v2751_v0  ;;  %v1145_v1 = vsel %vm975_vm4, %v1140_v63, 0  ;;  %s3490_s11 = sld [smem:[#allocation40_spill]]  ;;  %s3492_s30 = sld [smem:[#allocation42_spill]] }
 0x156   : > { %s3493_s17 = sld [smem:[#allocation29_spill]]  ;;  %s3494_s13 = sld [smem:[#allocation43_spill]] }
 0x157   : > { %s3496_s7 = sld [smem:[#allocation45_spill]]  ;;  %s1759_s20 = scalar_lea.sflag [#allocation6], %s3173_s22 }
 0x158   : > { %2052 = vmatpush3.bf16.msra.mxu0 %v2322_v2  ;;  %v2325_v7 = vld [vmem:[%s3488_s21] sm:$0xff]   ;;  %v2326_v8 = vld [vmem:[%s3488_s21 + $0x8] sm:$0xff]   ;;  %p3497_p5 = scmp.ne.s32.totalorder %s3481_s5, 0 }
 0x159   : > { %2065 = vmatprep.subr.bf16.mxu0 %v2751_v0  ;;  %2058 = vmatpush3.bf16.msra.mxu1 %v2325_v7  ;;  %v1975_v18 = vld [vmem:[%s3489_s1] ss:$0 sm:$0xff]  ;;  %v1020_v7 = vld [vmem:[#allocation13] sm:$0xf]  ;;  %s3491_s1 = sld [smem:[#allocation41_spill]] }
 0x15a   : > { %2059 = vmatprep.subr.bf16.mxu1 %v2751_v0 }
 0x15b   : > { %2054 = vmatmul.mubr.msk.bf16.vlgmr.msra.gmra.mrb[0].mxu0 %vm727_vm1, %v703_v5 }
 0x15c   : > { %2066 = vmatpush3.bf16.msra.mxu0 %v2323_v4  ;;  %2069 = vmatprep.mubr.msk.bf16.mxu0 %vm2752_vm0, %v2751_v0  ;;  %s2007_s14 = sshll.u32 %s3493_s17, 7 }
 0x15d   : > { %2067 = vmatprep.subr.bf16.mxu0 %v2751_v0  ;;  %2060 = vmatpush3.bf16.msra.mxu1 %v2326_v8  ;;  %s3368_s8 = scalar_lea.hbm %s3496_s7, %s2007_s14 }
 0x15e   : > { %2073 = vmatprep.subr.bf16.mxu1 %v2751_v0 }
 0x160   : > { %2068 = vmatpush3.bf16.msra.mxu0 %v2324_v6  ;;  %2062 = vmatmul.mubr.msk.bf16.vlgmr.msra.gmra.mrb[0].mxu1 %vm727_vm1, %v703_v5 }
 0x161   : > { %2079 = vmatprep.subr.bf16.mxu0 %v2751_v0  ;;  %2075 = vmatprep.mubr.msk.bf16.mxu1 %vm2752_vm0, %v2751_v0 }
 0x163   : > { %2070 = vmatmul.mubr.msk.bf16.vlgmr.msra.gmra.mrb[4].mxu0 %vm727_vm1, %v703_v5 }
 0x164   : > { %2081 = vmatprep.mubr.msk.bf16.mxu0 %vm2752_vm0, %v2751_v0 }
 0x22e   : > { %v765_v10 = vpop.f32.mrb[0].mxu0 }
 0x22f   : > { %v766_v11 = vadd.f32 %v1967_v9, %v765_v10  ;;  %v2055_v12 = vpop.f32.mrb[1].mxu0  ;;  %v1191_v10 = vsel %vm975_vm4, %v1020_v7, 0 }
 0x230   : > { %v768_v13 = vpop.f32.mrb[2].mxu0 }
 0x231   : > { %v771_v14 = vpack.c.bf16 %v766_v11, %v766_v11  ;;  %v2056_v15 = vpop.f32.mrb[3].mxu0 }
 0x233   : > { %773 = vst.msk [vmem:[#allocation2] sm:$0xf] %vm772_vm2, %v771_v14  ;;  %v831_v27 = vpop.f32.mrb[0].mxu1 }
 0x234   : > { %v832_v28 = vadd.f32 %v1971_v26, %v831_v27  ;;  %v2063_v29 = vpop.f32.mrb[1].mxu1 }
 0x235   : > { %v834_v30 = vpop.f32.mrb[2].mxu1 }
 0x236   : > { %v904_v16 = vpop.f32.mrb[4].mxu0  ;;  %v837_v31 = vpack.c.bf16 %v832_v28, %v832_v28  ;;  %v2064_v32 = vpop.f32.mrb[3].mxu1 }
 0x237   : > { %v2071_v17 = vpop.f32.mrb[5].mxu0  ;;  %v905_v24 = vadd.f32 %v1975_v18, %v904_v16 }
 0x238   : > { %v907_v19 = vpop.f32.mrb[6].mxu0  ;;  %838 = vst.msk [vmem:[#allocation3] sm:$0xf] %vm772_vm2, %v837_v31 }
 0x239   : > { %v2072_v20 = vpop.f32.mrb[7].mxu0  ;;  %v3244_v25 = vpack.c.bf16 %v905_v24, %v905_v24 }
 0x23a   : > { %v911_v21 = vld [vmem:[#allocation2] sm:$0xf] }
 0x23b   : > { %v918_v22 = vsel %vm913_vm3, %v911_v21, 0  ;;  %v3239_v23 = vcombine.low %v911_v21, %v911_v21 }
 0x23c   : > { %2074 = vmatpush3.bf16.xpose.msra.mxu1 %v918_v22 }
 0x23d   : > { %1027 = vrot.lane.b32.xlu0 %v3239_v23, %s2753_s2  ;;  %2085 = vmatprep.subr.bf16.mxu1 %v2751_v0 }
 0x23f   : > { %v912_v33 = vld [vmem:[#allocation3] sm:$0xf] }
 0x240   : > { %v977_v34 = vsel %vm975_vm4, %v912_v33, 0  ;;  %v3263_v53 = vcombine.low %v912_v33, %v912_v33 }
 0x241   : > { %1022 = vrot.lane.b32.xlu0 %v3244_v25, %s2753_s2  ;;  %2080 = vmatpush3.bf16.msra.mxu0 %v977_v34 }
 0x242   : > { %2091 = vmatprep.subr.bf16.mxu0 %v2751_v0 }
 0x243   : > { %2076 = vmatmul.mubr.msk.bf16.vlgmr.msra.gmra.mrb[4].mxu1 %vm913_vm3, %v3244_v25 }
 0x244   : > { %2087 = vmatprep.mubr.msk.bf16.mxu1 %vm2752_vm0, %v2751_v0 }
 0x2af   : > { %v1028_v35 = vpop.permute.xlu0 %1027 }
 0x2b0   : > { %v1033_v36 = vsel %vm913_vm3, %v1028_v35, 0 }
 0x2b1   : > { %2086 = vmatpush3.bf16.xpose.msra.mxu1 %v1033_v36 }
 0x2b2   : > { %2097 = vmatprep.subr.bf16.mxu1 %v2751_v0 }
 0x2b3   : > { %v1023_v37 = vpop.permute.xlu0 %1022 }
 0x2b8   : > { %2088 = vmatmul.mubr.msk.bf16.vlgmr.msra.gmra.mrb[8].mxu1 %vm913_vm3, %v1023_v37 }
 0x2b9   : > { %2099 = vmatprep.mubr.msk.bf16.mxu1 %vm2752_vm0, %v2751_v0  ;;  %2098 = vmatpush3.bf16.msra.mxu1 %v1145_v1 }
 0x2ba   : > { %2109 = vmatprep.subr.bf16.mxu1 %v2751_v0 }
 0x316   : > { %v954_v38 = vpop.f32.mrb[4].mxu1 }
 0x317   : > { %v2077_v39 = vpop.f32.mrb[5].mxu1  ;;  %v960_v40 = vsel %vm913_vm3, %v954_v38, -inf }
 0x318   : > { %961 = vmax.xlane.f32.xlu1 %v960_v40  ;;  %v957_v41 = vpop.f32.mrb[6].mxu1 }
 0x319   : > { %v2078_v42 = vpop.f32.mrb[7].mxu1 }
 0x38b   : > { %v1069_v43 = vpop.f32.mrb[8].mxu1 }
 0x38c   : > { %v2089_v44 = vpop.f32.mrb[9].mxu1  ;;  %v1075_v45 = vsel %vm913_vm3, %v1069_v43, -inf }
 0x38d   : > { %1076 = vmax.xlane.f32.xlu1 %v1075_v45  ;;  %v1072_v46 = vpop.f32.mrb[10].mxu1 }
 0x38e   : > { %v2090_v47 = vpop.f32.mrb[11].mxu1 }
 0x3a5   : > { %v962_v48 = vpop.xlane.xlu1 %961 }
 0x3a6   : > { %v963_v49 = vsub.f32 %v954_v38, %v962_v48 }
 0x3a8   : > { %v964_v50 = vmul.f32 1.442695, %v963_v49 }
 0x3aa   : > { %2333 = vpow2.f32 %v964_v50 }
 0x3b4   : > { %v2334_v51 = vpop.eup %2333 }
 0x3b5   : > { %v966_v52 = vsel %vm913_vm3, %v2334_v51, 0.0 }
 0x3b6   : > { %967 = vadd.xlane.f32.xlu0 %v966_v52 }
 0x3cc   : > { %1295 = vrot.lane.b32.xlu0 %v3263_v53, %s2754_s3 }
 0x41a   : > { %v1077_v54 = vpop.xlane.xlu1 %1076 }
 0x41b   : > { %v1078_v55 = vsub.f32 %v1069_v43, %v1077_v54 }
 0x41d   : > { %v1079_v56 = vmul.f32 1.442695, %v1078_v55 }
 0x41f   : > { %2335 = vpow2.f32 %v1079_v56 }
 0x429   : > { %v2336_v57 = vpop.eup %2335 }
 0x42a   : > { %v1081_v58 = vsel %vm913_vm3, %v2336_v57, 0.0 }
 0x42b   : > { %1082 = vadd.xlane.f32.xlu1 %v1081_v58 }
 0x43c   : > { %1090 = vrot.lane.b32.xlu1 %v3263_v53, %s2753_s2 }
 0x440   : > { %1235 = vrot.lane.b32.xlu1 %v3239_v23, %s2754_s3 }
 0x443   : > { %v968_v59 = vpop.xlane.xlu0 %967 }
 0x444   : > { %2337 = vrcp.f32 %v968_v59  ;;  %1233 = vrot.lane.b32.xlu1 %v3244_v25, %s2754_s3 }
 0x447   : > { %v1296_v11 = vpop.permute.xlu0 %1295 }
 0x448   : > { %v1301_v16 = vsel %vm975_vm4, %v1296_v11, 0 }
 0x44e   : > { %v2338_v60 = vpop.eup %2337 }
 0x44f   : > { %v970_v61 = vmul.f32 %v2338_v60, %v2334_v51 }
 0x451   : > { %v971_v62 = vpack.c.bf16 %v970_v61, %v970_v61 }
 0x453   : > { %2082 = vmatmul.mubr.msk.bf16.vlgmr.msra.gmra.mrb[8].mxu0 %vm913_vm3, %v971_v62 }
 0x454   : > { %2093 = vmatprep.mubr.msk.bf16.mxu0 %vm2752_vm0, %v2751_v0 }
 0x4b8   : > { %v1083_v2 = vpop.xlane.xlu1 %1082 }
 0x4b9   : > { %2339 = vrcp.f32 %v1083_v2 }
 0x4bc   : > { %v1091_v4 = vpop.permute.xlu1 %1090 }
 0x4bd   : > { %v1096_v5 = vsel %vm975_vm4, %v1091_v4, 0 }
 0x4be   : > { %2092 = vmatpush3.bf16.msra.mxu0 %v1096_v5 }
 0x4bf   : > { %2103 = vmatprep.subr.bf16.mxu0 %v2751_v0 }
 0x4c0   : > { %v1236_v18 = vpop.permute.xlu1 %1235 }
 0x4c1   : > { %v1241_v24 = vsel %vm913_vm3, %v1236_v18, 0 }
 0x4c3   : > { %v2340_v6 = vpop.eup %2339 }
 0x4c4   : > { %v1085_v8 = vmul.f32 %v2340_v6, %v2336_v57  ;;  %v1234_v27 = vpop.permute.xlu1 %1233 }
 0x4c6   : > { %v1086_v9 = vpack.c.bf16 %v1085_v8, %v1085_v8  ;;  %v1505_v8 = vld [vmem:[#allocation13 + $0xc] sm:$0xf] }
 0x4c8   : > { %2094 = vmatmul.mubr.msk.bf16.vlgmr.msra.gmra.mrb[12].mxu0 %vm913_vm3, %v1086_v9  ;;  %v1510_v9 = vsel %vm975_vm4, %v1505_v8, 0 }
 0x4c9   : > { %2104 = vmatpush3.bf16.msra.mxu0 %v1191_v10  ;;  %2105 = vmatprep.mubr.msk.bf16.mxu0 %vm2752_vm0, %v2751_v0 }
 0x4ca   : > { %2115 = vmatprep.subr.bf16.mxu0 %v2751_v0 }
 0x526   : > { %v1013_v12 = vpop.f32.mrb[8].mxu0 }
 0x527   : > { %v1019_v13 = vpack.c.bf16 %v1013_v12, %v1013_v12  ;;  %v2083_v14 = vpop.f32.mrb[9].mxu0 }
 0x528   : > { %v1016_v15 = vpop.f32.mrb[10].mxu0 }
 0x529   : > { %v2084_v17 = vpop.f32.mrb[11].mxu0  ;;  %2106 = vmatmul.mubr.msk.bf16.vlgmr.msra.gmra.mrb[16].mxu0 %vm913_vm3, %v1019_v13 }
 0x52a   : > { %2116 = vmatpush3.bf16.msra.mxu0 %v1301_v16  ;;  %2117 = vmatprep.mubr.msk.bf16.mxu0 %vm2752_vm0, %v2751_v0 }
 0x52b   : > { %2127 = vmatprep.subr.bf16.mxu0 %v2751_v0 }
 0x59b   : > { %v1132_v19 = vpop.f32.mrb[12].mxu0 }
 0x59c   : > { %v1138_v20 = vpack.c.bf16 %v1132_v19, %v1132_v19  ;;  %v2095_v21 = vpop.f32.mrb[13].mxu0 }
 0x59d   : > { %v1135_v22 = vpop.f32.mrb[14].mxu0 }
 0x59e   : > { %v2096_v26 = vpop.f32.mrb[15].mxu0  ;;  %2100 = vmatmul.mubr.msk.bf16.vlgmr.msra.gmra.mrb[12].mxu1 %vm913_vm3, %v1138_v20 }
 0x59f   : > { %2110 = vmatpush3.bf16.xpose.msra.mxu1 %v1241_v24  ;;  %2111 = vmatprep.mubr.msk.bf16.mxu1 %vm2752_vm0, %v2751_v0 }
 0x5a0   : > { %2121 = vmatprep.subr.bf16.mxu1 %v2751_v0 }
 0x5a6   : > { %2112 = vmatmul.mubr.msk.bf16.vlgmr.msra.gmra.mrb[16].mxu1 %vm913_vm3, %v1234_v27 }
 0x5a7   : > { %2123 = vmatprep.mubr.msk.bf16.mxu1 %vm2752_vm0, %v2751_v0 }
 0x5fc   : > { %v1227_v28 = vpop.f32.mrb[16].mxu0 }
 0x5fd   : > { %v2107_v29 = vpop.f32.mrb[17].mxu0 }
 0x5fe   : > { %v1230_v30 = vpop.f32.mrb[18].mxu0 }
 0x5ff   : > { %v2108_v31 = vpop.f32.mrb[19].mxu0 }
 0x671   : > { %v1181_v32 = vpop.f32.mrb[12].mxu1 }
 0x672   : > { %v3296_v33 = vadd.f32 %v1227_v28, %v1181_v32  ;;  %v2101_v34 = vpop.f32.mrb[13].mxu1  ;;  %v1993_v28 = vld [vmem:[#allocation15] ss:$0 sm:$0xff] }
 0x673   : > { %v1184_v35 = vpop.f32.mrb[14].mxu1 }
 0x674   : > { %v2102_v36 = vpop.f32.mrb[15].mxu1 }
 0x679   : > { %v1277_v37 = vpop.f32.mrb[16].mxu1 }
 0x67a   : > { %v2113_v38 = vpop.f32.mrb[17].mxu1  ;;  %v1283_v39 = vsel %vm913_vm3, %v1277_v37, -inf }
 0x67b   : > { %1284 = vmax.xlane.f32.xlu1 %v1283_v39  ;;  %v1280_v40 = vpop.f32.mrb[18].mxu1 }
 0x67c   : > { %v2114_v41 = vpop.f32.mrb[19].mxu1 }
 0x67d   : > { %v2329_v41 = vld [vmem:[%s3490_s11] sm:$0xff]  }
 0x708   : > { %v1285_v42 = vpop.xlane.xlu1 %1284 }
 0x709   : > { %v1286_v43 = vsub.f32 %v1277_v37, %v1285_v42  ;;  %v2330_v42 = vld [vmem:[%s3490_s11 + $0x8] sm:$0xff]  }
 0x70b   : > { %v1287_v44 = vmul.f32 1.442695, %v1286_v43 }
 0x70d   : > { %2341 = vpow2.f32 %v1287_v44 }
 0x717   : > { %v2342_v45 = vpop.eup %2341 }
 0x718   : > { %v1289_v46 = vsel %vm913_vm3, %v2342_v45, 0.0 }
 0x719   : > { %1290 = vadd.xlane.f32.xlu0 %v1289_v46  ;;  %v1994_v46 = vld [vmem:[#allocation16] ss:$0 sm:$0xff] }
 0x72f   : > { %1395 = vrot.lane.b32.xlu0 %v3239_v23, %s2755_s19 }
 0x733   : > { %1393 = vrot.lane.b32.xlu0 %v3244_v25, %s2755_s19  ;;  %v1345_v25 = vld [vmem:[#allocation13 + $0x8] sm:$0xf] }
 0x734   : > { %v1350_v54 = vsel %vm975_vm4, %v1345_v25, 0  ;;  %v1996_v25 = vld [vmem:[#allocation19] ss:$0 sm:$0xff] }
 0x735   : > { %2122 = vmatpush3.bf16.msra.mxu1 %v1350_v54 }
 0x736   : > { %2133 = vmatprep.subr.bf16.mxu1 %v2751_v0 }
 0x7a6   : > { %v1291_v47 = vpop.xlane.xlu0 %1290 }
 0x7a7   : > { %2343 = vrcp.f32 %v1291_v47 }
 0x7aa   : > { %v1396_v50 = vpop.permute.xlu0 %1395 }
 0x7ab   : > { %v1401_v52 = vsel %vm913_vm3, %v1396_v50, 0 }
 0x7ae   : > { %v1394_v23 = vpop.permute.xlu0 %1393 }
 0x7b1   : > { %v2344_v48 = vpop.eup %2343 }
 0x7b2   : > { %v1293_v49 = vmul.f32 %v2344_v48, %v2342_v45  ;;  %v1995_v48 = vld [vmem:[#allocation18] ss:$0 sm:$0xff] }
 0x7b4   : > { %v1294_v51 = vpack.c.bf16 %v1293_v49, %v1293_v49 }
 0x7b6   : > { %2118 = vmatmul.mubr.msk.bf16.vlgmr.msra.gmra.mrb[20].mxu0 %vm913_vm3, %v1294_v51 }
 0x7b7   : > { %2128 = vmatpush3.bf16.xpose.msra.mxu0 %v1401_v52  ;;  %2129 = vmatprep.mubr.msk.bf16.mxu0 %vm2752_vm0, %v2751_v0  ;;  %v2331_v52 = vld [vmem:[%s3491_s1] sm:$0xff]  }
 0x7b8   : > { %2139 = vmatprep.subr.bf16.mxu0 %v2751_v0 }
 0x7be   : > { %2130 = vmatmul.mubr.msk.bf16.vlgmr.msra.gmra.mrb[24].mxu0 %vm913_vm3, %v1394_v23  ;;  %v2332_v23 = vld [vmem:[%s3491_s1 + $0x8] sm:$0xff]  }
 0x7bf   : > { %2141 = vmatprep.mubr.msk.bf16.mxu0 %vm2752_vm0, %v2751_v0  ;;  %2140 = vmatpush3.bf16.msra.mxu0 %v1510_v9 }
 0x7c0   : > { %2153 = vmatprep.subr.bf16.mxu0 %v2751_v0 }
 0x889   : > { %v1337_v55 = vpop.f32.mrb[20].mxu0 }
 0x88a   : > { %v1343_v56 = vpack.c.bf16 %v1337_v55, %v1337_v55  ;;  %v2119_v57 = vpop.f32.mrb[21].mxu0 }
 0x88b   : > { %v1340_v58 = vpop.f32.mrb[22].mxu0 }
 0x88c   : > { %v2120_v59 = vpop.f32.mrb[23].mxu0  ;;  %2124 = vmatmul.mubr.msk.bf16.vlgmr.msra.gmra.mrb[20].mxu1 %vm913_vm3, %v1343_v56 }
 0x88d   : > { %2135 = vmatprep.mubr.msk.bf16.mxu1 %vm2752_vm0, %v2751_v0 }
 0x891   : > { %v1437_v60 = vpop.f32.mrb[24].mxu0 }
 0x892   : > { %v2131_v61 = vpop.f32.mrb[25].mxu0  ;;  %v1443_v62 = vsel %vm913_vm3, %v1437_v60, -inf }
 0x893   : > { %1444 = vmax.xlane.f32.xlu0 %v1443_v62  ;;  %v1440_v63 = vpop.f32.mrb[26].mxu0  ;;  %v2000_v61 = vld [vmem:[%s3492_s30] ss:$0 sm:$0xff]  ;;  %s696_s30 = scalar_lea.vmem [#allocation21], %s1956_s18  ;;  %s2756_s18 = smov [#allocation21]  }
 0x894   : > { %v2132_v1 = vpop.f32.mrb[27].mxu0  ;;  %s1773_s0 = sshll.u32 %s696_s30, 4  ;;  %s2639_s17 = sshll.u32 %s2756_s18, 4  ;;  %s3370_s0 = int_to_ptr.vmem [resolvable:$true] %s1773_s0  ;;  %s2640_s17 = int_to_ptr.vmem [resolvable:$false] %s2639_s17 }
 0x895   : > { %s2635_s15 = scalar_lea.vmem %s3370_s0, 128  ;;  %p2642_p2 = scmp.lt.s32.totalorder %s3370_s0, %s2640_s17 }
 0x896   : > { %p2636_p6 = scmp.ne.s32.totalorder %s3370_s0, %s2635_s15 }
 0x898   : > { %p2637_p10 = pnand %p2636_p6, %p3497_p5 }
 0x89a   : > { %p2638_p1 = pneg %p2637_p10 }
 0x920   : > { %v1445_v2 = vpop.xlane.xlu0 %1444 }
 0x921   : > { %v1446_v4 = vsub.f32 %v1437_v60, %v1445_v2 }
 0x923   : > { %v1447_v5 = vmul.f32 1.442695, %v1446_v4 }
 0x925   : > { %2345 = vpow2.f32 %v1447_v5 }
 0x92f   : > { %v2346_v6 = vpop.eup %2345 }
 0x930   : > { %v1449_v7 = vsel %vm913_vm3, %v2346_v6, 0.0 }
 0x931   : > { %1450 = vadd.xlane.f32.xlu1 %v1449_v7 }
 0x942   : > { %1455 = vrot.lane.b32.xlu1 %v3263_v53, %s2755_s19  ;;  %s3495_s19 = sld [smem:[#allocation44_spill]] }
 0x95f   : > { %v1386_v10 = vpop.f32.mrb[20].mxu1 }
 0x960   : > { %v1392_v11 = vadd.f32 %v1386_v10, %v3296_v33  ;;  %v2125_v12 = vpop.f32.mrb[21].mxu1 }
 0x961   : > { %v1389_v13 = vpop.f32.mrb[22].mxu1 }
 0x962   : > { %v2126_v14 = vpop.f32.mrb[23].mxu1 }
 0x9be   : > { %v1451_v15 = vpop.xlane.xlu1 %1450 }
 0x9bf   : > { %2347 = vrcp.f32 %v1451_v15  ;;  %v2004_v15 = vld [vmem:[%s3494_s13] ss:$0 sm:$0xff]  ;;  %s2641_s13 = scalar_lea.vmem %s2640_s17, 256 }
 0x9c0   : > { %p2643_p4 = scmp.lt.s32.totalorder %s2641_s13, %s2635_s15 }
 0x9c2   : > { %v1456_v16 = vpop.permute.xlu1 %1455  ;;  %p2644_p9 = por %p2643_p4, %p2642_p2 }
 0x9c3   : > { %v1461_v17 = vsel %vm975_vm4, %v1456_v16, 0 }
 0x9c4   : > { %2134 = vmatpush3.bf16.msra.mxu1 %v1461_v17  ;;  %v2005_v17 = vld [vmem:[%s3495_s19] ss:$0 sm:$0xff]  ;;  %p2645_p8 = pnand %p2644_p9, %p2638_p1 }
 0x9c5   : > { %2145 = vmatprep.subr.bf16.mxu1 %v2751_v0 }
 0x9c9   : > { %v2348_v53 = vpop.eup %2347 }
 0x9ca   : > { %v1453_v18 = vmul.f32 %v2348_v53, %v2346_v6 }
 0x9cc   : > { %v1454_v19 = vpack.c.bf16 %v1453_v18, %v1453_v18 }
 0x9ce   : > { %2136 = vmatmul.mubr.msk.bf16.vlgmr.msra.gmra.mrb[24].mxu1 %vm913_vm3, %v1454_v19 }
 0x9cf   : > { %2149 = vmatprep.mubr.msk.bf16.mxu1 %vm2752_vm0, %v2751_v0  ;;  %2146 = vmatpush3.bf16.msra.mxu1 %v2329_v41 }
 0x9d0   : > { %2147 = vmatprep.subr.bf16.mxu1 %v2751_v0 }
 0x9d3   : > { %2148 = vmatpush3.bf16.msra.mxu1 %v2330_v42 }
 0xaa1   : > { %v1497_v20 = vpop.f32.mrb[24].mxu1 }
 0xaa2   : > { %v1503_v21 = vpack.c.bf16 %v1497_v20, %v1497_v20  ;;  %v2137_v22 = vpop.f32.mrb[25].mxu1 }
 0xaa3   : > { %v1500_v24 = vpop.f32.mrb[26].mxu1 }
 0xaa4   : > { %v2138_v26 = vpop.f32.mrb[27].mxu1  ;;  %2142 = vmatmul.mubr.msk.bf16.vlgmr.msra.gmra.mrb[28].mxu0 %vm913_vm3, %v1503_v21 }
 0xaa5   : > { %2157 = vmatprep.mubr.msk.bf16.mxu0 %vm2752_vm0, %v2751_v0  ;;  %2154 = vmatpush3.bf16.msra.mxu0 %v2331_v52 }
 0xaa6   : > { %2155 = vmatprep.subr.bf16.mxu0 %v2751_v0 }
 0xaa9   : > { %2156 = vmatpush3.bf16.msra.mxu0 %v2332_v23 }
 0xb77   : > { %v1546_v27 = vpop.f32.mrb[28].mxu0 }
 0xb78   : > { %v1552_v29 = vadd.f32 %v1546_v27, %v1392_v11  ;;  %v2143_v30 = vpop.f32.mrb[29].mxu0 }
 0xb79   : > { %v1549_v31 = vpop.f32.mrb[30].mxu0 }
 0xb7a   : > { %v1560_v32 = vadd.f32 %v1993_v28, %v1552_v29  ;;  %v2144_v33 = vpop.f32.mrb[31].mxu0 }
 0xb7c   : > { %v1561_v34 = vadd.f32 %v1560_v32, %v3209_v3 }
 0xb7e   : > { %v1564_v35 = vsel %vm727_vm1, %v1561_v34, 0.0 }
 0xb7f   : > { %1565 = vadd.xlane.f32.xlu1 %v1564_v35 }
 0xc0c   : > { %v1566_v36 = vpop.xlane.xlu1 %1565 }
 0xc0d   : > { %v1568_v37 = vmul.f32 0.03125, %v1566_v36 }
 0xc0f   : > { %v1569_v38 = vsub.f32 %v1561_v34, %v1568_v37 }
 0xc11   : > { %v1570_v39 = vmul.f32 %v1569_v38, %v1569_v38 }
 0xc13   : > { %v1571_v40 = vsel %vm727_vm1, %v1570_v39, 0.0 }
 0xc14   : > { %1572 = vadd.xlane.f32.xlu0 %v1571_v40 }
 0xca1   : > { %v1573_v3 = vpop.xlane.xlu0 %1572 }
 0xca2   : > { %v1574_v43 = vmul.f32 0.03125, %v1573_v3 }
 0xca4   : > { %v1575_v44 = vadd.f32 1e-05, %v1574_v43 }
 0xca6   : > { %2349 = vrsqrt.f32 %v1575_v44 }
 0xcb0   : > { %v2350_v45 = vpop.eup %2349 }
 0xcb1   : > { %v1577_v47 = vmul.f32 %v2350_v45, %v1569_v38 }
 0xcb3   : > { %v1584_v49 = vmul.f32 %v1994_v46, %v1577_v47 }
 0xcb5   : > { %v1591_v50 = vadd.f32 %v1995_v48, %v1584_v49 }
 0xcb7   : > { %v1592_v51 = vpack.c.bf16 %v1591_v50, %v1591_v50 }
 0xcb9   : > { %2150 = vmatmul.mubr.msk.bf16.vlgmr.msra.gmra.mrb[28].mxu1 %vm727_vm1, %v1592_v51 }
 0xd8c   : > { %v1653_v54 = vpop.f32.mrb[28].mxu1 }
 0xd8d   : > { %v1654_v55 = vadd.f32 %v1996_v25, %v1653_v54  ;;  %v2151_v56 = vpop.f32.mrb[29].mxu1 }
 0xd8e   : > { %v1656_v57 = vpop.f32.mrb[30].mxu1 }
 0xd8f   : > { %v1659_v58 = vmax.f32 %v1654_v55, 0.0  ;;  %v2152_v59 = vpop.f32.mrb[31].mxu1 }
 0xd91   : > { %v1660_v60 = vpack.c.bf16 %v1659_v58, %v1659_v58 }
 0xd93   : > { %2158 = vmatmul.mubr.msk.bf16.vlgmr.msra.gmra.mrb[32].mxu0 %vm727_vm1, %v1660_v60 }
 0xe66   : > { %v1721_v0 = vpop.f32.mrb[32].mxu0 }
 0xe67   : > { %v1722_v62 = vadd.f32 %v2000_v61, %v1721_v0  ;;  %v2159_v63 = vpop.f32.mrb[33].mxu0 }
 0xe68   : > { %v1724_v1 = vpop.f32.mrb[34].mxu0 }
 0xe69   : > { %v2160_v2 = vpop.f32.mrb[35].mxu0  ;;  %v1727_v4 = vadd.f32 %v1722_v62, %v1591_v50 }
 0xe6b   : > { %v1730_v5 = vsel %vm727_vm1, %v1727_v4, 0.0 }
 0xe6c   : > { %1731 = vadd.xlane.f32.xlu0 %v1730_v5 }
 0xef9   : > { %v1732_v6 = vpop.xlane.xlu0 %1731 }
 0xefa   : > { %v1733_v7 = vmul.f32 0.03125, %v1732_v6 }
 0xefc   : > { %v1734_v8 = vsub.f32 %v1727_v4, %v1733_v7 }
 0xefe   : > { %v1735_v9 = vmul.f32 %v1734_v8, %v1734_v8 }
 0xf00   : > { %v1736_v10 = vsel %vm727_vm1, %v1735_v9, 0.0 }
 0xf01   : > { %1737 = vadd.xlane.f32.xlu0 %v1736_v10 }
 0xf8e   : > { %v1738_v11 = vpop.xlane.xlu0 %1737 }
 0xf8f   : > { %v1739_v12 = vmul.f32 0.03125, %v1738_v11 }
 0xf91   : > { %v1740_v13 = vadd.f32 1e-05, %v1739_v12 }
 0xf93   : > { %2351 = vrsqrt.f32 %v1740_v13 }
 0xf9d   : > { %v2352_v14 = vpop.eup %2351 }
 0xf9e   : > { %v1742_v16 = vmul.f32 %v2352_v14, %v1734_v8 }
 0xfa0   : > { %v1749_v53 = vmul.f32 %v2004_v15, %v1742_v16 }
 0xfa2   : > { %v1756_v18 = vadd.f32 %v2005_v17, %v1749_v53 }
 0xfa4   : > { %1757 = vst.msk [vmem:[%s696_s30] sm:$0xff] %vm727_vm1, %v1756_v18 }
 0xfa5   : > { %2648 = shalt.err (!%p2645_p8)
}
 0xfa6   : > { %s2649_s6 = scalar_lea.hbm %s3368_s8, 128  ;;  %s2653_s2 = scalar_lea.hbm %s3496_s7, 256 }
 0xfa7   : > { %p2650_p3 = scmp.ne.s32.totalorder %s3368_s8, %s2649_s6  ;;  %p2654_p0 = scmp.lt.u32.totalorder %s3368_s8, %s3496_s7 }
 0xfa8   : > { %p2655_p11 = scmp.lt.u32.totalorder %s2653_s2, %s2649_s6  ;;  %p2657_p6 = scmp.lt.u32.totalorder %s2649_s6, %s3368_s8 }
 0xfa9   : > { %p2651_p12 = pnand %p2650_p3, %p3497_p5 }
 0xfaa   : > { %p2656_p7 = por %p2655_p11, %p2654_p0 }
 0xfab   : > { %p2652_p13 = pneg %p2651_p12 }
 0xfac   : > { %p2658_p10 = por %p2657_p6, %p2656_p7 }
 0xfae   : > { %p2659_p1 = pnand %p2658_p10, %p2652_p13 }
 0xfb0   : > { %2662 = shalt.err (!%p2659_p1)
}
 0xfb1   : > { %2199 = dma.vmem_to_hbm [thread:$0]  (%p3497_p5), %s3370_s0, 128, %s3368_s8, %s1759_s20  }
 0xfb2 PF: > { %s1785_s14 = sand.u32 1, %s2717_s24   ;;  %p3498_p2 = scmp.ne.s32.totalorder %s3482_s23, 0 }
 0xfb3   : > { %p3499_p4 = scmp.ge.s32.totalorder %s2737_s29, 2  ;;  %s1786_s30 = scalar_lea.sflag [#allocation6], %s1785_s14 }
 0xfb5   : > { %p2234_p9 = pnand %p3499_p4, %p3498_p2 }
 0xfb7   : > { %2712 = dma.done.wait (!%p2234_p9), %s1786_s30, 128  }
 0xfb8   : > { %2714 = vsyncadd (!%p2234_p9), %s1786_s30, 4294967168  ;;  %s38_s29 = sadd.s32 1, %s2737_s29   ;;  %s3500_s5 = smov %s3507_s27 }
 0xfb9   : > { %p35_p8 = scmp.ge.s32.totalorder %s38_s29, 4   ;;  %s3501_s24 = smov %s2721_s25 }
 0xfba   : > { %s3502_s25 = smov %s2725_s26  ;;  %s3503_s26 = smov %s3124_s4 }
 0xfbb   : > { %s3504_s27 = smov %s2733_s28  ;;  %s3505_s28 = smov %s3500_s5 }
 0xfbc   :  { %37 = sbr.rel (!%p35_p8) target bundleno = 27 (0x1b), region = 177 }
 0xfc3   :  { %1791 = vsyncpa [#allocation5], 1 }
 0xfc4   :  { %1793 = vsyncpa [#allocation5 + $0x1], 1 }
 0xfc5   :  { %1794 = vsyncpa [#allocation8], 1 }
 0xfc6   :  { %1795 = vsyncpa [#allocation11], 1 }
 0xfc7   :  { %1796 = vsyncpa [#allocation14], 1 }
 0xfc8   :  { %1797 = vsyncpa [#allocation17], 1 }
 0xfc9   :  { %1798 = vsyncpa [#allocation20], 1 }
 0xfca   :  { %1799 = vsyncpa [#allocation6], 1 }
 0xfcb   :  { %1801 = vsyncpa [#allocation6 + $0x1], 1 }

</bundles_post_ra>
